<compile_context>
chip_gen: v6e
topology: v6e:2x2x1
jax: 0.10.0
libtpu: 0.0.40
codegen_flags: <defaults>
</compile_context>

<pallas_src>
import jax
import jax.numpy as jnp
from jax.experimental import pallas as pl
from jax.experimental.pallas import tpu as pltpu


def _mix32(u):
    """xorshift-multiply finalizer (lowbias32-style) on uint32.

    Only used on the cheap (TB,C,1)/(1,1,E) key tensors, never per cvec element.
    """
    u = u ^ (u >> 16)
    u = u * jnp.uint32(0x7FEB352D)
    u = u ^ (u >> 15)
    u = u * jnp.uint32(0x846CA68B)
    u = u ^ (u >> 16)
    return u


def _cheap_combine(a, b):
    """~3-op per-element combine of two pre-mixed uint32 streams.

    Dropout-grade only: the inputs are already full-avalanche mixed, the odd
    multiply scrambles the high bits the threshold compare depends on.
    """
    u = (a + b) * jnp.uint32(0x9E3779B9)
    return u ^ (u >> 16)


def word2vec_kernel(seed_ref, t_ref, c_ref, o_ref):
    # seed_ref: SMEM (1,)        int32
    # t_ref:    VMEM (TB, E)     f32  target-word rows (from context_embeddings)
    # c_ref:    VMEM (TB, C, E)  f32  context-word rows (from target_embeddings)
    # o_ref:    VMEM (TB, C)     f32  sigmoid scores
    TB, C, E = c_ref.shape
    pid = pl.program_id(0)
    seed_u = seed_ref[0].astype(jnp.uint32)
    golden = jnp.uint32(0x9E3779B9)

    # ---- counter-based keep masks  (== torch.rand(shape) > 0.1) -------------
    # Keys are built on small (TB,C,1) / (TB,1,1) / (1,1,E) tensors with the
    # full mixer; only the ~3-op combine + compare + select touch (TB,C,E).
    # Global batch index so every grid step (and each v7x core) gets a distinct
    # random stream.
    b_glob = (jax.lax.broadcasted_iota(jnp.int32, (TB, 1, 1), 0)
              + pid * TB).astype(jnp.uint32)                             # (TB,1,1)
    c_idx = jax.lax.broadcasted_iota(jnp.int32, (TB, C, 1), 1).astype(jnp.uint32)
    e_idx = jax.lax.broadcasted_iota(jnp.int32, (1, 1, E), 2).astype(jnp.uint32)

    col_key = _mix32(e_idx + seed_u * golden)                            # (1,1,E)
    # context mask keyed on global (b, c); target mask keyed on b only
    # (the torch target_rand has shape (B, 1, E): shared across the C axis).
    # NOTE: both masks reuse col_key, so they are only weakly independent —
    # acceptable for dropout.
    row_key_c = _mix32((b_glob * jnp.uint32(C) + c_idx) * golden
                       + seed_u + jnp.uint32(0x85EBCA6B))                # (TB,C,1)
    row_key_t = _mix32(b_glob * golden + seed_u + jnp.uint32(0xC2B2AE35))  # (TB,1,1)

    # keep  <=>  uniform > 0.1  <=>  bits > floor(0.1 * 2**32)  (uint compare)
    thresh = jnp.uint32(429496729)

    # Target mask applied on the (TB, E) target rows — E-times cheaper than
    # folding it into the (TB,C,E) select (identical result: keep_t is shared
    # across the C axis).
    keep_t = _cheap_combine(row_key_t, col_key) > thresh                 # (TB,1,E)
    t = jnp.where(keep_t[:, 0, :], t_ref[...], 0.0)                      # (TB,E)

    # Context mask: the only full-size integer work (~3 ops/element + compare).
    keep_c = _cheap_combine(row_key_c, col_key) > thresh                 # (TB,C,E)

    # ---- masked dot over E: VPU multiply + cross-lane sum (no MXU) ----------
    prod = jnp.where(keep_c, t[:, None, :] * c_ref[...], 0.0)           # (TB,C,E)
    dots = jnp.sum(prod, axis=-1)                                        # (TB,C)

    # Sigmoid: exp on EUP, approximate reciprocal on EUP (both slots otherwise
    # idle). Output is ~E times smaller than the inputs, so the (TB, C)
    # partially-masked store is not the bottleneck here.
    o_ref[...] = pl.reciprocal(1.0 + jnp.exp(-dots), approx=True)


def _round_up(x, m):
    return (x + m - 1) // m * m


def _pick_batch_tile(B, C, E, rows_per_block, max_block_bytes=8 << 20):
    """Pick a batch tile TB that is a multiple of 8 (sublane rule), keeps the
    (TB, C, E) f32 block <= max_block_bytes (8 MiB cap: double-buffered it must
    fit v7x's 64 MiB VMEM with headroom), and gives >= 2 grid steps when there
    is enough work so both v7x TensorCores are used."""
    rows = max(C, min(rows_per_block, max_block_bytes // (E * 4)))
    tb = max(1, rows // max(C, 1))
    tb = min(tb, _round_up(B, 8))
    tb = max(8, (tb // 8) * 8)
    if _round_up(B, tb) // tb < 2 and tb >= 16:
        tb //= 2          # still a multiple of 8; grid becomes >= 2
    return tb


def word2vec_forward(context_embeddings, target_embeddings,
                     target_word_id, context_word_ids, seed,
                     rows_per_block=8192):
    """context_embeddings/target_embeddings: (V, E) f32; ids int32; seed int."""
    B = target_word_id.shape[0]
    C = context_word_ids.shape[1]
    E = context_embeddings.shape[1]

    TB = _pick_batch_tile(B, C, E, rows_per_block)
    B_pad = _round_up(B, TB)
    if B_pad != B:
        # Pad the *ids* (cheap) rather than the gathered tensors, so we never
        # copy the dominant (B, C, E) tensor just to pad it.
        pad = B_pad - B
        target_word_id = jnp.pad(target_word_id, (0, pad))
        context_word_ids = jnp.pad(context_word_ids, ((0, pad), (0, 0)))

    # Embedding row gathers (glue). Names follow the PyTorch module exactly:
    # the *context* table is indexed by the target id, and vice-versa.
    # TODO(synk): see header — per-row DMA gather fusion is not a win at 512 B
    # rows, so the gather stays here.
    tvec = jnp.take(context_embeddings, target_word_id, axis=0)          # (B_pad, E)
    cvec = jnp.take(target_embeddings, context_word_ids, axis=0)         # (B_pad, C, E)

    seed_arr = jnp.asarray([seed], dtype=jnp.int32)
    grid = (B_pad // TB,)

    # Explicit VMEM budget: double-buffered in/out blocks + margin.  Floor at
    # 16 MiB (covers v5e's low scoped default), cap at 48 MiB (v7x has only
    # 64 MiB physical VMEM per TensorCore).
    block_bytes = 4 * (TB * C * E + TB * E + TB * C)
    vmem_limit = int(min(max(2 * block_bytes + (4 << 20), 16 << 20), 48 << 20))

    out = pl.pallas_call(
        word2vec_kernel,
        out_shape=jax.ShapeDtypeStruct((B_pad, C), jnp.float32),
        grid=grid,
        in_specs=[
            pl.BlockSpec(memory_space=pltpu.MemorySpace.SMEM),            # seed
            pl.BlockSpec((TB, E), lambda i: (i, 0)),                      # tvec tile
            pl.BlockSpec((TB, C, E), lambda i: (i, 0, 0)),                # cvec tile
        ],
        out_specs=pl.BlockSpec((TB, C), lambda i: (i, 0)),
        compiler_params=pltpu.CompilerParams(
            dimension_semantics=("parallel",),
            vmem_limit_bytes=vmem_limit),
    )(seed_arr, tvec, cvec)

    return out[:B] if B_pad != B else out


if __name__ == "__main__":
    # Small, module-consistent shapes.  B=60 deliberately not a multiple of the
    # batch tile to exercise the padding path; the default rows_per_block gives
    # a 2-step grid here (TB=32).
    VOCAB = 64
    EMBED = 128      # lane-aligned embedding size
    B = 60           # batch of target words
    C = 16           # context (pos + neg) words per target

    key = jax.random.PRNGKey(0)
    k_ctx, k_tgt, k_tid, k_cid = jax.random.split(key, 4)

    # nn.Embedding weights, uniform(-0.5/V, 0.5/V) as in init_emb.
    init_range = 0.5 / VOCAB
    context_embeddings = jax.random.uniform(
        k_ctx, (VOCAB, EMBED), jnp.float32, -init_range, init_range)
    target_embeddings = jax.random.uniform(
        k_tgt, (VOCAB, EMBED), jnp.float32, -init_range, init_range)

    target_word_id = jax.random.randint(k_tid, (B,), 0, VOCAB, dtype=jnp.int32)
    context_word_ids = jax.random.randint(k_cid, (B, C), 0, VOCAB, dtype=jnp.int32)

    out = word2vec_forward(context_embeddings, target_embeddings,
                           target_word_id, context_word_ids, seed=1234)
    out = jax.block_until_ready(out)

    assert out.shape == (B, C)
    assert out.dtype == jnp.float32
    assert bool(jnp.all(jnp.isfinite(out)))
    assert bool(jnp.all((out > 0.0) & (out < 1.0)))  # sigmoid range
    print("KERNEL_OK")
</pallas_src>

<mosaic_0001>
module attributes {stable_mosaic.version = 11 : i64} {
  func.func @word2vec_kernel(%arg0: i32, %arg1: memref<1xi32, #tpu.memory_space<smem>>, %arg2: memref<32x128xf32, #tpu.memory_space<vmem>>, %arg3: memref<32x16x128xf32, #tpu.memory_space<vmem>>, %arg4: memref<32x16xf32, #tpu.memory_space<vmem>>) attributes {dimension_semantics = [#tpu.dimension_semantics<parallel>], iteration_bounds = array<i64: 2>, scalar_prefetch = 0 : i64, scratch_operands = 0 : i64, tpu.core_type = #tpu.core_type<tc>, window_params = [{transform_indices = @transform_0, window_bounds = array<i64: 1>}, {transform_indices = @transform_1, window_bounds = array<i64: 32, 128>}, {transform_indices = @transform_2, window_bounds = array<i64: 32, 16, 128>}, {transform_indices = @transform_3, window_bounds = array<i64: 32, 16>}]} {
    %c0 = arith.constant 0 : index
    %0 = memref.load %arg1[%c0] : memref<1xi32, #tpu.memory_space<smem>>
    %1 = tpu.iota {dimensions = array<i32: 0>} : vector<32x1x1xi32>
    %c32_i32 = arith.constant 32 : i32
    %2 = arith.muli %arg0, %c32_i32 : i32
    %3 = vector.broadcast %2 : i32 to vector<32x1x1xi32>
    %4 = arith.addi %1, %3 : vector<32x1x1xi32>
    %5 = tpu.iota {dimensions = array<i32: 1>} : vector<32x16x1xi32>
    %6 = tpu.iota {dimensions = array<i32: 2>} : vector<1x1x128xi32>
    %c-1640531527_i32 = arith.constant -1640531527 : i32
    %7 = arith.muli %0, %c-1640531527_i32 : i32
    %8 = vector.broadcast %7 : i32 to vector<1x1x128xi32>
    %9 = arith.addi %6, %8 : vector<1x1x128xi32>
    %c16_i32 = arith.constant 16 : i32
    %10 = vector.broadcast %c16_i32 : i32 to vector<1x1x128xi32>
    %11 = arith.shrui %9, %10 : vector<1x1x128xi32>
    %12 = arith.xori %9, %11 : vector<1x1x128xi32>
    %c2146121005_i32 = arith.constant 2146121005 : i32
    %13 = vector.broadcast %c2146121005_i32 : i32 to vector<1x1x128xi32>
    %14 = arith.muli %12, %13 : vector<1x1x128xi32>
    %c15_i32 = arith.constant 15 : i32
    %15 = vector.broadcast %c15_i32 : i32 to vector<1x1x128xi32>
    %16 = arith.shrui %14, %15 : vector<1x1x128xi32>
    %17 = arith.xori %14, %16 : vector<1x1x128xi32>
    %c-2073254261_i32 = arith.constant -2073254261 : i32
    %18 = vector.broadcast %c-2073254261_i32 : i32 to vector<1x1x128xi32>
    %19 = arith.muli %17, %18 : vector<1x1x128xi32>
    %c16_i32_0 = arith.constant 16 : i32
    %20 = vector.broadcast %c16_i32_0 : i32 to vector<1x1x128xi32>
    %21 = arith.shrui %19, %20 : vector<1x1x128xi32>
    %22 = arith.xori %19, %21 : vector<1x1x128xi32>
    %c16_i32_1 = arith.constant 16 : i32
    %23 = vector.broadcast %c16_i32_1 : i32 to vector<32x1x1xi32>
    %24 = arith.muli %4, %23 : vector<32x1x1xi32>
    %25 = vector.broadcast %24 : vector<32x1x1xi32> to vector<32x16x1xi32>
    %26 = arith.addi %25, %5 : vector<32x16x1xi32>
    %c-1640531527_i32_2 = arith.constant -1640531527 : i32
    %27 = vector.broadcast %c-1640531527_i32_2 : i32 to vector<32x16x1xi32>
    %28 = arith.muli %26, %27 : vector<32x16x1xi32>
    %29 = vector.broadcast %0 : i32 to vector<32x16x1xi32>
    %30 = arith.addi %28, %29 : vector<32x16x1xi32>
    %c-2048144789_i32 = arith.constant -2048144789 : i32
    %31 = vector.broadcast %c-2048144789_i32 : i32 to vector<32x16x1xi32>
    %32 = arith.addi %30, %31 : vector<32x16x1xi32>
    %c16_i32_3 = arith.constant 16 : i32
    %33 = vector.broadcast %c16_i32_3 : i32 to vector<32x16x1xi32>
    %34 = arith.shrui %32, %33 : vector<32x16x1xi32>
    %35 = arith.xori %32, %34 : vector<32x16x1xi32>
    %c2146121005_i32_4 = arith.constant 2146121005 : i32
    %36 = vector.broadcast %c2146121005_i32_4 : i32 to vector<32x16x1xi32>
    %37 = arith.muli %35, %36 : vector<32x16x1xi32>
    %c15_i32_5 = arith.constant 15 : i32
    %38 = vector.broadcast %c15_i32_5 : i32 to vector<32x16x1xi32>
    %39 = arith.shrui %37, %38 : vector<32x16x1xi32>
    %40 = arith.xori %37, %39 : vector<32x16x1xi32>
    %c-2073254261_i32_6 = arith.constant -2073254261 : i32
    %41 = vector.broadcast %c-2073254261_i32_6 : i32 to vector<32x16x1xi32>
    %42 = arith.muli %40, %41 : vector<32x16x1xi32>
    %c16_i32_7 = arith.constant 16 : i32
    %43 = vector.broadcast %c16_i32_7 : i32 to vector<32x16x1xi32>
    %44 = arith.shrui %42, %43 : vector<32x16x1xi32>
    %45 = arith.xori %42, %44 : vector<32x16x1xi32>
    %c-1640531527_i32_8 = arith.constant -1640531527 : i32
    %46 = vector.broadcast %c-1640531527_i32_8 : i32 to vector<32x1x1xi32>
    %47 = arith.muli %4, %46 : vector<32x1x1xi32>
    %48 = vector.broadcast %0 : i32 to vector<32x1x1xi32>
    %49 = arith.addi %47, %48 : vector<32x1x1xi32>
    %c-1028477387_i32 = arith.constant -1028477387 : i32
    %50 = vector.broadcast %c-1028477387_i32 : i32 to vector<32x1x1xi32>
    %51 = arith.addi %49, %50 : vector<32x1x1xi32>
    %c16_i32_9 = arith.constant 16 : i32
    %52 = vector.broadcast %c16_i32_9 : i32 to vector<32x1x1xi32>
    %53 = arith.shrui %51, %52 : vector<32x1x1xi32>
    %54 = arith.xori %51, %53 : vector<32x1x1xi32>
    %c2146121005_i32_10 = arith.constant 2146121005 : i32
    %55 = vector.broadcast %c2146121005_i32_10 : i32 to vector<32x1x1xi32>
    %56 = arith.muli %54, %55 : vector<32x1x1xi32>
    %c15_i32_11 = arith.constant 15 : i32
    %57 = vector.broadcast %c15_i32_11 : i32 to vector<32x1x1xi32>
    %58 = arith.shrui %56, %57 : vector<32x1x1xi32>
    %59 = arith.xori %56, %58 : vector<32x1x1xi32>
    %c-2073254261_i32_12 = arith.constant -2073254261 : i32
    %60 = vector.broadcast %c-2073254261_i32_12 : i32 to vector<32x1x1xi32>
    %61 = arith.muli %59, %60 : vector<32x1x1xi32>
    %c16_i32_13 = arith.constant 16 : i32
    %62 = vector.broadcast %c16_i32_13 : i32 to vector<32x1x1xi32>
    %63 = arith.shrui %61, %62 : vector<32x1x1xi32>
    %64 = arith.xori %61, %63 : vector<32x1x1xi32>
    %65 = vector.broadcast %64 : vector<32x1x1xi32> to vector<32x1x128xi32>
    %66 = vector.broadcast %22 : vector<1x1x128xi32> to vector<32x1x128xi32>
    %67 = arith.addi %65, %66 : vector<32x1x128xi32>
    %c-1640531527_i32_14 = arith.constant -1640531527 : i32
    %68 = vector.broadcast %c-1640531527_i32_14 : i32 to vector<32x1x128xi32>
    %69 = arith.muli %67, %68 : vector<32x1x128xi32>
    %c16_i32_15 = arith.constant 16 : i32
    %70 = vector.broadcast %c16_i32_15 : i32 to vector<32x1x128xi32>
    %71 = arith.shrui %69, %70 : vector<32x1x128xi32>
    %72 = arith.xori %69, %71 : vector<32x1x128xi32>
    %c429496729_i32 = arith.constant 429496729 : i32
    %73 = vector.broadcast %c429496729_i32 : i32 to vector<32x1x128xi32>
    %74 = arith.cmpi ugt, %72, %73 : vector<32x1x128xi32>
    %75 = vector.shape_cast %74 : vector<32x1x128xi1> to vector<32x128xi1>
    %c0_16 = arith.constant 0 : index
    %c0_17 = arith.constant 0 : index
    %76 = vector.load %arg2[%c0_16, %c0_17] : memref<32x128xf32, #tpu.memory_space<vmem>>, vector<32x128xf32>
    %cst = arith.constant 0.000000e+00 : f32
    %77 = vector.broadcast %cst : f32 to vector<32x128xf32>
    %78 = arith.select %75, %76, %77 : vector<32x128xi1>, vector<32x128xf32>
    %79 = vector.broadcast %45 : vector<32x16x1xi32> to vector<32x16x128xi32>
    %80 = vector.broadcast %22 : vector<1x1x128xi32> to vector<32x16x128xi32>
    %81 = arith.addi %79, %80 : vector<32x16x128xi32>
    %c-1640531527_i32_18 = arith.constant -1640531527 : i32
    %82 = vector.broadcast %c-1640531527_i32_18 : i32 to vector<32x16x128xi32>
    %83 = arith.muli %81, %82 : vector<32x16x128xi32>
    %c16_i32_19 = arith.constant 16 : i32
    %84 = vector.broadcast %c16_i32_19 : i32 to vector<32x16x128xi32>
    %85 = arith.shrui %83, %84 : vector<32x16x128xi32>
    %86 = arith.xori %83, %85 : vector<32x16x128xi32>
    %c429496729_i32_20 = arith.constant 429496729 : i32
    %87 = vector.broadcast %c429496729_i32_20 : i32 to vector<32x16x128xi32>
    %88 = arith.cmpi ugt, %86, %87 : vector<32x16x128xi32>
    %89 = vector.shape_cast %78 : vector<32x128xf32> to vector<32x1x128xf32>
    %c0_21 = arith.constant 0 : index
    %c0_22 = arith.constant 0 : index
    %c0_23 = arith.constant 0 : index
    %90 = vector.load %arg3[%c0_21, %c0_22, %c0_23] : memref<32x16x128xf32, #tpu.memory_space<vmem>>, vector<32x16x128xf32>
    %91 = vector.broadcast %89 : vector<32x1x128xf32> to vector<32x16x128xf32>
    %92 = arith.mulf %91, %90 : vector<32x16x128xf32>
    %cst_24 = arith.constant 0.000000e+00 : f32
    %93 = vector.broadcast %cst_24 : f32 to vector<32x16x128xf32>
    %94 = arith.select %88, %92, %93 : vector<32x16x128xi1>, vector<32x16x128xf32>
    %cst_25 = arith.constant dense<0.000000e+00> : vector<32x16xf32>
    %95 = vector.multi_reduction <add>, %94, %cst_25 [2] : vector<32x16x128xf32> to vector<32x16xf32>
    %cst_26 = arith.constant 0.000000e+00 : f32
    %96 = vector.broadcast %cst_26 : f32 to vector<32x16xf32>
    %97 = arith.subf %96, %95 : vector<32x16xf32>
    %98 = math.exp %97 : vector<32x16xf32>
    %cst_27 = arith.constant 1.000000e+00 : f32
    %99 = vector.broadcast %cst_27 : f32 to vector<32x16xf32>
    %100 = arith.addf %99, %98 : vector<32x16xf32>
    %101 = tpu.reciprocal %100 {approx = true} : vector<32x16xf32> -> vector<32x16xf32>
    %c0_28 = arith.constant 0 : index
    %c0_29 = arith.constant 0 : index
    %102 = vector.load %arg4[%c0_28, %c0_29] : memref<32x16xf32, #tpu.memory_space<vmem>>, vector<32x16xf32>
    tpu.vector_store %arg4[%c0_28, %c0_29], %101 {strides = array<i32>} : memref<32x16xf32, #tpu.memory_space<vmem>>, vector<32x16xf32>,
    return
  }
  func.func @transform_0(%arg0: i32) -> i32 {
    %c0_i32 = arith.constant 0 : i32
    %c0_i32_0 = arith.constant 0 : i32
    return %c0_i32 : i32
  }
  func.func @transform_1(%arg0: i32) -> (i32, i32) {
    %c0_i32 = arith.constant 0 : i32
    %c0_i32_0 = arith.constant 0 : i32
    return %arg0, %c0_i32 : i32, i32
  }
  func.func @transform_2(%arg0: i32) -> (i32, i32, i32) {
    %c0_i32 = arith.constant 0 : i32
    %c0_i32_0 = arith.constant 0 : i32
    %c0_i32_1 = arith.constant 0 : i32
    return %arg0, %c0_i32, %c0_i32_0 : i32, i32, i32
  }
  func.func @transform_3(%arg0: i32) -> (i32, i32) {
    %c0_i32 = arith.constant 0 : i32
    %c0_i32_0 = arith.constant 0 : i32
    return %arg0, %c0_i32 : i32, i32
  }
}

</mosaic_0001>

<bundles_post_ra>
// kernel: tpu_custom_call.1
= control target key start
LH: loop header
LB: loop body
LE: loop exit
PB: predicated region body
PF: predicated region fallthrough
CT: control target
= control target key end

     0   :  { %s4901_s0 = inlined_call_operand.<no memory space> [shape: s32[1], index: 0, kind: input, shape index: {}]   ;;  %s4902_s1 = inlined_call_operand.hbm [shape: f32[64,128], index: 1, kind: input, shape index: {}]   ;;  %s4903_s2 = inlined_call_operand.hbm [shape: f32[64,16,128], index: 2, kind: input, shape index: {}]   ;;  %s4904_s3 = inlined_call_operand.vmem [shape: f32[64,16], index: 3, kind: output, shape index: {}]  }
   0x1   :  { %8 = sst [smem:[#allocation2]] %s4901_s0 }
   0x2   :  { %9 = vsyncpa [#allocation4], 0 }
   0x3   :  { %11 = vsyncpa [#allocation4 + $0x1], 0 }
   0x4   :  { %12 = vsyncpa [#allocation6], 0 }
   0x5   :  { %14 = vsyncpa [#allocation6 + $0x1], 0  ;;  %s3730_s14 = smov 0   ;;  %s3732_s15 = smov 0  }
   0x6   :  { %s3734_s16 = smov 0   ;;  %s3736_s17 = smov 0  }
   0x7 LB: > { %s3749_s0 = sadd.s32 4294967295, %s3701_s17   ;;  %s3752_s18 = sadd.s32 1, %s3701_s17   ;;  %s3701_s17 = sphi %s3736_s17, %s4915_s17   ;;  %s3697_s16 = sphi %s3734_s16, %s4914_s16   ;;  %s3693_s15 = sphi %s3732_s15, %s4913_s15   ;;  %s3689_s14 = sphi %s3730_s14, %s4912_s14  }
   0x8   : > { %s45_s19 = ssub.s32 %s3701_s17, %s3752_s18  ;;  %s48_s20 = sadd.s32 1, %s3697_s16 }
   0x9   : > { %p46_p0 = scmp.eq.s32.totalorder %s45_s19, 0  ;;  %p55_p1 = scmp.ne.s32.totalorder %s3697_s16, %s3693_s15 }
   0xa   : > { %p56_p2 = scmp.eq.s32.totalorder %s3701_s17, 0  ;;  %p61_p3 = scmp.ne.s32.totalorder %s3693_s15, %s3689_s14 }
   0xb   : > { %s3762_s21 = scalar_select %p46_p0, %s3697_s16, %s48_s20  }
   0xc   : > { %p57_p4 = por %p56_p2, %p55_p1  ;;  %p62_p5 = scmp.eq.s32.totalorder %s3749_s0, 0 }
   0xd   : > { %p3308_p6 = scmp.lt.s32.totalorder %s3701_s17, 2  ;;  %s3771_s23 = sand.u32 1, %s3697_s16  }
   0xe   : > { %p3766_p7 = por %p62_p5, %p61_p3  ;;  %s3279_s24 = sshll.u32 %s3771_s23, 5 }
   0xf   : > { %s3294_s25 = sshll.u32 %s3701_s17, 9  ;;  %s144_s29 = scalar_lea.vmem [#allocation3], %s3279_s24 }
  0x10   : > { %s4906_s22 = scalar_select %p3766_p7, 1, 0 }
  0x11   : > { %s3778_s28 = scalar_lea.hbm %s4902_s1, %s3294_s25  ;;  %s151_s30 = sshll.u32 %s144_s29, 4  ;;  %s3780_s30 = int_to_ptr.vmem [resolvable:$true] %s151_s30 }
  0x12   : > { %p3782_p8 = pnand %p3308_p6, %p57_p4  ;;  %s141_s5 = scalar_lea.sflag [#allocation4], %s3771_s23 }
  0x13   : > { %s3607_s6 = scalar_lea.hbm %s3778_s28, 512  ;;  %s3612_s9 = scalar_lea.hbm %s4902_s1, 1024 }
  0x14   : > { %p3608_p10 = scmp.ne.s32.totalorder %s3778_s28, %s3607_s6  ;;  %p3609_p11 = pneg %p3782_p8 }
  0x15   : > { %p3613_p0 = scmp.lt.s32.totalorder %s3778_s28, %s4902_s1  ;;  %p3614_p1 = scmp.lt.s32.totalorder %s3612_s9, %s3607_s6 }
  0x16   : > { %p3610_p12 = pnand %p3609_p11, %p3608_p10 }
  0x17   : > { %p3615_p2 = por %p3614_p1, %p3613_p0 }
  0x18   : > { %p3611_p13 = pneg %p3610_p12 }
  0x1a   : > { %p3616_p3 = pnand %p3615_p2, %p3611_p13 }
  0x1c   : > { %3619 = shalt.err (!%p3616_p3)
}
  0x1d   : > { %s3620_s12 = scalar_lea.vmem %s3780_s30, 512  ;;  %s3703_s13 = smov [#allocation3]  }
  0x1e   : > { %p3621_p4 = scmp.ne.s32.totalorder %s3780_s30, %s3620_s12  ;;  %s3625_s14 = sshll.u32 %s3703_s13, 4  ;;  %s3626_s14 = int_to_ptr.vmem [resolvable:$false] %s3625_s14 }
  0x1f   : > { %s3627_s19 = scalar_lea.vmem %s3626_s14, 1024  ;;  %p3628_p10 = scmp.lt.s32.totalorder %s3780_s30, %s3626_s14 }
  0x20   : > { %p3623_p5 = pnand %p3621_p4, %p3609_p11  ;;  %p3629_p12 = scmp.lt.s32.totalorder %s3627_s19, %s3620_s12 }
  0x22   : > { %p3624_p6 = pneg %p3623_p5  ;;  %p3630_p9 = por %p3629_p12, %p3628_p10 }
  0x24   : > { %p3631_p0 = pnand %p3630_p9, %p3624_p6 }
  0x26   : > { %3634 = shalt.err (!%p3631_p0)
}
  0x27   : > { %s3704_s20 = smov 128   ;;  %s3705_s24 = smov 8  }
  0x28   : > { %3304 = dma.hbm_to_vmem [thread:$0]  (!%p3782_p8), %s3778_s28, 512, %s3780_s30, %s141_s5, %s3704_s20, %s3704_s20, %s3705_s24  }
  0x29   : > { %p181_p9 = scmp.lt.s32.totalorder %s3701_s17, 3  ;;  %s3282_s25 = sshll.u32 %s3771_s23, 9 }
  0x2a   : > { %s3296_s26 = sshll.u32 %s3701_s17, 13  ;;  %p4908_p13 = scmp.ge.s32.totalorder %s3701_s17, 1 }
  0x2b   : > { %s3829_s7 = scalar_lea.hbm %s4903_s2, %s3296_s26  ;;  %s165_s8 = scalar_lea.vmem [#allocation5], %s3282_s25 }
  0x2c   : > { %p3822_p1 = pnand %p4908_p13, %p181_p9  ;;  %s173_s9 = sshll.u32 %s165_s8, 4  ;;  %s3831_s9 = int_to_ptr.vmem [resolvable:$true] %s173_s9 }
  0x2d   : > { %s162_s28 = scalar_lea.sflag [#allocation6], %s3771_s23  ;;  %s3635_s30 = scalar_lea.hbm %s3829_s7, 8192 }
  0x2e   : > { %p3636_p2 = scmp.ne.s32.totalorder %s3829_s7, %s3635_s30  ;;  %s3640_s10 = scalar_lea.hbm %s4903_s2, 16384 }
  0x2f   : > { %p3641_p5 = scmp.lt.s32.totalorder %s3829_s7, %s4903_s2  ;;  %p3642_p6 = scmp.lt.s32.totalorder %s3640_s10, %s3635_s30 }
  0x30   : > { %p3638_p3 = pnand %p3636_p2, %p3609_p11 }
  0x31   : > { %p3643_p10 = por %p3642_p6, %p3641_p5 }
  0x32   : > { %p3639_p4 = pneg %p3638_p3 }
  0x34   : > { %p3644_p12 = pnand %p3643_p10, %p3639_p4 }
  0x36   : > { %3647 = shalt.err (!%p3644_p12)
}
  0x37   : > { %s3648_s23 = scalar_lea.vmem %s3831_s9, 8192  ;;  %s3706_s13 = smov [#allocation5]  }
  0x38   : > { %p3649_p0 = scmp.ne.s32.totalorder %s3831_s9, %s3648_s23  ;;  %s3653_s14 = sshll.u32 %s3706_s13, 4  ;;  %s3654_s14 = int_to_ptr.vmem [resolvable:$false] %s3653_s14 }
  0x39   : > { %s3655_s19 = scalar_lea.vmem %s3654_s14, 16384  ;;  %p3656_p2 = scmp.lt.s32.totalorder %s3831_s9, %s3654_s14 }
  0x3a   : > { %p3651_p9 = pnand %p3649_p0, %p3609_p11  ;;  %p3657_p3 = scmp.lt.s32.totalorder %s3655_s19, %s3648_s23 }
  0x3c   : > { %p3652_p13 = pneg %p3651_p9  ;;  %p3658_p7 = por %p3657_p3, %p3656_p2 }
  0x3e   : > { %p3659_p5 = pnand %p3658_p7, %p3652_p13 }
  0x40   : > { %3662 = shalt.err (!%p3659_p5)
}
  0x41   : > { %3307 = dma.hbm_to_vmem [thread:$0]  (!%p3782_p8), %s3829_s7, 8192, %s3831_s9, %s162_s28, %s3704_s20, %s3704_s20, %s3705_s24  }
  0x42   : > { %185 = sbr.rel (%p3822_p1) target bundleno = 745 (0x2e9), region = 32  ;;  %s187_s25 = sand.u32 (!%p3822_p1), 1, %s3693_s15  }
  0x43   : > { %s3287_s26 = sshll.u32 (!%p3822_p1), %s187_s25, 5  ;;  %s188_s29 = scalar_lea.sflag (!%p3822_p1), [#allocation4], %s187_s25 }
  0x44   : > { %s3862_s6 = scalar_lea.vmem (!%p3822_p1), [#allocation3], %s3287_s26  ;;  %p4910_p7 = scmp.ne.s32.totalorder (!%p3822_p1), %s4906_s22, 0 }
  0x47   : > { %3680 = dma.done.wait (%p4910_p7), %s188_s29, 512  }
  0x48   : > { %3682 = vsyncadd (%p4910_p7), %s188_s29, 4294966784  ;;  %s3288_s4 = sshll.u32 %s187_s25, 9  ;;  %s197_s8 = scalar_lea.sflag [#allocation6], %s187_s25 }
  0x49   : > { %s3868_s30 = scalar_lea.vmem [#allocation5], %s3288_s4 }
  0x4a   : > { %3684 = dma.done.wait (%p4910_p7), %s197_s8, 8192  }
  0x4b   : > { %3686 = vsyncadd (%p4910_p7), %s197_s8, 4294959104  ;;  %v270_v0 = vlaneseq  ;;  %s3291_s20 = sshll.u32 %s3749_s0, 5  ;;  %s3875_s24 = sld [smem:[#allocation2]]  ;;  %v3913_v21 = vld [vmem:[%s3862_s6] sm:$0xff] }
  0x4c   : > { %v3877_v1 = vstv %s3291_s20  ;;  %v1607_v27 = vrot.slane %v3913_v21, 1  ;;  %s3289_s27 = sshll.u32 %s3749_s0, 2 }
  0x4d   : > { %v239_v2 = vadd.s32 1, %v3877_v1  ;;  %v3880_v3 = vshrl.u32 %v270_v0, 7  ;;  %v286_v4 = vmul.u32 16, %v3877_v1  ;;  %v3883_v5 = vand.u32 127, %v270_v0  ;;  %p4737_p8 = scmp.lt.s32.totalorder %s3289_s27, 7 }
  0x4e   : > { %v1087_v6 = vmul.u32 2654435769, %v3877_v1  ;;  %v3887_v7 = vadd.s32 2, %v3877_v1  ;;  %v3891_v11 = vadd.s32 8, %v3877_v1  ;;  %v3901_v15 = vadd.s32 9, %v3877_v1 }
  0x4f   : > { %v287_v8 = vmul.u32 16, %v239_v2  ;;  %v1088_v9 = vmul.u32 2654435769, %v239_v2  ;;  %v318_v10 = vadd.s32 %v286_v4, %v3880_v3  ;;  %v3894_v12 = vsub.s32 0, %v3880_v3  ;;  %s4917_s27 = smov (!%p4737_p8, %s3289_s27), 7 }
  0x50   : > { %v3897_v13 = vadd.s32 8, %v3880_v3  ;;  %v288_v14 = vmul.u32 16, %v3887_v7  ;;  %v1089_v18 = vmul.u32 2654435769, %v3887_v7  ;;  %v3906_v19 = vadd.s32 3, %v3877_v1  ;;  %s3290_s0 = sshll.u32 %s4917_s27, 3 }
  0x51   : > { %v320_v16 = vadd.s32 %v287_v8, %v3880_v3  ;;  %v382_v17 = vmul.u32 2654435769, %v318_v10  ;;  %s275_s22 = smul.u32 2654435769, %s3875_s24  ;;  %v3910_v20 = vstv %s3875_s24  ;;  %s4775_s17 = scalar_lea.vmem %s4904_s3, %s3290_s0 }
  0x52   : > { %v321_v22 = vadd.s32 %v287_v8, %v3897_v13  ;;  %v319_v23 = vadd.s32 %v286_v4, %v3897_v13  ;;  %v323_v24 = vadd.s32 %v288_v14, %v3897_v13  ;;  %v1120_v26 = vadd.s32 %v1088_v9, %v3910_v20 }
  0x53   : > { %v384_v25 = vmul.u32 2654435769, %v320_v16  ;;  %v447_v28 = vadd.s32 %v3910_v20, %v382_v17  ;;  %v276_v29 = vstv %s275_s22  ;;  %v1119_v30 = vadd.s32 %v1087_v6, %v3910_v20 }
  0x54   : > { %v385_v31 = vmul.u32 2654435769, %v321_v22  ;;  %v383_v32 = vmul.u32 2654435769, %v319_v23  ;;  %v277_v33 = vadd.s32 %v276_v29, %v3883_v5  ;;  %v1152_v35 = vadd.s32 3266489909, %v1120_v26 }
  0x55   : > { %v449_v34 = vadd.s32 %v3910_v20, %v384_v25  ;;  %v511_v36 = vadd.s32 2246822507, %v447_v28  ;;  %v1151_v37 = vadd.s32 3266489909, %v1119_v30  ;;  %v387_v40 = vmul.u32 2654435769, %v323_v24 }
  0x56   : > { %v450_v38 = vadd.s32 %v3910_v20, %v385_v31  ;;  %v448_v39 = vadd.s32 %v3910_v20, %v383_v32  ;;  %v278_v41 = vshrl.u32 %v277_v33, 16  ;;  %v1184_v43 = vshrl.u32 %v1152_v35, 16 }
  0x57   : > { %v513_v42 = vadd.s32 2246822507, %v449_v34  ;;  %v575_v44 = vshrl.u32 %v511_v36, 16  ;;  %v1183_v45 = vshrl.u32 %v1151_v37, 16  ;;  %v452_v48 = vadd.s32 %v3910_v20, %v387_v40 }
  0x58   : > { %v514_v46 = vadd.s32 2246822507, %v450_v38  ;;  %v512_v47 = vadd.s32 2246822507, %v448_v39  ;;  %v279_v49 = vxor.u32 %v278_v41, %v277_v33  ;;  %v1216_v51 = vxor.u32 %v1184_v43, %v1152_v35 }
  0x59   : > { %v577_v50 = vshrl.u32 %v513_v42, 16  ;;  %v639_v52 = vxor.u32 %v575_v44, %v511_v36  ;;  %v1215_v53 = vxor.u32 %v1183_v45, %v1151_v37  ;;  %v516_v56 = vadd.s32 2246822507, %v452_v48 }
  0x5a   : > { %v578_v54 = vshrl.u32 %v514_v46, 16  ;;  %v576_v55 = vshrl.u32 %v512_v47, 16  ;;  %v280_v57 = vmul.u32 2146121005, %v279_v49  ;;  %v1248_v59 = vmul.u32 2146121005, %v1216_v51 }
  0x5b   : > { %v641_v58 = vxor.u32 %v577_v50, %v513_v42  ;;  %v1121_v60 = vadd.s32 %v1089_v18, %v3910_v20  ;;  %v703_v61 = vmul.u32 2146121005, %v639_v52  ;;  %v1247_v62 = vmul.u32 2146121005, %v1215_v53 }
  0x5c   : > { %v642_v63 = vxor.u32 %v578_v54, %v514_v46  ;;  %v640_v0 = vxor.u32 %v576_v55, %v512_v47  ;;  %v281_v2 = vshrl.u32 %v280_v57, 15  ;;  %v1280_v6 = vshrl.u32 %v1248_v59, 15 }
  0x5d   : > { %v705_v4 = vmul.u32 2146121005, %v641_v58  ;;  %v580_v8 = vshrl.u32 %v516_v56, 16  ;;  %v767_v9 = vshrl.u32 %v703_v61, 15  ;;  %v1279_v10 = vshrl.u32 %v1247_v62, 15 }
  0x5e   : > { %v706_v16 = vmul.u32 2146121005, %v642_v63  ;;  %v704_v17 = vmul.u32 2146121005, %v640_v0  ;;  %v282_v22 = vxor.u32 %v281_v2, %v280_v57  ;;  %v1312_v24 = vxor.u32 %v1280_v6, %v1248_v59 }
  0x5f   : > { %v769_v23 = vshrl.u32 %v705_v4, 15  ;;  %v644_v25 = vxor.u32 %v580_v8, %v516_v56  ;;  %v831_v26 = vxor.u32 %v767_v9, %v703_v61  ;;  %v1311_v28 = vxor.u32 %v1279_v10, %v1247_v62 }
  0x60   : > { %v770_v29 = vshrl.u32 %v706_v16, 15  ;;  %v768_v18 = vshrl.u32 %v704_v17, 15  ;;  %v283_v30 = vmul.u32 2221713035, %v282_v22  ;;  %v1344_v32 = vmul.u32 2221713035, %v1312_v24 }
  0x61   : > { %v833_v31 = vxor.u32 %v769_v23, %v705_v4  ;;  %v1153_v33 = vadd.s32 3266489909, %v1121_v60  ;;  %v895_v34 = vmul.u32 2221713035, %v831_v26  ;;  %v1343_v35 = vmul.u32 2221713035, %v1311_v28 }
  0x62   : > { %v834_v36 = vxor.u32 %v770_v29, %v706_v16  ;;  %v832_v37 = vxor.u32 %v768_v18, %v704_v17  ;;  %v284_v38 = vshrl.u32 %v283_v30, 16  ;;  %v1376_v40 = vshrl.u32 %v1344_v32, 16 }
  0x63   : > { %v897_v39 = vmul.u32 2221713035, %v833_v31  ;;  %v708_v41 = vmul.u32 2146121005, %v644_v25  ;;  %v959_v42 = vshrl.u32 %v895_v34, 16  ;;  %v1375_v43 = vshrl.u32 %v1343_v35, 16 }
  0x64   : > { %v898_v44 = vmul.u32 2221713035, %v834_v36  ;;  %v896_v45 = vmul.u32 2221713035, %v832_v37  ;;  %v3930_v46 = vxor.u32 %v284_v38, %v283_v30  ;;  %v1408_v48 = vxor.u32 %v1376_v40, %v1344_v32  ;;  %v2021_v36 = vld [vmem:[%s3868_s30 + $0x10] sm:$0xff] }
  0x65   : > { %v961_v47 = vshrl.u32 %v897_v39, 16  ;;  %v772_v49 = vshrl.u32 %v708_v41, 15  ;;  %v1023_v50 = vxor.u32 %v959_v42, %v895_v34  ;;  %v1407_v51 = vxor.u32 %v1375_v43, %v1343_v35 }
  0x66   : > { %v962_v52 = vshrl.u32 %v898_v44, 16  ;;  %v960_v53 = vshrl.u32 %v896_v45, 16  ;;  %v1440_v55 = vadd.s32 %v1408_v48, %v3930_v46  ;;  %v1185_v57 = vshrl.u32 %v1153_v33, 16 }
  0x67   : > { %v1025_v54 = vxor.u32 %v961_v47, %v897_v39  ;;  %v836_v56 = vxor.u32 %v772_v49, %v708_v41  ;;  %v1439_v58 = vadd.s32 %v1407_v51, %v3930_v46  ;;  %v1699_v59 = vadd.s32 %v1023_v50, %v3930_v46  ;;  %v2022_v41 = vld [vmem:[%s3868_s30 + $0x18] sm:$0xff]  ;;  %v2020_v47 = vld [vmem:[%s3868_s30 + $0x8] sm:$0xff] }
  0x68   : > { %v1026_v60 = vxor.u32 %v962_v52, %v898_v44  ;;  %v1024_v61 = vxor.u32 %v960_v53, %v896_v45  ;;  %v1472_v62 = vmul.u32 2654435769, %v1440_v55  ;;  %v1217_v2 = vxor.u32 %v1185_v57, %v1153_v33  ;;  %v2019_v44 = vld [vmem:[%s3868_s30] sm:$0xff] }
  0x69   : > { %v1701_v63 = vadd.s32 %v1025_v54, %v3930_v46  ;;  %v900_v0 = vmul.u32 2221713035, %v836_v56  ;;  %v1471_v4 = vmul.u32 2654435769, %v1439_v58  ;;  %v322_v52 = vadd.s32 %v288_v14, %v3880_v3 }
  0x6a   : > { %v1763_v6 = vmul.u32 2654435769, %v1699_v59  ;;  %v1702_v8 = vadd.s32 %v1026_v60, %v3930_v46  ;;  %v1700_v9 = vadd.s32 %v1024_v61, %v3930_v46  ;;  %v1504_v10 = vshrl.u32 %v1472_v62, 16 }
  0x6b   : > { %v1765_v16 = vmul.u32 2654435769, %v1701_v63  ;;  %v964_v17 = vshrl.u32 %v900_v0, 16  ;;  %v1249_v22 = vmul.u32 2146121005, %v1217_v2  ;;  %v1503_v23 = vshrl.u32 %v1471_v4, 16 }
  0x6c   : > { %v1827_v24 = vshrl.u32 %v1763_v6, 16  ;;  %v1766_v25 = vmul.u32 2654435769, %v1702_v8  ;;  %v1764_v26 = vmul.u32 2654435769, %v1700_v9  ;;  %v1536_v28 = vxor.u32 %v1504_v10, %v1472_v62 }
  0x6d   : > { %v1829_v29 = vshrl.u32 %v1765_v16, 16  ;;  %v1028_v18 = vxor.u32 %v964_v17, %v900_v0  ;;  %v1281_v30 = vshrl.u32 %v1249_v22, 15  ;;  %v1535_v31 = vxor.u32 %v1503_v23, %v1471_v4 }
  0x6e   : > { %v1891_v32 = vxor.u32 %v1827_v24, %v1763_v6  ;;  %v1830_v33 = vshrl.u32 %v1766_v25, 16  ;;  %v1828_v34 = vshrl.u32 %v1764_v26, 16  ;;  %vm1568_vm0 = vcmp.gt.u32.totalorder %v1536_v28, 429496729 }
  0x6f   : > { %v1893_v35 = vxor.u32 %v1829_v29, %v1765_v16  ;;  %v1313_v37 = vxor.u32 %v1281_v30, %v1249_v22  ;;  %v294_v38 = vmul.u32 16, %v3891_v11  ;;  %v1668_v39 = vsel %vm1568_vm0, %v1607_v27, 0.0 }
  0x70   : > { %vm1567_vm1 = vcmp.gt.u32.totalorder %v1535_v31, 429496729  ;;  %vm1955_vm2 = vcmp.gt.u32.totalorder %v1891_v32, 429496729  ;;  %v1894_v40 = vxor.u32 %v1830_v33, %v1766_v25  ;;  %v2090_v42 = vrot.slane %v1668_v39, %v3894_v12 }
  0x71   : > { %vm1957_vm3 = vcmp.gt.u32.totalorder %v1893_v35, 429496729  ;;  %v1667_v43 = vsel %vm1567_vm1, %v3913_v21, 0.0  ;;  %v1892_v45 = vxor.u32 %v1828_v34, %v1764_v26  ;;  %v1345_v49 = vmul.u32 2221713035, %v1313_v37 }
  0x72   : > { %v2086_v48 = vrot.slane %v1667_v43, %v3894_v12  ;;  %vm1958_vm4 = vcmp.gt.u32.totalorder %v1894_v40, 429496729  ;;  %v1704_v50 = vadd.s32 %v1028_v18, %v3930_v46  ;;  %v2213_v51 = vmul.f32 %v2090_v42, %v2021_v36 }
  0x73   : > { %v2214_v27 = vmul.f32 %v2090_v42, %v2022_v41  ;;  %vm1956_vm5 = vcmp.gt.u32.totalorder %v1892_v45, 429496729  ;;  %v1377_v55 = vshrl.u32 %v1345_v49, 16  ;;  %v386_v59 = vmul.u32 2654435769, %v322_v52  ;;  %v2024_v42 = vld [vmem:[%s3868_s30 + $0x28] sm:$0xff] }
  0x74   : > { %v2211_v53 = vmul.f32 %v2086_v48, %v2019_v44  ;;  %v2212_v54 = vmul.f32 %v2086_v48, %v2020_v47  ;;  %v1768_v56 = vmul.u32 2654435769, %v1704_v50  ;;  %v2277_v57 = vsel %vm1957_vm3, %v2213_v51, 0.0 }
  0x75   : > { %v2278_v58 = vsel %vm1958_vm4, %v2214_v27, 0.0  ;;  %v335_v60 = vadd.s32 %v294_v38, %v3897_v13  ;;  %2343 = vadd.xlane.f32.xlu1 %v2277_v57  ;;  %v1409_v63 = vxor.u32 %v1377_v55, %v1345_v49  ;;  %v451_v7 = vadd.s32 %v3910_v20, %v386_v59 }
  0x76   : > { %v2275_v61 = vsel %vm1955_vm2, %v2211_v53, 0.0  ;;  %v2276_v62 = vsel %vm1956_vm5, %v2212_v54, 0.0  ;;  %v1832_v0 = vshrl.u32 %v1768_v56, 16  ;;  %v1095_v2 = vmul.u32 2654435769, %v3891_v11 }
  0x77   : > { %2339 = vadd.xlane.f32.xlu0 %v2275_v61  ;;  %v399_v14 = vmul.u32 2654435769, %v335_v60  ;;  %v334_v4 = vadd.s32 %v294_v38, %v3880_v3  ;;  %v1441_v6 = vadd.s32 %v1409_v63, %v3930_v46  ;;  %v295_v9 = vmul.u32 16, %v3901_v15  ;;  %v3975_v61 = vld [vmem:[%s3862_s6 + $0x8] sm:$0xff] }
  0x78   : > { %v1896_v8 = vxor.u32 %v1832_v0, %v1768_v56  ;;  %v1096_v10 = vmul.u32 2654435769, %v3901_v15  ;;  %v515_v16 = vadd.s32 2246822507, %v451_v7  ;;  %v1127_v22 = vadd.s32 %v1095_v2, %v3910_v20 }
  0x79   : > { %v464_v17 = vadd.s32 %v3910_v20, %v399_v14  ;;  %v398_v23 = vmul.u32 2654435769, %v334_v4  ;;  %2345 = vadd.xlane.f32.xlu1 %v2278_v58  ;;  %v1473_v24 = vmul.u32 2654435769, %v1441_v6  ;;  %v337_v25 = vadd.s32 %v295_v9, %v3897_v13 }
  0x7a   : > { %v1128_v11 = vadd.s32 %v1096_v10, %v3910_v20  ;;  %v3966_v26 = vadd.s32 10, %v3877_v1  ;;  %vm1960_vm6 = vcmp.gt.u32.totalorder %v1896_v8, 429496729  ;;  %v579_v28 = vshrl.u32 %v515_v16, 16 }
  0x7b   : > { %2341 = vadd.xlane.f32.xlu0 %v2276_v62  ;;  %v528_v15 = vadd.s32 2246822507, %v464_v17  ;;  %v1159_v29 = vadd.s32 3266489909, %v1127_v22  ;;  %v463_v18 = vadd.s32 %v3910_v20, %v398_v23  ;;  %v1505_v30 = vshrl.u32 %v1473_v24, 16 }
  0x7c   : > { %v1608_v31 = vrot.slane %v3913_v21, 2  ;;  %v401_v32 = vmul.u32 2654435769, %v337_v25  ;;  %v1160_v33 = vadd.s32 3266489909, %v1128_v11  ;;  %v643_v34 = vxor.u32 %v579_v28, %v515_v16 }
  0x7d   : > { %v592_v35 = vshrl.u32 %v528_v15, 16  ;;  %v1191_v36 = vshrl.u32 %v1159_v29, 16  ;;  %v527_v37 = vadd.s32 2246822507, %v463_v18  ;;  %v1537_v38 = vxor.u32 %v1505_v30, %v1473_v24 }
  0x7e   : > { %v466_v39 = vadd.s32 %v3910_v20, %v401_v32  ;;  %v1192_v40 = vshrl.u32 %v1160_v33, 16  ;;  %v336_v41 = vadd.s32 %v295_v9, %v3880_v3  ;;  %v707_v43 = vmul.u32 2146121005, %v643_v34 }
  0x7f   : > { %v656_v44 = vxor.u32 %v592_v35, %v528_v15  ;;  %v1223_v45 = vxor.u32 %v1191_v36, %v1159_v29  ;;  %v591_v47 = vshrl.u32 %v527_v37, 16  ;;  %vm1569_vm7 = vcmp.gt.u32.totalorder %v1537_v38, 429496729 }
  0x80   : > { %v530_v48 = vadd.s32 2246822507, %v466_v39  ;;  %v1224_v49 = vxor.u32 %v1192_v40, %v1160_v33  ;;  %v400_v50 = vmul.u32 2654435769, %v336_v41  ;;  %v1669_v51 = vsel %vm1569_vm7, %v1608_v31, 0.0  ;;  %v2023_v31 = vld [vmem:[%s3868_s30 + $0x20] sm:$0xff] }
  0x81   : > { %v771_v27 = vshrl.u32 %v707_v43, 15  ;;  %v720_v52 = vmul.u32 2146121005, %v656_v44  ;;  %v1255_v53 = vmul.u32 2146121005, %v1223_v45  ;;  %v2094_v54 = vrot.slane %v1669_v51, %v3894_v12 }
  0x82   : > { %v655_v55 = vxor.u32 %v591_v47, %v527_v37  ;;  %v594_v56 = vshrl.u32 %v530_v48, 16  ;;  %v1256_v57 = vmul.u32 2146121005, %v1224_v49  ;;  %v465_v62 = vadd.s32 %v3910_v20, %v400_v50 }
  0x83   : > { %v835_v58 = vxor.u32 %v771_v27, %v707_v43  ;;  %v784_v59 = vshrl.u32 %v720_v52, 15  ;;  %v1287_v60 = vshrl.u32 %v1255_v53, 15  ;;  %v2216_v63 = vmul.f32 %v2094_v54, %v2024_v42 }
  0x84   : > { %v719_v0 = vmul.u32 2146121005, %v655_v55  ;;  %v658_v7 = vxor.u32 %v594_v56, %v530_v48  ;;  %v1614_v14 = vrot.slane %v3975_v61, 1  ;;  %v1288_v9 = vshrl.u32 %v1256_v57, 15 }
  0x85   : > { %v899_v2 = vmul.u32 2221713035, %v835_v58  ;;  %v848_v4 = vxor.u32 %v784_v59, %v720_v52  ;;  %v1319_v6 = vxor.u32 %v1287_v60, %v1255_v53  ;;  %v2280_v10 = vsel %vm1960_vm6, %v2216_v63, 0.0 }
  0x86   : > { %v783_v16 = vshrl.u32 %v719_v0, 15  ;;  %v722_v17 = vmul.u32 2146121005, %v658_v7  ;;  %v529_v22 = vadd.s32 2246822507, %v465_v62  ;;  %2349 = vadd.xlane.f32.xlu1 %v2280_v10  ;;  %v1320_v11 = vxor.u32 %v1288_v9, %v1256_v57 }
  0x87   : > { %v963_v23 = vshrl.u32 %v899_v2, 16  ;;  %v912_v24 = vmul.u32 2221713035, %v848_v4  ;;  %v1351_v25 = vmul.u32 2221713035, %v1319_v6  ;;  %v2215_v42 = vmul.f32 %v2094_v54, %v2023_v31 }
  0x88   : > { %v847_v28 = vxor.u32 %v783_v16, %v719_v0  ;;  %v786_v15 = vshrl.u32 %v722_v17, 15  ;;  %v593_v29 = vshrl.u32 %v529_v22, 16  ;;  %v289_v18 = vmul.u32 16, %v3906_v19 }
  0x89   : > { %v1027_v30 = vxor.u32 %v963_v23, %v899_v2  ;;  %v976_v32 = vshrl.u32 %v912_v24, 16  ;;  %v1383_v33 = vshrl.u32 %v1351_v25, 16  ;;  %v1352_v34 = vmul.u32 2221713035, %v1320_v11 }
  0x8a   : > { %v911_v8 = vmul.u32 2221713035, %v847_v28  ;;  %v850_v35 = vxor.u32 %v786_v15, %v722_v17  ;;  %v657_v36 = vxor.u32 %v593_v29, %v529_v22  ;;  %v325_v37 = vadd.s32 %v289_v18, %v3897_v13 }
  0x8b   : > { %v1703_v38 = vadd.s32 %v1027_v30, %v3930_v46  ;;  %v1040_v39 = vxor.u32 %v976_v32, %v912_v24  ;;  %v1415_v40 = vxor.u32 %v1383_v33, %v1351_v25  ;;  %v1384_v41 = vshrl.u32 %v1352_v34, 16  ;;  %v2036_v30 = vld [vmem:[%s3868_s30 + $0x88] sm:$0xff]  ;;  %v2035_v32 = vld [vmem:[%s3868_s30 + $0x80] sm:$0xff] }
  0x8c   : > { %v975_v43 = vshrl.u32 %v911_v8, 16  ;;  %v914_v44 = vmul.u32 2221713035, %v850_v35  ;;  %v721_v45 = vmul.u32 2146121005, %v657_v36 }
  0x8d   : > { %v1767_v47 = vmul.u32 2654435769, %v1703_v38  ;;  %v1447_v48 = vadd.s32 %v1415_v40, %v3930_v46  ;;  %v1716_v49 = vadd.s32 %v1040_v39, %v3930_v46  ;;  %v1416_v50 = vxor.u32 %v1384_v41, %v1352_v34  ;;  %v2038_v39 = vld [vmem:[%s3868_s30 + $0x98] sm:$0xff] }
  0x8e   : > { %v1039_v51 = vxor.u32 %v975_v43, %v911_v8  ;;  %v978_v27 = vshrl.u32 %v914_v44, 16  ;;  %v785_v52 = vshrl.u32 %v721_v45, 15  ;;  %v389_v53 = vmul.u32 2654435769, %v325_v37 }
  0x8f   : > { %v1831_v55 = vshrl.u32 %v1767_v47, 16  ;;  %v1479_v56 = vmul.u32 2654435769, %v1447_v48  ;;  %v1780_v57 = vmul.u32 2654435769, %v1716_v49  ;;  %v1448_v58 = vadd.s32 %v1416_v50, %v3930_v46 }
  0x90   : > { %v1715_v54 = vadd.s32 %v1039_v51, %v3930_v46  ;;  %v1042_v59 = vxor.u32 %v978_v27, %v914_v44  ;;  %v849_v60 = vxor.u32 %v785_v52, %v721_v45  ;;  %v454_v62 = vadd.s32 %v3910_v20, %v389_v53 }
  0x91   : > { %v1895_v63 = vxor.u32 %v1831_v55, %v1767_v47  ;;  %v1511_v0 = vshrl.u32 %v1479_v56, 16  ;;  %v1844_v7 = vshrl.u32 %v1780_v57, 16  ;;  %v1480_v2 = vmul.u32 2654435769, %v1448_v58  ;;  %v2037_v47 = vld [vmem:[%s3868_s30 + $0x90] sm:$0xff] }
  0x92   : > { %v1779_v4 = vmul.u32 2654435769, %v1715_v54  ;;  %v1718_v6 = vadd.s32 %v1042_v59, %v3930_v46  ;;  %v913_v9 = vmul.u32 2221713035, %v849_v60  ;;  %v518_v10 = vadd.s32 2246822507, %v454_v62 }
  0x93   : > { %vm1959_vm8 = vcmp.gt.u32.totalorder %v1895_v63, 429496729  ;;  %v1543_v16 = vxor.u32 %v1511_v0, %v1479_v56  ;;  %v1908_v17 = vxor.u32 %v1844_v7, %v1780_v57  ;;  %v1512_v22 = vshrl.u32 %v1480_v2, 16 }
  0x94   : > { %v2279_v23 = vsel %vm1959_vm8, %v2215_v42, 0.0  ;;  %v1843_v24 = vshrl.u32 %v1779_v4, 16  ;;  %v1782_v25 = vmul.u32 2654435769, %v1718_v6  ;;  %v977_v11 = vshrl.u32 %v913_v9, 16 }
  0x95   : > { %2347 = vadd.xlane.f32.xlu0 %v2279_v23  ;;  %vm1575_vm9 = vcmp.gt.u32.totalorder %v1543_v16, 429496729  ;;  %vm1972_vm10 = vcmp.gt.u32.totalorder %v1908_v17, 429496729  ;;  %v1544_v28 = vxor.u32 %v1512_v22, %v1480_v2  ;;  %v582_v15 = vshrl.u32 %v518_v10, 16 }
  0x96   : > { %v1675_v29 = vsel %vm1575_vm9, %v3975_v61, 0.0  ;;  %v1907_v31 = vxor.u32 %v1843_v24, %v1779_v4  ;;  %v1846_v33 = vshrl.u32 %v1782_v25, 16  ;;  %v1041_v34 = vxor.u32 %v977_v11, %v913_v9 }
  0x97   : > { %v2118_v8 = vrot.slane %v1675_v29, %v3894_v12  ;;  %vm1576_vm11 = vcmp.gt.u32.totalorder %v1544_v28, 429496729  ;;  %v646_v35 = vxor.u32 %v582_v15, %v518_v10  ;;  %v1090_v36 = vmul.u32 2654435769, %v3906_v19 }
  0x98   : > { %vm1971_vm12 = vcmp.gt.u32.totalorder %v1907_v31, 429496729  ;;  %v1676_v37 = vsel %vm1576_vm11, %v1614_v14, 0.0  ;;  %v1910_v38 = vxor.u32 %v1846_v33, %v1782_v25  ;;  %v1717_v40 = vadd.s32 %v1041_v34, %v3930_v46 }
  0x99   : > { %v2228_v41 = vmul.f32 %v2118_v8, %v2036_v30  ;;  %v2227_v42 = vmul.f32 %v2118_v8, %v2035_v32  ;;  %v2122_v43 = vrot.slane %v1676_v37, %v3894_v12  ;;  %v710_v44 = vmul.u32 2146121005, %v646_v35 }
  0x9a   : > { %vm1974_vm13 = vcmp.gt.u32.totalorder %v1910_v38, 429496729  ;;  %v1781_v45 = vmul.u32 2654435769, %v1717_v40  ;;  %v1122_v48 = vadd.s32 %v1090_v36, %v3910_v20  ;;  %v324_v49 = vadd.s32 %v289_v18, %v3880_v3 }
  0x9b   : > { %v2292_v14 = vsel %vm1972_vm10, %v2228_v41, 0.0  ;;  %v2291_v50 = vsel %vm1971_vm12, %v2227_v42, 0.0  ;;  %v2230_v51 = vmul.f32 %v2122_v43, %v2038_v39  ;;  %v1609_v27 = vrot.slane %v3913_v21, 3 }
  0x9c   : > { %2373 = vadd.xlane.f32.xlu1 %v2292_v14  ;;  %2371 = vadd.xlane.f32.xlu0 %v2291_v50  ;;  %v1845_v52 = vshrl.u32 %v1781_v45, 16  ;;  %v774_v53 = vshrl.u32 %v710_v44, 15  ;;  %v1154_v55 = vadd.s32 3266489909, %v1122_v48  ;;  %v388_v56 = vmul.u32 2654435769, %v324_v49 }
  0x9d   : > { %v2294_v57 = vsel %vm1974_vm13, %v2230_v51, 0.0  ;;  %v2229_v58 = vmul.f32 %v2122_v43, %v2037_v47  ;;  %v296_v54 = vmul.u32 16, %v3966_v26  ;;  %v1097_v59 = vmul.u32 2654435769, %v3966_v26 }
  0x9e   : > { %v1909_v19 = vxor.u32 %v1845_v52, %v1781_v45  ;;  %v838_v18 = vxor.u32 %v774_v53, %v710_v44  ;;  %v1186_v60 = vshrl.u32 %v1154_v55, 16  ;;  %v453_v62 = vadd.s32 %v3910_v20, %v388_v56 }
  0x9f   : > { %v339_v63 = vadd.s32 %v296_v54, %v3897_v13  ;;  %v1129_v0 = vadd.s32 %v1097_v59, %v3910_v20  ;;  %v338_v7 = vadd.s32 %v296_v54, %v3880_v3  ;;  %v4016_v2 = vadd.s32 16, %v3877_v1 }
  0xa0   : > { %2377 = vadd.xlane.f32.xlu1 %v2294_v57  ;;  %vm1973_vm14 = vcmp.gt.u32.totalorder %v1909_v19, 429496729  ;;  %v902_v4 = vmul.u32 2221713035, %v838_v18  ;;  %v1218_v6 = vxor.u32 %v1186_v60, %v1154_v55  ;;  %v517_v9 = vadd.s32 2246822507, %v453_v62 }
  0xa1   : > { %v2293_v26 = vsel %vm1973_vm14, %v2229_v58, 0.0  ;;  %v403_v10 = vmul.u32 2654435769, %v339_v63  ;;  %v1161_v16 = vadd.s32 3266489909, %v1129_v0  ;;  %v302_v17 = vmul.u32 16, %v4016_v2 }
  0xa2   : > { %2375 = vadd.xlane.f32.xlu0 %v2293_v26  ;;  %v966_v22 = vshrl.u32 %v902_v4, 16  ;;  %v1250_v23 = vmul.u32 2146121005, %v1218_v6  ;;  %v581_v24 = vshrl.u32 %v517_v9, 16  ;;  %v402_v25 = vmul.u32 2654435769, %v338_v7 }
  0xa3   : > { %v468_v11 = vadd.s32 %v3910_v20, %v403_v10  ;;  %v1193_v28 = vshrl.u32 %v1161_v16, 16  ;;  %v351_v15 = vadd.s32 %v302_v17, %v3897_v13  ;;  %v1103_v29 = vmul.u32 2654435769, %v4016_v2 }
  0xa4   : > { %v1030_v30 = vxor.u32 %v966_v22, %v902_v4  ;;  %v1282_v31 = vshrl.u32 %v1250_v23, 15  ;;  %v645_v32 = vxor.u32 %v581_v24, %v517_v9  ;;  %v467_v33 = vadd.s32 %v3910_v20, %v402_v25 }
  0xa5   : > { %v532_v34 = vadd.s32 2246822507, %v468_v11  ;;  %v1225_v8 = vxor.u32 %v1193_v28, %v1161_v16  ;;  %v415_v35 = vmul.u32 2654435769, %v351_v15  ;;  %v1135_v36 = vadd.s32 %v1103_v29, %v3910_v20 }
  0xa6   : > { %v1314_v37 = vxor.u32 %v1282_v31, %v1250_v23  ;;  %v1706_v38 = vadd.s32 %v1030_v30, %v3930_v46  ;;  %v709_v39 = vmul.u32 2146121005, %v645_v32  ;;  %v531_v40 = vadd.s32 2246822507, %v467_v33 }
  0xa7   : > { %v596_v41 = vshrl.u32 %v532_v34, 16  ;;  %v1257_v42 = vmul.u32 2146121005, %v1225_v8  ;;  %v480_v43 = vadd.s32 %v3910_v20, %v415_v35  ;;  %v1167_v44 = vadd.s32 3266489909, %v1135_v36 }
  0xa8   : > { %v1346_v45 = vmul.u32 2221713035, %v1314_v37  ;;  %v1770_v47 = vmul.u32 2654435769, %v1706_v38  ;;  %v773_v48 = vshrl.u32 %v709_v39, 15  ;;  %v595_v49 = vshrl.u32 %v531_v40, 16 }
  0xa9   : > { %v660_v14 = vxor.u32 %v596_v41, %v532_v34  ;;  %v1289_v50 = vshrl.u32 %v1257_v42, 15  ;;  %v544_v51 = vadd.s32 2246822507, %v480_v43  ;;  %v1199_v52 = vshrl.u32 %v1167_v44, 16 }
  0xaa   : > { %v1378_v53 = vshrl.u32 %v1346_v45, 16  ;;  %v1834_v55 = vshrl.u32 %v1770_v47, 16  ;;  %v837_v56 = vxor.u32 %v773_v48, %v709_v39  ;;  %v659_v57 = vxor.u32 %v595_v49, %v531_v40 }
  0xab   : > { %v724_v58 = vmul.u32 2146121005, %v660_v14  ;;  %v1321_v54 = vxor.u32 %v1289_v50, %v1257_v42  ;;  %v608_v59 = vshrl.u32 %v544_v51, 16  ;;  %v1231_v19 = vxor.u32 %v1199_v52, %v1167_v44  ;;  %v2025_v52 = vld [vmem:[%s3868_s30 + $0x30] sm:$0xff] }
  0xac   : > { %v1410_v18 = vxor.u32 %v1378_v53, %v1346_v45  ;;  %v4026_v60 = vxor.u32 %v1834_v55, %v1770_v47  ;;  %v901_v62 = vmul.u32 2221713035, %v837_v56  ;;  %v723_v63 = vmul.u32 2146121005, %v659_v57 }
  0xad   : > { %v788_v0 = vshrl.u32 %v724_v58, 15  ;;  %v1353_v7 = vmul.u32 2221713035, %v1321_v54  ;;  %v672_v2 = vxor.u32 %v608_v59, %v544_v51  ;;  %v1263_v4 = vmul.u32 2146121005, %v1231_v19  ;;  %v2026_v51 = vld [vmem:[%s3868_s30 + $0x38] sm:$0xff] }
  0xae   : > { %v1442_v6 = vadd.s32 %v1410_v18, %v3930_v46  ;;  %v965_v9 = vshrl.u32 %v901_v62, 16  ;;  %v1615_v26 = vrot.slane %v3975_v61, 2  ;;  %v787_v10 = vshrl.u32 %v723_v63, 15 }
  0xaf   : > { %v852_v16 = vxor.u32 %v788_v0, %v724_v58  ;;  %v1385_v22 = vshrl.u32 %v1353_v7, 16  ;;  %v736_v23 = vmul.u32 2146121005, %v672_v2  ;;  %v1295_v24 = vshrl.u32 %v1263_v4, 15 }
  0xb0   : > { %v1474_v25 = vmul.u32 2654435769, %v1442_v6  ;;  %v1029_v11 = vxor.u32 %v965_v9, %v901_v62  ;;  %v851_v28 = vxor.u32 %v787_v10, %v723_v63  ;;  %v350_v15 = vadd.s32 %v302_v17, %v3880_v3 }
  0xb1   : > { %vm1962_vm15 = vcmp.gt.u32.totalorder %v4026_v60, 429496729  ;;  %v916_v29 = vmul.u32 2221713035, %v852_v16  ;;  %v1417_v30 = vxor.u32 %v1385_v22, %v1353_v7  ;;  %v800_v31 = vshrl.u32 %v736_v23, 15  ;;  %v2040_v22 = vld [vmem:[%s3868_s30 + $0xa8] sm:$0xff] }
  0xb2   : > { %v1327_v32 = vxor.u32 %v1295_v24, %v1263_v4  ;;  %v1506_v33 = vshrl.u32 %v1474_v25, 16  ;;  %v1705_v34 = vadd.s32 %v1029_v11, %v3930_v46  ;;  %v915_v8 = vmul.u32 2221713035, %v851_v28  ;;  %v2039_v24 = vld [vmem:[%s3868_s30 + $0xa0] sm:$0xff] }
  0xb3   : > { %v414_v35 = vmul.u32 2654435769, %v350_v15  ;;  %v980_v36 = vshrl.u32 %v916_v29, 16  ;;  %v1449_v37 = vadd.s32 %v1417_v30, %v3930_v46  ;;  %v864_v38 = vxor.u32 %v800_v31, %v736_v23 }
  0xb4   : > { %v1359_v39 = vmul.u32 2221713035, %v1327_v32  ;;  %v1538_v40 = vxor.u32 %v1506_v33, %v1474_v25  ;;  %v1769_v17 = vmul.u32 2654435769, %v1705_v34  ;;  %v979_v41 = vshrl.u32 %v915_v8, 16 }
  0xb5   : > { %v479_v42 = vadd.s32 %v3910_v20, %v414_v35  ;;  %v1044_v43 = vxor.u32 %v980_v36, %v916_v29  ;;  %v1481_v44 = vmul.u32 2654435769, %v1449_v37  ;;  %v928_v45 = vmul.u32 2221713035, %v864_v38  ;;  %v4051_v38 = vld [vmem:[%s3862_s6 + $0x10] sm:$0xff] }
  0xb6   : > { %v1391_v47 = vshrl.u32 %v1359_v39, 16  ;;  %vm1570_vm0 = vcmp.gt.u32.totalorder %v1538_v40, 429496729  ;;  %v1833_v48 = vshrl.u32 %v1769_v17, 16  ;;  %v1043_v49 = vxor.u32 %v979_v41, %v915_v8 }
  0xb7   : > { %v543_v14 = vadd.s32 2246822507, %v479_v42  ;;  %v1670_v50 = vsel %vm1570_vm0, %v1609_v27, 0.0  ;;  %v1513_v53 = vshrl.u32 %v1481_v44, 16  ;;  %v1720_v55 = vadd.s32 %v1044_v43, %v3930_v46 }
  0xb8   : > { %v992_v56 = vshrl.u32 %v928_v45, 16  ;;  %v2098_v57 = vrot.slane %v1670_v50, %v3894_v12  ;;  %v1897_v58 = vxor.u32 %v1833_v48, %v1769_v17  ;;  %v1719_v54 = vadd.s32 %v1043_v49, %v3930_v46  ;;  %v2052_v48 = vld [vmem:[%s3868_s30 + $0x108] sm:$0xff] }
  0xb9   : > { %v1423_v59 = vxor.u32 %v1391_v47, %v1359_v39  ;;  %v1545_v19 = vxor.u32 %v1513_v53, %v1481_v44  ;;  %v1784_v18 = vmul.u32 2654435769, %v1720_v55  ;;  %v607_v63 = vshrl.u32 %v543_v14, 16 }
  0xba   : > { %v1056_v62 = vxor.u32 %v992_v56, %v928_v45  ;;  %v2218_v0 = vmul.f32 %v2098_v57, %v2026_v51  ;;  %vm1961_vm1 = vcmp.gt.u32.totalorder %v1897_v58, 429496729  ;;  %v2217_v27 = vmul.f32 %v2098_v57, %v2025_v52 }
  0xbb   : > { %v1783_v7 = vmul.u32 2654435769, %v1719_v54  ;;  %vm1577_vm2 = vcmp.gt.u32.totalorder %v1545_v19, 429496729  ;;  %v1848_v2 = vshrl.u32 %v1784_v18, 16  ;;  %v1455_v4 = vadd.s32 %v1423_v59, %v3930_v46 }
  0xbc   : > { %v1732_v6 = vadd.s32 %v1056_v62, %v3930_v46  ;;  %v2282_v9 = vsel %vm1962_vm15, %v2218_v0, 0.0  ;;  %v2281_v10 = vsel %vm1961_vm1, %v2217_v27, 0.0  ;;  %v1677_v16 = vsel %vm1577_vm2, %v1615_v26, 0.0 }
  0xbd   : > { %v1847_v23 = vshrl.u32 %v1783_v7, 16  ;;  %2353 = vadd.xlane.f32.xlu1 %v2282_v9  ;;  %2351 = vadd.xlane.f32.xlu0 %v2281_v10  ;;  %v1912_v25 = vxor.u32 %v1848_v2, %v1784_v18  ;;  %v2126_v11 = vrot.slane %v1677_v16, %v3894_v12  ;;  %v1487_v28 = vmul.u32 2654435769, %v1455_v4 }
  0xbe   : > { %v1796_v15 = vmul.u32 2654435769, %v1732_v6  ;;  %v671_v30 = vxor.u32 %v607_v63, %v543_v14  ;;  %v255_v31 = vadd.s32 17, %v3877_v1  ;;  %v1621_v44 = vrot.slane %v4051_v38, 1  ;;  %v2051_v63 = vld [vmem:[%s3868_s30 + $0x100] sm:$0xff] }
  0xbf   : > { %v1911_v29 = vxor.u32 %v1847_v23, %v1783_v7  ;;  %vm1976_vm3 = vcmp.gt.u32.totalorder %v1912_v25, 429496729  ;;  %v2232_v60 = vmul.f32 %v2126_v11, %v2040_v22  ;;  %v2231_v32 = vmul.f32 %v2126_v11, %v2039_v24 }
  0xc0   : > { %v1519_v33 = vshrl.u32 %v1487_v28, 16  ;;  %v1860_v26 = vshrl.u32 %v1796_v15, 16  ;;  %v735_v34 = vmul.u32 2146121005, %v671_v30  ;;  %v303_v8 = vmul.u32 16, %v255_v31 }
  0xc1   : > { %vm1975_vm4 = vcmp.gt.u32.totalorder %v1911_v29, 429496729  ;;  %v2296_v35 = vsel %vm1976_vm3, %v2232_v60, 0.0  ;;  %v1104_v39 = vmul.u32 2654435769, %v255_v31  ;;  %v242_v45 = vadd.s32 4, %v3877_v1 }
  0xc2   : > { %v2295_v36 = vsel %vm1975_vm4, %v2231_v32, 0.0  ;;  %v1551_v37 = vxor.u32 %v1519_v33, %v1487_v28  ;;  %2381 = vadd.xlane.f32.xlu1 %v2296_v35  ;;  %v1924_v40 = vxor.u32 %v1860_v26, %v1796_v15  ;;  %v799_v17 = vshrl.u32 %v735_v34, 15 }
  0xc3   : > { %2379 = vadd.xlane.f32.xlu0 %v2295_v36  ;;  %v353_v41 = vadd.s32 %v303_v8, %v3897_v13  ;;  %v352_v42 = vadd.s32 %v303_v8, %v3880_v3  ;;  %v1136_v43 = vadd.s32 %v1104_v39, %v3910_v20  ;;  %v1610_v50 = vrot.slane %v3913_v21, 4 }
  0xc4   : > { %vm1583_vm5 = vcmp.gt.u32.totalorder %v1551_v37, 429496729  ;;  %v863_v49 = vxor.u32 %v799_v17, %v735_v34  ;;  %v290_v55 = vmul.u32 16, %v242_v45  ;;  %vm1988_vm6 = vcmp.gt.u32.totalorder %v1924_v40, 429496729 }
  0xc5   : > { %v1683_v47 = vsel %vm1583_vm5, %v4051_v38, 0.0  ;;  %v417_v14 = vmul.u32 2654435769, %v353_v41  ;;  %v1168_v52 = vadd.s32 3266489909, %v1136_v43  ;;  %v4065_v18 = vadd.s32 11, %v3877_v1 }
  0xc6   : > { %v2150_v51 = vrot.slane %v1683_v47, %v3894_v12  ;;  %v416_v53 = vmul.u32 2654435769, %v352_v42  ;;  %v927_v56 = vmul.u32 2221713035, %v863_v49  ;;  %v327_v27 = vadd.s32 %v290_v55, %v3897_v13 }
  0xc7   : > { %v482_v57 = vadd.s32 %v3910_v20, %v417_v14  ;;  %v1091_v58 = vmul.u32 2654435769, %v242_v45  ;;  %v1200_v59 = vshrl.u32 %v1168_v52, 16  ;;  %v326_v9 = vadd.s32 %v290_v55, %v3880_v3 }
  0xc8   : > { %v2244_v54 = vmul.f32 %v2150_v51, %v2052_v48  ;;  %v481_v19 = vadd.s32 %v3910_v20, %v416_v53  ;;  %v991_v62 = vshrl.u32 %v927_v56, 16  ;;  %v391_v22 = vmul.u32 2654435769, %v327_v27 }
  0xc9   : > { %v546_v0 = vadd.s32 2246822507, %v482_v57  ;;  %v1123_v7 = vadd.s32 %v1091_v58, %v3910_v20  ;;  %v1232_v4 = vxor.u32 %v1200_v59, %v1168_v52  ;;  %v2243_v24 = vmul.f32 %v2150_v51, %v2051_v63 }
  0xca   : > { %v2308_v2 = vsel %vm1988_vm6, %v2244_v54, 0.0  ;;  %v545_v6 = vadd.s32 2246822507, %v481_v19  ;;  %v1055_v10 = vxor.u32 %v991_v62, %v927_v56  ;;  %v390_v28 = vmul.u32 2654435769, %v326_v9 }
  0xcb   : > { %2405 = vadd.xlane.f32.xlu1 %v2308_v2  ;;  %v610_v16 = vshrl.u32 %v546_v0, 16  ;;  %v1155_v23 = vadd.s32 3266489909, %v1123_v7  ;;  %v1264_v25 = vmul.u32 2146121005, %v1232_v4  ;;  %v456_v30 = vadd.s32 %v3910_v20, %v391_v22 }
  0xcc   : > { %v609_v11 = vshrl.u32 %v545_v6, 16  ;;  %v1731_v15 = vadd.s32 %v1055_v10, %v3930_v46  ;;  %v455_v33 = vadd.s32 %v3910_v20, %v390_v28  ;;  %v297_v26 = vmul.u32 16, %v4065_v18 }
  0xcd   : > { %v674_v29 = vxor.u32 %v610_v16, %v546_v0  ;;  %v1187_v31 = vshrl.u32 %v1155_v23, 16  ;;  %v1296_v60 = vshrl.u32 %v1264_v25, 15  ;;  %v520_v35 = vadd.s32 2246822507, %v456_v30 }
  0xce   : > { %v673_v32 = vxor.u32 %v609_v11, %v545_v6  ;;  %v1795_v34 = vmul.u32 2654435769, %v1731_v15  ;;  %v519_v40 = vadd.s32 2246822507, %v455_v33  ;;  %v341_v17 = vadd.s32 %v297_v26, %v3897_v13 }
  0xcf   : > { %v738_v8 = vmul.u32 2146121005, %v674_v29  ;;  %v1219_v36 = vxor.u32 %v1187_v31, %v1155_v23  ;;  %v1328_v37 = vxor.u32 %v1296_v60, %v1264_v25  ;;  %v584_v43 = vshrl.u32 %v520_v35, 16 }
  0xd0   : > { %v737_v39 = vmul.u32 2146121005, %v673_v32  ;;  %v1859_v41 = vshrl.u32 %v1795_v34, 16  ;;  %v583_v49 = vshrl.u32 %v519_v40, 16  ;;  %v405_v14 = vmul.u32 2654435769, %v341_v17 }
  0xd1   : > { %v802_v42 = vshrl.u32 %v738_v8, 15  ;;  %v1251_v45 = vmul.u32 2146121005, %v1219_v36  ;;  %v1360_v47 = vmul.u32 2221713035, %v1328_v37  ;;  %v648_v53 = vxor.u32 %v584_v43, %v520_v35 }
  0xd2   : > { %v801_v48 = vshrl.u32 %v737_v39, 15  ;;  %v1923_v51 = vxor.u32 %v1859_v41, %v1795_v34  ;;  %v647_v58 = vxor.u32 %v583_v49, %v519_v40  ;;  %v470_v54 = vadd.s32 %v3910_v20, %v405_v14 }
  0xd3   : > { %v866_v52 = vxor.u32 %v802_v42, %v738_v8  ;;  %v1283_v55 = vshrl.u32 %v1251_v45, 15  ;;  %v1392_v56 = vshrl.u32 %v1360_v47, 16  ;;  %v712_v19 = vmul.u32 2146121005, %v648_v53 }
  0xd4   : > { %v865_v57 = vxor.u32 %v801_v48, %v737_v39  ;;  %vm1987_vm7 = vcmp.gt.u32.totalorder %v1923_v51, 429496729  ;;  %v711_v7 = vmul.u32 2146121005, %v647_v58  ;;  %v534_v9 = vadd.s32 2246822507, %v470_v54 }
  0xd5   : > { %v930_v59 = vmul.u32 2221713035, %v866_v52  ;;  %v1315_v62 = vxor.u32 %v1283_v55, %v1251_v45  ;;  %v2307_v63 = vsel %vm1987_vm7, %v2243_v24, 0.0  ;;  %v1424_v0 = vxor.u32 %v1392_v56, %v1360_v47  ;;  %v2054_v58 = vld [vmem:[%s3868_s30 + $0x118] sm:$0xff]  ;;  %v2053_v54 = vld [vmem:[%s3868_s30 + $0x110] sm:$0xff] }
  0xd6   : > { %v929_v27 = vmul.u32 2221713035, %v865_v57  ;;  %2403 = vadd.xlane.f32.xlu0 %v2307_v63  ;;  %v776_v4 = vshrl.u32 %v712_v19, 15  ;;  %v775_v22 = vshrl.u32 %v711_v7, 15  ;;  %v1098_v23 = vmul.u32 2654435769, %v4065_v18 }
  0xd7   : > { %v994_v2 = vshrl.u32 %v930_v59, 16  ;;  %v1347_v6 = vmul.u32 2221713035, %v1315_v62  ;;  %v1456_v10 = vadd.s32 %v1424_v0, %v3930_v46  ;;  %v598_v15 = vshrl.u32 %v534_v9, 16 }
  0xd8   : > { %v993_v16 = vshrl.u32 %v929_v27, 16  ;;  %v840_v11 = vxor.u32 %v776_v4, %v712_v19  ;;  %v839_v30 = vxor.u32 %v775_v22, %v711_v7  ;;  %v1130_v31 = vadd.s32 %v1098_v23, %v3910_v20 }
  0xd9   : > { %v1058_v25 = vxor.u32 %v994_v2, %v930_v59  ;;  %v1379_v28 = vshrl.u32 %v1347_v6, 16  ;;  %v1488_v29 = vmul.u32 2654435769, %v1456_v10  ;;  %v662_v34 = vxor.u32 %v598_v15, %v534_v9 }
  0xda   : > { %v1057_v24 = vxor.u32 %v993_v16, %v929_v27  ;;  %v904_v32 = vmul.u32 2221713035, %v840_v11  ;;  %v903_v36 = vmul.u32 2221713035, %v839_v30  ;;  %v1162_v37 = vadd.s32 3266489909, %v1130_v31 }
  0xdb   : > { %v1734_v60 = vadd.s32 %v1058_v25, %v3930_v46  ;;  %v1411_v33 = vxor.u32 %v1379_v28, %v1347_v6  ;;  %v1520_v8 = vshrl.u32 %v1488_v29, 16  ;;  %v726_v41 = vmul.u32 2146121005, %v662_v34  ;;  %v2028_v28 = vld [vmem:[%s3868_s30 + $0x48] sm:$0xff] }
  0xdc   : > { %v1733_v35 = vadd.s32 %v1057_v24, %v3930_v46  ;;  %v968_v40 = vshrl.u32 %v904_v32, 16  ;;  %v967_v45 = vshrl.u32 %v903_v36, 16  ;;  %v1194_v47 = vshrl.u32 %v1162_v37, 16 }
  0xdd   : > { %v1798_v39 = vmul.u32 2654435769, %v1734_v60  ;;  %v1443_v17 = vadd.s32 %v1411_v33, %v3930_v46  ;;  %v1552_v42 = vxor.u32 %v1520_v8, %v1488_v29  ;;  %v790_v51 = vshrl.u32 %v726_v41, 15  ;;  %v2027_v29 = vld [vmem:[%s3868_s30 + $0x40] sm:$0xff] }
  0xde   : > { %v1797_v43 = vmul.u32 2654435769, %v1733_v35  ;;  %v1032_v49 = vxor.u32 %v968_v40, %v904_v32  ;;  %v1031_v53 = vxor.u32 %v967_v45, %v903_v36  ;;  %v1226_v55 = vxor.u32 %v1194_v47, %v1162_v37 }
  0xdf   : > { %v1862_v48 = vshrl.u32 %v1798_v39, 16  ;;  %v1475_v14 = vmul.u32 2654435769, %v1443_v17  ;;  %vm1584_vm8 = vcmp.gt.u32.totalorder %v1552_v42, 429496729  ;;  %v854_v27 = vxor.u32 %v790_v51, %v726_v41 }
  0xe0   : > { %v1861_v52 = vshrl.u32 %v1797_v43, 16  ;;  %v1684_v56 = vsel %vm1584_vm8, %v1621_v44, 0.0  ;;  %v1708_v19 = vadd.s32 %v1032_v49, %v3930_v46  ;;  %v1707_v0 = vadd.s32 %v1031_v53, %v3930_v46 }
  0xe1   : > { %v1926_v57 = vxor.u32 %v1862_v48, %v1798_v39  ;;  %v1507_v59 = vshrl.u32 %v1475_v14, 16  ;;  %v2154_v62 = vrot.slane %v1684_v56, %v3894_v12  ;;  %v1258_v4 = vmul.u32 2146121005, %v1226_v55 }
  0xe2   : > { %v1925_v63 = vxor.u32 %v1861_v52, %v1797_v43  ;;  %v1772_v2 = vmul.u32 2654435769, %v1708_v19  ;;  %v1771_v9 = vmul.u32 2654435769, %v1707_v0  ;;  %v1616_v33 = vrot.slane %v3975_v61, 3 }
  0xe3   : > { %vm1990_vm9 = vcmp.gt.u32.totalorder %v1926_v57, 429496729  ;;  %v1539_v7 = vxor.u32 %v1507_v59, %v1475_v14  ;;  %v2246_v6 = vmul.f32 %v2154_v62, %v2054_v58  ;;  %v2245_v44 = vmul.f32 %v2154_v62, %v2053_v54 }
  0xe4   : > { %vm1989_vm10 = vcmp.gt.u32.totalorder %v1925_v63, 429496729  ;;  %v1836_v10 = vshrl.u32 %v1772_v2, 16  ;;  %v918_v16 = vmul.u32 2221713035, %v854_v27  ;;  %v1290_v22 = vshrl.u32 %v1258_v4, 15 }
  0xe5   : > { %vm1571_vm11 = vcmp.gt.u32.totalorder %v1539_v7, 429496729  ;;  %v2310_v23 = vsel %vm1990_vm9, %v2246_v6, 0.0  ;;  %v2309_v25 = vsel %vm1989_vm10, %v2245_v44, 0.0  ;;  %v1835_v15 = vshrl.u32 %v1771_v9, 16 }
  0xe6   : > { %v1671_v11 = vsel %vm1571_vm11, %v1610_v50, 0.0  ;;  %2409 = vadd.xlane.f32.xlu1 %v2310_v23  ;;  %2407 = vadd.xlane.f32.xlu0 %v2309_v25  ;;  %v1900_v24 = vxor.u32 %v1836_v10, %v1772_v2  ;;  %v982_v31 = vshrl.u32 %v918_v16, 16  ;;  %v1322_v60 = vxor.u32 %v1290_v22, %v1258_v4 }
  0xe7   : > { %v2102_v30 = vrot.slane %v1671_v11, %v3894_v12  ;;  %v1899_v32 = vxor.u32 %v1835_v15, %v1771_v9  ;;  %v340_v34 = vadd.s32 %v297_v26, %v3880_v3  ;;  %v256_v21 = vadd.s32 18, %v3877_v1 }
  0xe8   : > { %vm1964_vm12 = vcmp.gt.u32.totalorder %v1900_v24, 429496729  ;;  %v1046_v35 = vxor.u32 %v982_v31, %v918_v16  ;;  %v1354_v36 = vmul.u32 2221713035, %v1322_v60  ;;  %v262_v43 = vadd.s32 24, %v3877_v1 }
  0xe9   : > { %v2220_v50 = vmul.f32 %v2102_v30, %v2028_v28  ;;  %v2219_v8 = vmul.f32 %v2102_v30, %v2027_v29  ;;  %vm1963_vm13 = vcmp.gt.u32.totalorder %v1899_v32, 429496729  ;;  %v404_v37 = vmul.u32 2654435769, %v340_v34 }
  0xea   : > { %v1722_v17 = vadd.s32 %v1046_v35, %v3930_v46  ;;  %v304_v41 = vmul.u32 16, %v256_v21  ;;  %v1386_v42 = vshrl.u32 %v1354_v36, 16  ;;  %v1105_v26 = vmul.u32 2654435769, %v256_v21  ;;  %v2042_v35 = vld [vmem:[%s3868_s30 + $0xb8] sm:$0xff] }
  0xeb   : > { %v2284_v39 = vsel %vm1964_vm12, %v2220_v50, 0.0  ;;  %v2283_v40 = vsel %vm1963_vm13, %v2219_v8, 0.0  ;;  %v469_v18 = vadd.s32 %v3910_v20, %v404_v37  ;;  %v1622_v48 = vrot.slane %v4051_v38, 2 }
  0xec   : > { %2357 = vadd.xlane.f32.xlu1 %v2284_v39  ;;  %2355 = vadd.xlane.f32.xlu0 %v2283_v40  ;;  %v1786_v45 = vmul.u32 2654435769, %v1722_v17  ;;  %v355_v47 = vadd.s32 %v304_v41, %v3897_v13  ;;  %v354_v49 = vadd.s32 %v304_v41, %v3880_v3  ;;  %v1418_v14 = vxor.u32 %v1386_v42, %v1354_v36  ;;  %v2041_v17 = vld [vmem:[%s3868_s30 + $0xb0] sm:$0xff] }
  0xed   : > { %v533_v51 = vadd.s32 2246822507, %v469_v18  ;;  %v1137_v52 = vadd.s32 %v1105_v26, %v3910_v20  ;;  %v310_v53 = vmul.u32 16, %v262_v43  ;;  %v4110_v58 = vadd.s32 25, %v3877_v1 }
  0xee   : > { %v1850_v55 = vshrl.u32 %v1786_v45, 16  ;;  %v419_v56 = vmul.u32 2654435769, %v355_v47  ;;  %v418_v57 = vmul.u32 2654435769, %v354_v49  ;;  %v1450_v54 = vadd.s32 %v1418_v14, %v3930_v46 }
  0xef   : > { %v597_v59 = vshrl.u32 %v533_v51, 16  ;;  %v1169_v19 = vadd.s32 3266489909, %v1137_v52  ;;  %v367_v62 = vadd.s32 %v310_v53, %v3897_v13  ;;  %v1111_v7 = vmul.u32 2654435769, %v262_v43 }
  0xf0   : > { %v1914_v63 = vxor.u32 %v1850_v55, %v1786_v45  ;;  %v484_v0 = vadd.s32 %v3910_v20, %v419_v56  ;;  %v483_v27 = vadd.s32 %v3910_v20, %v418_v57  ;;  %v1482_v2 = vmul.u32 2654435769, %v1450_v54 }
  0xf1   : > { %v661_v4 = vxor.u32 %v597_v59, %v533_v51  ;;  %v1201_v6 = vshrl.u32 %v1169_v19, 16  ;;  %v431_v44 = vmul.u32 2654435769, %v367_v62  ;;  %v1143_v16 = vadd.s32 %v1111_v7, %v3910_v20 }
  0xf2   : > { %vm1978_vm14 = vcmp.gt.u32.totalorder %v1914_v63, 429496729  ;;  %v548_v9 = vadd.s32 2246822507, %v484_v0  ;;  %v547_v10 = vadd.s32 2246822507, %v483_v27  ;;  %v366_v24 = vadd.s32 %v310_v53, %v3880_v3 }
  0xf3   : > { %v1514_v22 = vshrl.u32 %v1482_v2, 16  ;;  %v725_v23 = vmul.u32 2146121005, %v661_v4  ;;  %v1233_v25 = vxor.u32 %v1201_v6, %v1169_v19  ;;  %v496_v11 = vadd.s32 %v3910_v20, %v431_v44 }
  0xf4   : > { %v612_v28 = vshrl.u32 %v548_v9, 16  ;;  %v611_v15 = vshrl.u32 %v547_v10, 16  ;;  %v1175_v29 = vadd.s32 3266489909, %v1143_v16  ;;  %v430_v8 = vmul.u32 2654435769, %v366_v24 }
  0xf5   : > { %v1546_v30 = vxor.u32 %v1514_v22, %v1482_v2  ;;  %v789_v31 = vshrl.u32 %v725_v23, 15  ;;  %v1265_v60 = vmul.u32 2146121005, %v1233_v25  ;;  %v560_v32 = vadd.s32 2246822507, %v496_v11 }
  0xf6   : > { %v676_v34 = vxor.u32 %v612_v28, %v548_v9  ;;  %v675_v21 = vxor.u32 %v611_v15, %v547_v10  ;;  %v1207_v50 = vshrl.u32 %v1175_v29, 16  ;;  %v495_v52 = vadd.s32 %v3910_v20, %v430_v8 }
  0xf7   : > { %vm1578_vm15 = vcmp.gt.u32.totalorder %v1546_v30, 429496729  ;;  %v853_v36 = vxor.u32 %v789_v31, %v725_v23  ;;  %v1297_v37 = vshrl.u32 %v1265_v60, 15  ;;  %v624_v39 = vshrl.u32 %v560_v32, 16 }
  0xf8   : > { %v1678_v40 = vsel %vm1578_vm15, %v1616_v33, 0.0  ;;  %v740_v41 = vmul.u32 2146121005, %v676_v34  ;;  %v739_v42 = vmul.u32 2146121005, %v675_v21  ;;  %v1239_v18 = vxor.u32 %v1207_v50, %v1175_v29 }
  0xf9   : > { %v2130_v26 = vrot.slane %v1678_v40, %v3894_v12  ;;  %v917_v43 = vmul.u32 2221713035, %v853_v36  ;;  %v1329_v45 = vxor.u32 %v1297_v37, %v1265_v60  ;;  %v688_v47 = vxor.u32 %v624_v39, %v560_v32 }
  0xfa   : > { %v804_v49 = vshrl.u32 %v740_v41, 15  ;;  %v803_v14 = vshrl.u32 %v739_v42, 15  ;;  %v1271_v51 = vmul.u32 2146121005, %v1239_v18  ;;  %v559_v27 = vadd.s32 2246822507, %v495_v52 }
  0xfb   : > { %v2234_v53 = vmul.f32 %v2130_v26, %v2042_v35  ;;  %v981_v55 = vshrl.u32 %v917_v43, 16  ;;  %v2233_v56 = vmul.f32 %v2130_v26, %v2041_v17  ;;  %v1361_v57 = vmul.u32 2221713035, %v1329_v45 }
  0xfc   : > { %v868_v61 = vxor.u32 %v804_v49, %v740_v41  ;;  %v867_v33 = vxor.u32 %v803_v14, %v739_v42  ;;  %v752_v54 = vmul.u32 2146121005, %v688_v47  ;;  %v1303_v59 = vshrl.u32 %v1271_v51, 15 }
  0xfd   : > { %v2298_v19 = vsel %vm1978_vm14, %v2234_v53, 0.0  ;;  %v1045_v62 = vxor.u32 %v981_v55, %v917_v43  ;;  %v1393_v0 = vshrl.u32 %v1361_v57, 16  ;;  %v623_v10 = vshrl.u32 %v559_v27, 16 }
  0xfe   : > { %2385 = vadd.xlane.f32.xlu1 %v2298_v19  ;;  %v932_v7 = vmul.u32 2221713035, %v868_v61  ;;  %v931_v2 = vmul.u32 2221713035, %v867_v33  ;;  %v816_v4 = vshrl.u32 %v752_v54, 15  ;;  %v1335_v6 = vxor.u32 %v1303_v59, %v1271_v51  ;;  %v2056_v59 = vld [vmem:[%s3868_s30 + $0x128] sm:$0xff] }
  0xff   : > { %v1721_v44 = vadd.s32 %v1045_v62, %v3930_v46  ;;  %v1425_v9 = vxor.u32 %v1393_v0, %v1361_v57  ;;  %v311_v16 = vmul.u32 16, %v4110_v58  ;;  %v687_v15 = vxor.u32 %v623_v10, %v559_v27  ;;  %v2055_v62 = vld [vmem:[%s3868_s30 + $0x120] sm:$0xff]  ;;  %v4144_v27 = vld [vmem:[%s3862_s6 + $0x18] sm:$0xff] }
 0x100   : > { %v996_v22 = vshrl.u32 %v932_v7, 16  ;;  %v995_v23 = vshrl.u32 %v931_v2, 16  ;;  %v880_v25 = vxor.u32 %v816_v4, %v752_v54  ;;  %v1367_v11 = vmul.u32 2221713035, %v1335_v6 }
 0x101   : > { %v1785_v63 = vmul.u32 2654435769, %v1721_v44  ;;  %v1457_v28 = vadd.s32 %v1425_v9, %v3930_v46  ;;  %v369_v29 = vadd.s32 %v311_v16, %v3897_v13  ;;  %v751_v21 = vmul.u32 2146121005, %v687_v15  ;;  %v2068_v15 = vld [vmem:[%s3868_s30 + $0x188] sm:$0xff] }
 0x102   : > { %v1060_v24 = vxor.u32 %v996_v22, %v932_v7  ;;  %v1059_v30 = vxor.u32 %v995_v23, %v931_v2  ;;  %v944_v31 = vmul.u32 2221713035, %v880_v25  ;;  %v1399_v60 = vshrl.u32 %v1367_v11, 16 }
 0x103   : > { %v1849_v32 = vshrl.u32 %v1785_v63, 16  ;;  %v1489_v34 = vmul.u32 2654435769, %v1457_v28  ;;  %v4131_v50 = vadd.s32 %v311_v16, %v3880_v3  ;;  %v815_v17 = vshrl.u32 %v751_v21, 15 }
 0x104   : > { %v1736_v8 = vadd.s32 %v1060_v24, %v3930_v46  ;;  %v1735_v35 = vadd.s32 %v1059_v30, %v3930_v46  ;;  %v1008_v36 = vshrl.u32 %v944_v31, 16  ;;  %v1431_v37 = vxor.u32 %v1399_v60, %v1367_v11 }
 0x105   : > { %v1913_v39 = vxor.u32 %v1849_v32, %v1785_v63  ;;  %v1521_v40 = vshrl.u32 %v1489_v34, 16  ;;  %v433_v41 = vmul.u32 2654435769, %v369_v29  ;;  %v879_v47 = vxor.u32 %v815_v17, %v751_v21  ;;  %v2067_v29 = vld [vmem:[%s3868_s30 + $0x180] sm:$0xff] }
 0x106   : > { %v1800_v42 = vmul.u32 2654435769, %v1736_v8  ;;  %v1799_v18 = vmul.u32 2654435769, %v1735_v35  ;;  %v1072_v26 = vxor.u32 %v1008_v36, %v944_v31  ;;  %v1463_v43 = vadd.s32 %v1431_v37, %v3930_v46 }
 0x107   : > { %vm1977_vm0 = vcmp.gt.u32.totalorder %v1913_v39, 429496729  ;;  %v1553_v45 = vxor.u32 %v1521_v40, %v1489_v34  ;;  %v498_v49 = vadd.s32 %v3910_v20, %v433_v41  ;;  %v943_v57 = vmul.u32 2221713035, %v879_v47 }
 0x108   : > { %v2297_v14 = vsel %vm1977_vm0, %v2233_v56, 0.0  ;;  %v1864_v51 = vshrl.u32 %v1800_v42, 16  ;;  %v1863_v52 = vshrl.u32 %v1799_v18, 16  ;;  %v1495_v53 = vmul.u32 2654435769, %v1463_v43 }
 0x109   : > { %2383 = vadd.xlane.f32.xlu0 %v2297_v14  ;;  %vm1585_vm1 = vcmp.gt.u32.totalorder %v1553_v45, 429496729  ;;  %v1748_v55 = vadd.s32 %v1072_v26, %v3930_v46  ;;  %v562_v61 = vadd.s32 2246822507, %v498_v49  ;;  %v1007_v2 = vshrl.u32 %v943_v57, 16 }
 0x10a   : > { %v1685_v33 = vsel %vm1585_vm1, %v1622_v48, 0.0  ;;  %v1928_v54 = vxor.u32 %v1864_v51, %v1800_v42  ;;  %v1927_v19 = vxor.u32 %v1863_v52, %v1799_v18  ;;  %v1527_v0 = vshrl.u32 %v1495_v53, 16 }
 0x10b   : > { %v2158_v56 = vrot.slane %v1685_v33, %v3894_v12  ;;  %v1812_v7 = vmul.u32 2654435769, %v1748_v55  ;;  %v626_v4 = vshrl.u32 %v562_v61, 16  ;;  %v1112_v38 = vmul.u32 2654435769, %v4110_v58 }
 0x10c   : > { %vm1992_vm2 = vcmp.gt.u32.totalorder %v1928_v54, 429496729  ;;  %vm1991_vm3 = vcmp.gt.u32.totalorder %v1927_v19, 429496729  ;;  %v1559_v6 = vxor.u32 %v1527_v0, %v1495_v53  ;;  %v1071_v10 = vxor.u32 %v1007_v2, %v943_v57 }
 0x10d   : > { %v2248_v48 = vmul.f32 %v2158_v56, %v2056_v59  ;;  %v2247_v44 = vmul.f32 %v2158_v56, %v2055_v62  ;;  %v1876_v9 = vshrl.u32 %v1812_v7, 16  ;;  %v690_v16 = vxor.u32 %v626_v4, %v562_v61 }
 0x10e   : > { %vm1591_vm4 = vcmp.gt.u32.totalorder %v1559_v6, 429496729  ;;  %v1144_v22 = vadd.s32 %v1112_v38, %v3910_v20  ;;  %v432_v23 = vmul.u32 2654435769, %v4131_v50  ;;  %v1747_v24 = vadd.s32 %v1071_v10, %v3930_v46 }
 0x10f   : > { %v2312_v25 = vsel %vm1992_vm2, %v2248_v48, 0.0  ;;  %v2311_v11 = vsel %vm1991_vm3, %v2247_v44, 0.0  ;;  %v1691_v63 = vsel %vm1591_vm4, %v4144_v27, 0.0  ;;  %v1940_v28 = vxor.u32 %v1876_v9, %v1812_v7 }
 0x110   : > { %2413 = vadd.xlane.f32.xlu1 %v2312_v25  ;;  %2411 = vadd.xlane.f32.xlu0 %v2311_v11  ;;  %v2182_v58 = vrot.slane %v1691_v63, %v3894_v12  ;;  %v754_v30 = vmul.u32 2146121005, %v690_v16  ;;  %v1176_v31 = vadd.s32 3266489909, %v1144_v22  ;;  %v1628_v60 = vrot.slane %v4144_v27, 1 }
 0x111   : > { %vm2004_vm5 = vcmp.gt.u32.totalorder %v1940_v28, 429496729  ;;  %v497_v32 = vadd.s32 %v3910_v20, %v432_v23  ;;  %v243_v34 = vadd.s32 5, %v3877_v1  ;;  %v1811_v50 = vmul.u32 2654435769, %v1747_v24 }
 0x112   : > { %v2260_v21 = vmul.f32 %v2182_v58, %v2068_v15  ;;  %v2259_v8 = vmul.f32 %v2182_v58, %v2067_v29  ;;  %v818_v35 = vshrl.u32 %v754_v30, 15  ;;  %v1208_v36 = vshrl.u32 %v1176_v31, 16  ;;  %v4174_v58 = vld [vmem:[%s3862_s6] sm:$0xff] }
 0x113   : > { %v561_v37 = vadd.s32 2246822507, %v497_v32  ;;  %v291_v39 = vmul.u32 16, %v243_v34  ;;  %v1092_v40 = vmul.u32 2654435769, %v243_v34  ;;  %v1875_v41 = vshrl.u32 %v1811_v50, 16 }
 0x114   : > { %v2324_v17 = vsel %vm2004_vm5, %v2260_v21, 0.0  ;;  %v882_v42 = vxor.u32 %v818_v35, %v754_v30  ;;  %v4158_v18 = vadd.s32 12, %v3877_v1  ;;  %v1240_v26 = vxor.u32 %v1208_v36, %v1176_v31 }
 0x115   : > { %2437 = vadd.xlane.f32.xlu1 %v2324_v17  ;;  %v625_v43 = vshrl.u32 %v561_v37, 16  ;;  %v329_v45 = vadd.s32 %v291_v39, %v3897_v13  ;;  %v1124_v47 = vadd.s32 %v1092_v40, %v3910_v20  ;;  %v1939_v49 = vxor.u32 %v1875_v41, %v1811_v50 }
 0x116   : > { %v946_v14 = vmul.u32 2221713035, %v882_v42  ;;  %v328_v51 = vadd.s32 %v291_v39, %v3880_v3  ;;  %v298_v52 = vmul.u32 16, %v4158_v18  ;;  %v1611_v24 = vrot.slane %v4174_v58, 5 }
 0x117   : > { %v1272_v53 = vmul.u32 2146121005, %v1240_v26  ;;  %v689_v55 = vxor.u32 %v625_v43, %v561_v37  ;;  %v393_v57 = vmul.u32 2654435769, %v329_v45  ;;  %v1156_v61 = vadd.s32 3266489909, %v1124_v47 }
 0x118   : > { %vm2003_vm6 = vcmp.gt.u32.totalorder %v1939_v49, 429496729  ;;  %v1010_v33 = vshrl.u32 %v946_v14, 16  ;;  %v392_v54 = vmul.u32 2654435769, %v328_v51  ;;  %v343_v59 = vadd.s32 %v298_v52, %v3897_v13 }
 0x119   : > { %v2323_v19 = vsel %vm2003_vm6, %v2259_v8, 0.0  ;;  %v1304_v62 = vshrl.u32 %v1272_v53, 15  ;;  %v753_v0 = vmul.u32 2146121005, %v689_v55  ;;  %v458_v56 = vadd.s32 %v3910_v20, %v393_v57  ;;  %v4181_v57 = vld [vmem:[%s3862_s6 + $0x8] sm:$0xff] }
 0x11a   : > { %2435 = vadd.xlane.f32.xlu0 %v2323_v19  ;;  %v1074_v7 = vxor.u32 %v1010_v33, %v946_v14  ;;  %v1188_v2 = vshrl.u32 %v1156_v61, 16  ;;  %v457_v4 = vadd.s32 %v3910_v20, %v392_v54  ;;  %v407_v6 = vmul.u32 2654435769, %v343_v59 }
 0x11b   : > { %v1336_v38 = vxor.u32 %v1304_v62, %v1272_v53  ;;  %v817_v48 = vshrl.u32 %v753_v0, 15  ;;  %v522_v44 = vadd.s32 2246822507, %v458_v56  ;;  %v1099_v9 = vmul.u32 2654435769, %v4158_v18 }
 0x11c   : > { %v1750_v10 = vadd.s32 %v1074_v7, %v3930_v46  ;;  %v1220_v16 = vxor.u32 %v1188_v2, %v1156_v61  ;;  %v521_v22 = vadd.s32 2246822507, %v457_v4  ;;  %v472_v23 = vadd.s32 %v3910_v20, %v407_v6 }
 0x11d   : > { %v1368_v25 = vmul.u32 2221713035, %v1336_v38  ;;  %v881_v11 = vxor.u32 %v817_v48, %v753_v0  ;;  %v586_v63 = vshrl.u32 %v522_v44, 16  ;;  %v1131_v28 = vadd.s32 %v1099_v9, %v3910_v20 }
 0x11e   : > { %v1814_v15 = vmul.u32 2654435769, %v1750_v10  ;;  %v1252_v29 = vmul.u32 2146121005, %v1220_v16  ;;  %v585_v30 = vshrl.u32 %v521_v22, 16  ;;  %v1617_v61 = vrot.slane %v4181_v57, 4 }
 0x11f   : > { %v1400_v31 = vshrl.u32 %v1368_v25, 16  ;;  %v945_v32 = vmul.u32 2221713035, %v881_v11  ;;  %v650_v34 = vxor.u32 %v586_v63, %v522_v44  ;;  %v536_v21 = vadd.s32 2246822507, %v472_v23 }
 0x120   : > { %v1878_v50 = vshrl.u32 %v1814_v15, 16  ;;  %v1284_v8 = vshrl.u32 %v1252_v29, 15  ;;  %v649_v35 = vxor.u32 %v585_v30, %v521_v22  ;;  %v1163_v36 = vadd.s32 3266489909, %v1131_v28 }
 0x121   : > { %v1432_v37 = vxor.u32 %v1400_v31, %v1368_v25  ;;  %v1009_v39 = vshrl.u32 %v945_v32, 16  ;;  %v714_v40 = vmul.u32 2146121005, %v650_v34  ;;  %v600_v17 = vshrl.u32 %v536_v21, 16 }
 0x122   : > { %v4177_v41 = vxor.u32 %v1878_v50, %v1814_v15  ;;  %v1316_v42 = vxor.u32 %v1284_v8, %v1252_v29  ;;  %v713_v26 = vmul.u32 2146121005, %v649_v35  ;;  %v1195_v43 = vshrl.u32 %v1163_v36, 16 }
 0x123   : > { %v1464_v45 = vadd.s32 %v1432_v37, %v3930_v46  ;;  %v1073_v47 = vxor.u32 %v1009_v39, %v945_v32  ;;  %v778_v49 = vshrl.u32 %v714_v40, 15  ;;  %v664_v14 = vxor.u32 %v600_v17, %v536_v21  ;;  %v2069_v32 = vld [vmem:[%s3868_s30 + $0x190] sm:$0xff] }
 0x124   : > { %v1348_v51 = vmul.u32 2221713035, %v1316_v42  ;;  %v777_v53 = vshrl.u32 %v713_v26, 15  ;;  %v1227_v55 = vxor.u32 %v1195_v43, %v1163_v36  ;;  %vm2006_vm7 = vcmp.gt.u32.totalorder %v4177_v41, 429496729 }
 0x125   : > { %v1496_v33 = vmul.u32 2654435769, %v1464_v45  ;;  %v1749_v54 = vadd.s32 %v1073_v47, %v3930_v46  ;;  %v842_v59 = vxor.u32 %v778_v49, %v714_v40  ;;  %v728_v19 = vmul.u32 2146121005, %v664_v14 }
 0x126   : > { %v1380_v62 = vshrl.u32 %v1348_v51, 16  ;;  %v841_v0 = vxor.u32 %v777_v53, %v713_v26  ;;  %v1259_v56 = vmul.u32 2146121005, %v1227_v55  ;;  %v342_v7 = vadd.s32 %v298_v52, %v3880_v3  ;;  %v2070_v52 = vld [vmem:[%s3868_s30 + $0x198] sm:$0xff] }
 0x127   : > { %v1528_v2 = vshrl.u32 %v1496_v33, 16  ;;  %v1813_v4 = vmul.u32 2654435769, %v1749_v54  ;;  %v906_v6 = vmul.u32 2221713035, %v842_v59  ;;  %v792_v38 = vshrl.u32 %v728_v19, 15 }
 0x128   : > { %v1412_v48 = vxor.u32 %v1380_v62, %v1348_v51  ;;  %v905_v44 = vmul.u32 2221713035, %v841_v0  ;;  %v1291_v9 = vshrl.u32 %v1259_v56, 15  ;;  %v406_v10 = vmul.u32 2654435769, %v342_v7  ;;  %v2029_v7 = vld [vmem:[%s3868_s30 + $0x50] sm:$0xff] }
 0x129   : > { %v1560_v16 = vxor.u32 %v1528_v2, %v1496_v33  ;;  %v1877_v22 = vshrl.u32 %v1813_v4, 16  ;;  %v970_v23 = vshrl.u32 %v906_v6, 16  ;;  %v856_v25 = vxor.u32 %v792_v38, %v728_v19 }
 0x12a   : > { %v1444_v11 = vadd.s32 %v1412_v48, %v3930_v46  ;;  %v969_v63 = vshrl.u32 %v905_v44, 16  ;;  %v1323_v28 = vxor.u32 %v1291_v9, %v1259_v56  ;;  %v471_v18 = vadd.s32 %v3910_v20, %v406_v10  ;;  %v2030_v56 = vld [vmem:[%s3868_s30 + $0x58] sm:$0xff] }
 0x12b   : > { %vm1592_vm8 = vcmp.gt.u32.totalorder %v1560_v16, 429496729  ;;  %v1941_v15 = vxor.u32 %v1877_v22, %v1813_v4  ;;  %v1034_v29 = vxor.u32 %v970_v23, %v906_v6  ;;  %v920_v30 = vmul.u32 2221713035, %v856_v25 }
 0x12c   : > { %v1692_v31 = vsel %vm1592_vm8, %v1628_v60, 0.0  ;;  %v1476_v34 = vmul.u32 2654435769, %v1444_v11  ;;  %v1033_v21 = vxor.u32 %v969_v63, %v905_v44  ;;  %v1355_v50 = vmul.u32 2221713035, %v1323_v28 }
 0x12d   : > { %v2186_v8 = vrot.slane %v1692_v31, %v3894_v12  ;;  %vm2005_vm9 = vcmp.gt.u32.totalorder %v1941_v15, 429496729  ;;  %v1710_v35 = vadd.s32 %v1034_v29, %v3930_v46  ;;  %v984_v36 = vshrl.u32 %v920_v30, 16  ;;  %v4212_v31 = vld [vmem:[%s3862_s6 + $0x10] sm:$0xff] }
 0x12e   : > { %v1508_v37 = vshrl.u32 %v1476_v34, 16  ;;  %v1709_v39 = vadd.s32 %v1033_v21, %v3930_v46  ;;  %v1387_v40 = vshrl.u32 %v1355_v50, 16  ;;  %v535_v17 = vadd.s32 2246822507, %v471_v18 }
 0x12f   : > { %v2262_v42 = vmul.f32 %v2186_v8, %v2070_v52  ;;  %v2261_v26 = vmul.f32 %v2186_v8, %v2069_v32  ;;  %v1774_v43 = vmul.u32 2654435769, %v1710_v35  ;;  %v1048_v45 = vxor.u32 %v984_v36, %v920_v30  ;;  %v2044_v8 = vld [vmem:[%s3868_s30 + $0xc8] sm:$0xff] }
 0x130   : > { %v1540_v60 = vxor.u32 %v1508_v37, %v1476_v34  ;;  %v1773_v47 = vmul.u32 2654435769, %v1709_v39  ;;  %v1419_v49 = vxor.u32 %v1387_v40, %v1355_v50  ;;  %v599_v14 = vshrl.u32 %v535_v17, 16 }
 0x131   : > { %v2326_v51 = vsel %vm2006_vm7, %v2262_v42, 0.0  ;;  %v2325_v53 = vsel %vm2005_vm9, %v2261_v26, 0.0  ;;  %v1838_v55 = vshrl.u32 %v1774_v43, 16  ;;  %v1724_v33 = vadd.s32 %v1048_v45, %v3930_v46 }
 0x132   : > { %2441 = vadd.xlane.f32.xlu1 %v2326_v51  ;;  %2439 = vadd.xlane.f32.xlu0 %v2325_v53  ;;  %vm1572_vm10 = vcmp.gt.u32.totalorder %v1540_v60, 429496729  ;;  %v1837_v54 = vshrl.u32 %v1773_v47, 16  ;;  %v1451_v59 = vadd.s32 %v1419_v49, %v3930_v46  ;;  %v663_v19 = vxor.u32 %v599_v14, %v535_v17 }
 0x133   : > { %v1672_v62 = vsel %vm1572_vm10, %v1611_v24, 0.0  ;;  %v1902_v0 = vxor.u32 %v1838_v55, %v1774_v43  ;;  %v1788_v41 = vmul.u32 2654435769, %v1724_v33  ;;  %v257_v2 = vadd.s32 19, %v3877_v1 }
 0x134   : > { %v2106_v4 = vrot.slane %v1672_v62, %v3894_v12  ;;  %v1901_v6 = vxor.u32 %v1837_v54, %v1773_v47  ;;  %v1483_v38 = vmul.u32 2654435769, %v1451_v59  ;;  %v727_v48 = vmul.u32 2146121005, %v663_v19 }
 0x135   : > { %vm1966_vm11 = vcmp.gt.u32.totalorder %v1902_v0, 429496729  ;;  %v1852_v44 = vshrl.u32 %v1788_v41, 16  ;;  %v305_v9 = vmul.u32 16, %v257_v2  ;;  %v1106_v10 = vmul.u32 2654435769, %v257_v2 }
 0x136   : > { %v2222_v16 = vmul.f32 %v2106_v4, %v2030_v56  ;;  %vm1965_vm12 = vcmp.gt.u32.totalorder %v1901_v6, 429496729  ;;  %v2221_v22 = vmul.f32 %v2106_v4, %v2029_v7  ;;  %v1515_v24 = vshrl.u32 %v1483_v38, 16 }
 0x137   : > { %v1916_v23 = vxor.u32 %v1852_v44, %v1788_v41  ;;  %v791_v25 = vshrl.u32 %v727_v48, 15  ;;  %v357_v11 = vadd.s32 %v305_v9, %v3897_v13  ;;  %v1138_v63 = vadd.s32 %v1106_v10, %v3910_v20  ;;  %v2043_v44 = vld [vmem:[%s3868_s30 + $0xc0] sm:$0xff] }
 0x138   : > { %v2286_v28 = vsel %vm1966_vm11, %v2222_v16, 0.0  ;;  %v2285_v18 = vsel %vm1965_vm12, %v2221_v22, 0.0  ;;  %v1547_v52 = vxor.u32 %v1515_v24, %v1483_v38  ;;  %v1623_v32 = vrot.slane %v4212_v31, 3 }
 0x139   : > { %2361 = vadd.xlane.f32.xlu1 %v2286_v28  ;;  %2359 = vadd.xlane.f32.xlu0 %v2285_v18  ;;  %v855_v15 = vxor.u32 %v791_v25, %v727_v48  ;;  %v421_v29 = vmul.u32 2654435769, %v357_v11  ;;  %v1170_v30 = vadd.s32 3266489909, %v1138_v63  ;;  %vm1980_vm14 = vcmp.gt.u32.totalorder %v1916_v23, 429496729 }
 0x13a   : > { %vm1579_vm13 = vcmp.gt.u32.totalorder %v1547_v52, 429496729  ;;  %v356_v34 = vadd.s32 %v305_v9, %v3880_v3  ;;  %v264_v21 = vadd.s32 26, %v3877_v1  ;;  %v1629_v42 = vrot.slane %v4144_v27, 2 }
 0x13b   : > { %v1679_v50 = vsel %vm1579_vm13, %v1617_v61, 0.0  ;;  %v919_v35 = vmul.u32 2221713035, %v855_v15  ;;  %v486_v36 = vadd.s32 %v3910_v20, %v421_v29  ;;  %v1202_v37 = vshrl.u32 %v1170_v30, 16 }
 0x13c   : > { %v2134_v39 = vrot.slane %v1679_v50, %v3894_v12  ;;  %v420_v40 = vmul.u32 2654435769, %v356_v34  ;;  %v312_v17 = vmul.u32 16, %v264_v21  ;;  %v4226_v14 = vadd.s32 6, %v3877_v1 }
 0x13d   : > { %v983_v26 = vshrl.u32 %v919_v35, 16  ;;  %v550_v43 = vadd.s32 2246822507, %v486_v36  ;;  %v1234_v45 = vxor.u32 %v1202_v37, %v1170_v30  ;;  %v1113_v60 = vmul.u32 2654435769, %v264_v21 }
 0x13e   : > { %v2236_v47 = vmul.f32 %v2134_v39, %v2044_v8  ;;  %v485_v49 = vadd.s32 %v3910_v20, %v420_v40  ;;  %v371_v61 = vadd.s32 %v312_v17, %v3897_v13  ;;  %v370_v62 = vadd.s32 %v312_v17, %v3880_v3 }
 0x13f   : > { %v1047_v51 = vxor.u32 %v983_v26, %v919_v35  ;;  %v614_v53 = vshrl.u32 %v550_v43, 16  ;;  %v1266_v55 = vmul.u32 2146121005, %v1234_v45  ;;  %v1145_v33 = vadd.s32 %v1113_v60, %v3910_v20 }
 0x140   : > { %v2300_v54 = vsel %vm1980_vm14, %v2236_v47, 0.0  ;;  %v549_v59 = vadd.s32 2246822507, %v485_v49  ;;  %v435_v19 = vmul.u32 2654435769, %v371_v61  ;;  %v292_v38 = vmul.u32 16, %v4226_v14 }
 0x141   : > { %2389 = vadd.xlane.f32.xlu1 %v2300_v54  ;;  %v1723_v0 = vadd.s32 %v1047_v51, %v3930_v46  ;;  %v678_v56 = vxor.u32 %v614_v53, %v550_v43  ;;  %v1298_v7 = vshrl.u32 %v1266_v55, 15  ;;  %v1177_v41 = vadd.s32 3266489909, %v1145_v33 }
 0x142   : > { %v613_v2 = vshrl.u32 %v549_v59, 16  ;;  %v500_v4 = vadd.s32 %v3910_v20, %v435_v19  ;;  %v434_v6 = vmul.u32 2654435769, %v370_v62  ;;  %v331_v25 = vadd.s32 %v292_v38, %v3897_v13 }
 0x143   : > { %v1787_v48 = vmul.u32 2654435769, %v1723_v0  ;;  %v742_v9 = vmul.u32 2146121005, %v678_v56  ;;  %v1330_v10 = vxor.u32 %v1298_v7, %v1266_v55  ;;  %v1209_v16 = vshrl.u32 %v1177_v41, 16 }
 0x144   : > { %v677_v22 = vxor.u32 %v613_v2, %v549_v59  ;;  %v564_v24 = vadd.s32 2246822507, %v500_v4  ;;  %v499_v23 = vadd.s32 %v3910_v20, %v434_v6  ;;  %v2235_v52 = vmul.f32 %v2134_v39, %v2043_v44 }
 0x145   : > { %v1851_v11 = vshrl.u32 %v1787_v48, 16  ;;  %v806_v63 = vshrl.u32 %v742_v9, 15  ;;  %v1362_v28 = vmul.u32 2221713035, %v1330_v10  ;;  %v1241_v18 = vxor.u32 %v1209_v16, %v1177_v41 }
 0x146   : > { %v741_v15 = vmul.u32 2146121005, %v677_v22  ;;  %v628_v29 = vshrl.u32 %v564_v24, 16  ;;  %v563_v30 = vadd.s32 2246822507, %v499_v23  ;;  %v4240_v59 = vadd.s32 %v292_v38, %v3880_v3 }
 0x147   : > { %v1915_v34 = vxor.u32 %v1851_v11, %v1787_v48  ;;  %v870_v21 = vxor.u32 %v806_v63, %v742_v9  ;;  %v1394_v50 = vshrl.u32 %v1362_v28, 16  ;;  %v1273_v8 = vmul.u32 2146121005, %v1241_v18 }
 0x148   : > { %v805_v35 = vshrl.u32 %v741_v15, 15  ;;  %v692_v36 = vxor.u32 %v628_v29, %v564_v24  ;;  %v627_v37 = vshrl.u32 %v563_v30, 16  ;;  %v395_v40 = vmul.u32 2654435769, %v331_v25 }
 0x149   : > { %vm1979_vm15 = vcmp.gt.u32.totalorder %v1915_v34, 429496729  ;;  %v934_v17 = vmul.u32 2221713035, %v870_v21  ;;  %v1426_v26 = vxor.u32 %v1394_v50, %v1362_v28  ;;  %v1305_v43 = vshrl.u32 %v1273_v8, 15  ;;  %v2058_v34 = vld [vmem:[%s3868_s30 + $0x138] sm:$0xff] }
 0x14a   : > { %v2299_v45 = vsel %vm1979_vm15, %v2235_v52, 0.0  ;;  %v869_v60 = vxor.u32 %v805_v35, %v741_v15  ;;  %v756_v47 = vmul.u32 2146121005, %v692_v36  ;;  %v691_v49 = vxor.u32 %v627_v37, %v563_v30  ;;  %v2057_v50 = vld [vmem:[%s3868_s30 + $0x130] sm:$0xff] }
 0x14b   : > { %2387 = vadd.xlane.f32.xlu0 %v2299_v45  ;;  %v998_v39 = vshrl.u32 %v934_v17, 16  ;;  %v1458_v61 = vadd.s32 %v1426_v26, %v3930_v46  ;;  %v1337_v51 = vxor.u32 %v1305_v43, %v1273_v8  ;;  %v460_v53 = vadd.s32 %v3910_v20, %v395_v40 }
 0x14c   : > { %v933_v55 = vmul.u32 2221713035, %v869_v60  ;;  %v820_v33 = vshrl.u32 %v756_v47, 15  ;;  %v755_v54 = vmul.u32 2146121005, %v691_v49 }
 0x14d   : > { %v1062_v19 = vxor.u32 %v998_v39, %v934_v17  ;;  %v1490_v62 = vmul.u32 2654435769, %v1458_v61  ;;  %v1369_v0 = vmul.u32 2221713035, %v1337_v51  ;;  %v524_v56 = vadd.s32 2246822507, %v460_v53 }
 0x14e   : > { %v997_v7 = vshrl.u32 %v933_v55, 16  ;;  %v884_v41 = vxor.u32 %v820_v33, %v756_v47  ;;  %v819_v2 = vshrl.u32 %v755_v54, 15  ;;  %v1093_v4 = vmul.u32 2654435769, %v4226_v14 }
 0x14f   : > { %v1522_v6 = vshrl.u32 %v1490_v62, 16  ;;  %v1738_v48 = vadd.s32 %v1062_v19, %v3930_v46  ;;  %v1401_v44 = vshrl.u32 %v1369_v0, 16  ;;  %v588_v9 = vshrl.u32 %v524_v56, 16 }
 0x150   : > { %v1061_v10 = vxor.u32 %v997_v7, %v933_v55  ;;  %v948_v16 = vmul.u32 2221713035, %v884_v41  ;;  %v883_v22 = vxor.u32 %v819_v2, %v755_v54  ;;  %v1125_v38 = vadd.s32 %v1093_v4, %v3910_v20 }
 0x151   : > { %v1554_v24 = vxor.u32 %v1522_v6, %v1490_v62  ;;  %v1802_v23 = vmul.u32 2654435769, %v1738_v48  ;;  %v1433_v25 = vxor.u32 %v1401_v44, %v1369_v0  ;;  %v652_v11 = vxor.u32 %v588_v9, %v524_v56  ;;  %v2072_v48 = vld [vmem:[%s3868_s30 + $0x1a8] sm:$0xff]  ;;  %v2071_v9 = vld [vmem:[%s3868_s30 + $0x1a0] sm:$0xff] }
 0x152   : > { %v1737_v63 = vadd.s32 %v1061_v10, %v3930_v46  ;;  %v1012_v28 = vshrl.u32 %v948_v16, 16  ;;  %v947_v14 = vmul.u32 2221713035, %v883_v22  ;;  %v1157_v18 = vadd.s32 3266489909, %v1125_v38 }
 0x153   : > { %vm1586_vm0 = vcmp.gt.u32.totalorder %v1554_v24, 429496729  ;;  %v1866_v52 = vshrl.u32 %v1802_v23, 16  ;;  %v1465_v15 = vadd.s32 %v1433_v25, %v3930_v46  ;;  %v716_v29 = vmul.u32 2146121005, %v652_v11 }
 0x154   : > { %v1686_v30 = vsel %vm1586_vm0, %v1623_v32, 0.0  ;;  %v1801_v21 = vmul.u32 2654435769, %v1737_v63  ;;  %v1076_v8 = vxor.u32 %v1012_v28, %v948_v16  ;;  %v1011_v35 = vshrl.u32 %v947_v14, 16 }
 0x155   : > { %v1930_v36 = vxor.u32 %v1866_v52, %v1802_v23  ;;  %v2162_v37 = vrot.slane %v1686_v30, %v3894_v12  ;;  %v1497_v40 = vmul.u32 2654435769, %v1465_v15  ;;  %v780_v17 = vshrl.u32 %v716_v29, 15 }
 0x156   : > { %v1865_v26 = vshrl.u32 %v1801_v21, 16  ;;  %v1752_v43 = vadd.s32 %v1076_v8, %v3930_v46  ;;  %v1075_v45 = vxor.u32 %v1011_v35, %v947_v14  ;;  %v1189_v60 = vshrl.u32 %v1157_v18, 16 }
 0x157   : > { %vm1994_vm1 = vcmp.gt.u32.totalorder %v1930_v36, 429496729  ;;  %v2250_v47 = vmul.f32 %v2162_v37, %v2058_v34  ;;  %v2249_v49 = vmul.f32 %v2162_v37, %v2057_v50  ;;  %v1529_v39 = vshrl.u32 %v1497_v40, 16 }
 0x158   : > { %v1929_v32 = vxor.u32 %v1865_v26, %v1801_v21  ;;  %v1816_v61 = vmul.u32 2654435769, %v1752_v43  ;;  %v1751_v51 = vadd.s32 %v1075_v45, %v3930_v46  ;;  %v844_v53 = vxor.u32 %v780_v17, %v716_v29 }
 0x159   : > { %v2314_v55 = vsel %vm1994_vm1, %v2250_v47, 0.0  ;;  %v1561_v33 = vxor.u32 %v1529_v39, %v1497_v40  ;;  %v1221_v54 = vxor.u32 %v1189_v60, %v1157_v18  ;;  %v394_v19 = vmul.u32 2654435769, %v4240_v59 }
 0x15a   : > { %2417 = vadd.xlane.f32.xlu1 %v2314_v55  ;;  %vm1993_vm2 = vcmp.gt.u32.totalorder %v1929_v32, 429496729  ;;  %v1880_v62 = vshrl.u32 %v1816_v61, 16  ;;  %v1815_v0 = vmul.u32 2654435769, %v1751_v51  ;;  %v251_v56 = vadd.s32 13, %v3877_v1 }
 0x15b   : > { %v2313_v7 = vsel %vm1993_vm2, %v2249_v49, 0.0  ;;  %vm1593_vm3 = vcmp.gt.u32.totalorder %v1561_v33, 429496729  ;;  %v908_v41 = vmul.u32 2221713035, %v844_v53  ;;  %v459_v2 = vadd.s32 %v3910_v20, %v394_v19 }
 0x15c   : > { %2415 = vadd.xlane.f32.xlu0 %v2313_v7  ;;  %v1693_v4 = vsel %vm1593_vm3, %v1629_v42, 0.0  ;;  %v1944_v6 = vxor.u32 %v1880_v62, %v1816_v61  ;;  %v1879_v44 = vshrl.u32 %v1815_v0, 16  ;;  %v1253_v59 = vmul.u32 2146121005, %v1221_v54 }
 0x15d   : > { %v2190_v10 = vrot.slane %v1693_v4, %v3894_v12  ;;  %v972_v16 = vshrl.u32 %v908_v41, 16  ;;  %v523_v22 = vadd.s32 2246822507, %v459_v2  ;;  %v299_v38 = vmul.u32 16, %v251_v56 }
 0x15e   : > { %vm2008_vm4 = vcmp.gt.u32.totalorder %v1944_v6, 429496729  ;;  %v1943_v24 = vxor.u32 %v1879_v44, %v1815_v0  ;;  %v1285_v23 = vshrl.u32 %v1253_v59, 15  ;;  %v1100_v25 = vmul.u32 2654435769, %v251_v56 }
 0x15f   : > { %v2264_v11 = vmul.f32 %v2190_v10, %v2072_v48  ;;  %v2263_v63 = vmul.f32 %v2190_v10, %v2071_v9  ;;  %v1036_v28 = vxor.u32 %v972_v16, %v908_v41  ;;  %v587_v14 = vshrl.u32 %v523_v22, 16 }
 0x160   : > { %vm2007_vm5 = vcmp.gt.u32.totalorder %v1943_v24, 429496729  ;;  %v1317_v27 = vxor.u32 %v1285_v23, %v1253_v59  ;;  %v345_v42 = vadd.s32 %v299_v38, %v3897_v13  ;;  %v1132_v18 = vadd.s32 %v1100_v25, %v3910_v20 }
 0x161   : > { %v2328_v52 = vsel %vm2008_vm4, %v2264_v11, 0.0  ;;  %v2327_v15 = vsel %vm2007_vm5, %v2263_v63, 0.0  ;;  %v1712_v29 = vadd.s32 %v1036_v28, %v3930_v46  ;;  %v651_v30 = vxor.u32 %v587_v14, %v523_v22 }
 0x162   : > { %2445 = vadd.xlane.f32.xlu1 %v2328_v52  ;;  %2443 = vadd.xlane.f32.xlu0 %v2327_v15  ;;  %v1349_v34 = vmul.u32 2221713035, %v1317_v27  ;;  %v409_v21 = vmul.u32 2654435769, %v345_v42  ;;  %v1164_v50 = vadd.s32 3266489909, %v1132_v18  ;;  %v344_v8 = vadd.s32 %v299_v38, %v3880_v3 }
 0x163   : > { %v1612_v35 = vrot.slane %v4174_v58, 6  ;;  %v1776_v36 = vmul.u32 2654435769, %v1712_v29  ;;  %v715_v37 = vmul.u32 2146121005, %v651_v30  ;;  %v258_v40 = vadd.s32 20, %v3877_v1 }
 0x164   : > { %v1381_v17 = vshrl.u32 %v1349_v34, 16  ;;  %v474_v26 = vadd.s32 %v3910_v20, %v409_v21  ;;  %v1196_v43 = vshrl.u32 %v1164_v50, 16  ;;  %v408_v45 = vmul.u32 2654435769, %v344_v8 }
 0x165   : > { %v1840_v60 = vshrl.u32 %v1776_v36, 16  ;;  %v779_v47 = vshrl.u32 %v715_v37, 15  ;;  %v306_v49 = vmul.u32 16, %v258_v40  ;;  %v1107_v39 = vmul.u32 2654435769, %v258_v40  ;;  %v2031_v40 = vld [vmem:[%s3868_s30 + $0x60] sm:$0xff] }
 0x166   : > { %v1413_v32 = vxor.u32 %v1381_v17, %v1349_v34  ;;  %v538_v61 = vadd.s32 2246822507, %v474_v26  ;;  %v1228_v51 = vxor.u32 %v1196_v43, %v1164_v50  ;;  %v473_v53 = vadd.s32 %v3910_v20, %v408_v45  ;;  %v2032_v34 = vld [vmem:[%s3868_s30 + $0x68] sm:$0xff] }
 0x167   : > { %v4270_v55 = vxor.u32 %v1840_v60, %v1776_v36  ;;  %v843_v58 = vxor.u32 %v779_v47, %v715_v37  ;;  %v359_v33 = vadd.s32 %v306_v49, %v3897_v13  ;;  %v1139_v54 = vadd.s32 %v1107_v39, %v3910_v20 }
 0x168   : > { %v1445_v19 = vadd.s32 %v1413_v32, %v3930_v46  ;;  %v602_v62 = vshrl.u32 %v538_v61, 16  ;;  %v1260_v0 = vmul.u32 2146121005, %v1228_v51  ;;  %v537_v56 = vadd.s32 2246822507, %v473_v53 }
 0x169   : > { %v907_v7 = vmul.u32 2221713035, %v843_v58  ;;  %v1618_v41 = vrot.slane %v4181_v57, 5  ;;  %v423_v2 = vmul.u32 2654435769, %v359_v33  ;;  %v358_v4 = vadd.s32 %v306_v49, %v3880_v3 }
 0x16a   : > { %v1477_v6 = vmul.u32 2654435769, %v1445_v19  ;;  %v666_v48 = vxor.u32 %v602_v62, %v538_v61  ;;  %v1292_v44 = vshrl.u32 %v1260_v0, 15  ;;  %v601_v9 = vshrl.u32 %v537_v56, 16 }
 0x16b   : > { %vm1968_vm6 = vcmp.gt.u32.totalorder %v4270_v55, 429496729  ;;  %v971_v59 = vshrl.u32 %v907_v7, 16  ;;  %v488_v10 = vadd.s32 %v3910_v20, %v423_v2  ;;  %v1171_v16 = vadd.s32 3266489909, %v1139_v54 }
 0x16c   : > { %v1509_v22 = vshrl.u32 %v1477_v6, 16  ;;  %v730_v38 = vmul.u32 2146121005, %v666_v48  ;;  %v1324_v24 = vxor.u32 %v1292_v44, %v1260_v0  ;;  %v665_v23 = vxor.u32 %v601_v9, %v537_v56 }
 0x16d   : > { %v1035_v25 = vxor.u32 %v971_v59, %v907_v7  ;;  %v552_v11 = vadd.s32 2246822507, %v488_v10  ;;  %v1203_v63 = vshrl.u32 %v1171_v16, 16  ;;  %v422_v28 = vmul.u32 2654435769, %v358_v4 }
 0x16e   : > { %v1541_v14 = vxor.u32 %v1509_v22, %v1477_v6  ;;  %v794_v27 = vshrl.u32 %v730_v38, 15  ;;  %v1356_v42 = vmul.u32 2221713035, %v1324_v24  ;;  %v729_v18 = vmul.u32 2146121005, %v665_v23 }
 0x16f   : > { %v1711_v52 = vadd.s32 %v1035_v25, %v3930_v46  ;;  %v616_v15 = vshrl.u32 %v552_v11, 16  ;;  %v1235_v29 = vxor.u32 %v1203_v63, %v1171_v16  ;;  %v487_v30 = vadd.s32 %v3910_v20, %v422_v28 }
 0x170   : > { %vm1573_vm7 = vcmp.gt.u32.totalorder %v1541_v14, 429496729  ;;  %v858_v21 = vxor.u32 %v794_v27, %v730_v38  ;;  %v1388_v50 = vshrl.u32 %v1356_v42, 16  ;;  %v793_v8 = vshrl.u32 %v729_v18, 15 }
 0x171   : > { %v1673_v36 = vsel %vm1573_vm7, %v1612_v35, 0.0  ;;  %v1775_v37 = vmul.u32 2654435769, %v1711_v52  ;;  %v680_v17 = vxor.u32 %v616_v15, %v552_v11  ;;  %v1267_v26 = vmul.u32 2146121005, %v1235_v29  ;;  %v2046_v29 = vld [vmem:[%s3868_s30 + $0xd8] sm:$0xff] }
 0x172   : > { %v2110_v43 = vrot.slane %v1673_v36, %v3894_v12  ;;  %v922_v45 = vmul.u32 2221713035, %v858_v21  ;;  %v1420_v60 = vxor.u32 %v1388_v50, %v1356_v42  ;;  %v857_v47 = vxor.u32 %v793_v8, %v729_v18 }
 0x173   : > { %v1839_v49 = vshrl.u32 %v1775_v37, 16  ;;  %v744_v39 = vmul.u32 2146121005, %v680_v17  ;;  %v1299_v32 = vshrl.u32 %v1267_v26, 15  ;;  %v551_v61 = vadd.s32 2246822507, %v487_v30 }
 0x174   : > { %v2224_v51 = vmul.f32 %v2110_v43, %v2032_v34  ;;  %v2223_v53 = vmul.f32 %v2110_v43, %v2031_v40  ;;  %v986_v58 = vshrl.u32 %v922_v45, 16  ;;  %v1452_v33 = vadd.s32 %v1420_v60, %v3930_v46  ;;  %v2045_v34 = vld [vmem:[%s3868_s30 + $0xd0] sm:$0xff] }
 0x175   : > { %v1903_v54 = vxor.u32 %v1839_v49, %v1775_v37  ;;  %v921_v35 = vmul.u32 2221713035, %v857_v47  ;;  %v808_v19 = vshrl.u32 %v744_v39, 15  ;;  %v1331_v62 = vxor.u32 %v1299_v32, %v1267_v26 }
 0x176   : > { %v2288_v0 = vsel %vm1968_vm6, %v2224_v51, 0.0  ;;  %v1050_v56 = vxor.u32 %v986_v58, %v922_v45  ;;  %v1484_v7 = vmul.u32 2654435769, %v1452_v33  ;;  %v615_v2 = vshrl.u32 %v551_v61, 16 }
 0x177   : > { %2365 = vadd.xlane.f32.xlu1 %v2288_v0  ;;  %vm1967_vm8 = vcmp.gt.u32.totalorder %v1903_v54, 429496729  ;;  %v985_v4 = vshrl.u32 %v921_v35, 16  ;;  %v872_v6 = vxor.u32 %v808_v19, %v744_v39  ;;  %v1363_v48 = vmul.u32 2221713035, %v1331_v62 }
 0x178   : > { %v2287_v44 = vsel %vm1967_vm8, %v2223_v53, 0.0  ;;  %v1516_v9 = vshrl.u32 %v1484_v7, 16  ;;  %v1726_v59 = vadd.s32 %v1050_v56, %v3930_v46  ;;  %v679_v10 = vxor.u32 %v615_v2, %v551_v61 }
 0x179   : > { %2363 = vadd.xlane.f32.xlu0 %v2287_v44  ;;  %v1049_v16 = vxor.u32 %v985_v4, %v921_v35  ;;  %v936_v22 = vmul.u32 2221713035, %v872_v6  ;;  %v1395_v38 = vshrl.u32 %v1363_v48, 16  ;;  %v265_v55 = vadd.s32 27, %v3877_v1  ;;  %v2060_v6 = vld [vmem:[%s3868_s30 + $0x148] sm:$0xff] }
 0x17a   : > { %v1548_v24 = vxor.u32 %v1516_v9, %v1484_v7  ;;  %v1790_v23 = vmul.u32 2654435769, %v1726_v59  ;;  %v1624_v25 = vrot.slane %v4212_v31, 4  ;;  %v743_v11 = vmul.u32 2146121005, %v679_v10  ;;  %v2059_v10 = vld [vmem:[%s3868_s30 + $0x140] sm:$0xff] }
 0x17b   : > { %v1725_v63 = vadd.s32 %v1049_v16, %v3930_v46  ;;  %v1000_v28 = vshrl.u32 %v936_v22, 16  ;;  %v1427_v14 = vxor.u32 %v1395_v38, %v1363_v48  ;;  %v313_v27 = vmul.u32 16, %v265_v55 }
 0x17c   : > { %vm1580_vm9 = vcmp.gt.u32.totalorder %v1548_v24, 429496729  ;;  %v1854_v42 = vshrl.u32 %v1790_v23, 16  ;;  %v807_v18 = vshrl.u32 %v743_v11, 15  ;;  %v1114_v52 = vmul.u32 2654435769, %v265_v55 }
 0x17d   : > { %v1680_v15 = vsel %vm1580_vm9, %v1618_v41, 0.0  ;;  %v1789_v30 = vmul.u32 2654435769, %v1725_v63  ;;  %v1064_v21 = vxor.u32 %v1000_v28, %v936_v22  ;;  %v1459_v50 = vadd.s32 %v1427_v14, %v3930_v46 }
 0x17e   : > { %v1918_v31 = vxor.u32 %v1854_v42, %v1790_v23  ;;  %v2138_v8 = vrot.slane %v1680_v15, %v3894_v12  ;;  %v871_v36 = vxor.u32 %v807_v18, %v743_v11  ;;  %v373_v37 = vadd.s32 %v313_v27, %v3897_v13 }
 0x17f   : > { %v1853_v40 = vshrl.u32 %v1789_v30, 16  ;;  %v1491_v17 = vmul.u32 2654435769, %v1459_v50  ;;  %v1740_v26 = vadd.s32 %v1064_v21, %v3930_v46  ;;  %v1146_v43 = vadd.s32 %v1114_v52, %v3910_v20 }
 0x180   : > { %vm1982_vm10 = vcmp.gt.u32.totalorder %v1918_v31, 429496729  ;;  %v2238_v57 = vmul.f32 %v2138_v8, %v2046_v29  ;;  %v2237_v41 = vmul.f32 %v2138_v8, %v2045_v34  ;;  %v935_v45 = vmul.u32 2221713035, %v871_v36 }
 0x181   : > { %v1917_v60 = vxor.u32 %v1853_v40, %v1789_v30  ;;  %v1523_v47 = vshrl.u32 %v1491_v17, 16  ;;  %v1804_v49 = vmul.u32 2654435769, %v1740_v26  ;;  %v437_v39 = vmul.u32 2654435769, %v373_v37 }
 0x182   : > { %v2302_v32 = vsel %vm1982_vm10, %v2238_v57, 0.0  ;;  %v999_v61 = vshrl.u32 %v935_v45, 16  ;;  %v1178_v51 = vadd.s32 3266489909, %v1146_v43  ;;  %v372_v53 = vadd.s32 %v313_v27, %v3880_v3 }
 0x183   : > { %2393 = vadd.xlane.f32.xlu1 %v2302_v32  ;;  %vm1981_vm11 = vcmp.gt.u32.totalorder %v1917_v60, 429496729  ;;  %v1555_v58 = vxor.u32 %v1523_v47, %v1491_v17  ;;  %v1868_v33 = vshrl.u32 %v1804_v49, 16  ;;  %v502_v54 = vadd.s32 %v3910_v20, %v437_v39 }
 0x184   : > { %v2301_v35 = vsel %vm1981_vm11, %v2237_v41, 0.0  ;;  %v1063_v19 = vxor.u32 %v999_v61, %v935_v45  ;;  %v1210_v62 = vshrl.u32 %v1178_v51, 16  ;;  %v436_v0 = vmul.u32 2654435769, %v372_v53 }
 0x185   : > { %2391 = vadd.xlane.f32.xlu0 %v2301_v35  ;;  %vm1587_vm12 = vcmp.gt.u32.totalorder %v1555_v58, 429496729  ;;  %v1932_v56 = vxor.u32 %v1868_v33, %v1804_v49  ;;  %v566_v7 = vadd.s32 2246822507, %v502_v54  ;;  %v245_v2 = vadd.s32 7, %v3877_v1 }
 0x186   : > { %v1687_v4 = vsel %vm1587_vm12, %v1624_v25, 0.0  ;;  %v1739_v48 = vadd.s32 %v1063_v19, %v3930_v46  ;;  %v1242_v44 = vxor.u32 %v1210_v62, %v1178_v51  ;;  %v501_v9 = vadd.s32 %v3910_v20, %v436_v0 }
 0x187   : > { %vm1996_vm13 = vcmp.gt.u32.totalorder %v1932_v56, 429496729  ;;  %v2166_v59 = vrot.slane %v1687_v4, %v3894_v12  ;;  %v630_v16 = vshrl.u32 %v566_v7, 16  ;;  %v293_v22 = vmul.u32 16, %v245_v2 }
 0x188   : > { %v1803_v38 = vmul.u32 2654435769, %v1739_v48  ;;  %v1274_v55 = vmul.u32 2146121005, %v1242_v44  ;;  %v565_v24 = vadd.s32 2246822507, %v501_v9 }
 0x189   : > { %v2252_v23 = vmul.f32 %v2166_v59, %v2060_v6  ;;  %v694_v11 = vxor.u32 %v630_v16, %v566_v7  ;;  %v333_v63 = vadd.s32 %v293_v22, %v3897_v13  ;;  %v1094_v27 = vmul.u32 2654435769, %v245_v2 }
 0x18a   : > { %v1867_v25 = vshrl.u32 %v1803_v38, 16  ;;  %v1306_v28 = vshrl.u32 %v1274_v55, 15  ;;  %v629_v14 = vshrl.u32 %v565_v24, 16  ;;  %v2251_v18 = vmul.f32 %v2166_v59, %v2059_v10 }
 0x18b   : > { %v2316_v42 = vsel %vm1996_vm13, %v2252_v23, 0.0  ;;  %v758_v52 = vmul.u32 2146121005, %v694_v11  ;;  %v397_v15 = vmul.u32 2654435769, %v333_v63  ;;  %v1126_v21 = vadd.s32 %v1094_v27, %v3910_v20 }
 0x18c   : > { %2421 = vadd.xlane.f32.xlu1 %v2316_v42  ;;  %v1931_v29 = vxor.u32 %v1867_v25, %v1803_v38  ;;  %v1338_v30 = vxor.u32 %v1306_v28, %v1274_v55  ;;  %v693_v34 = vxor.u32 %v629_v14, %v565_v24  ;;  %v332_v8 = vadd.s32 %v293_v22, %v3880_v3  ;;  %v4326_v28 = vld [vmem:[%s3862_s6 + $0x18] sm:$0xff] }
 0x18d   : > { %v822_v50 = vshrl.u32 %v758_v52, 15  ;;  %v462_v31 = vadd.s32 %v3910_v20, %v397_v15  ;;  %v4313_v36 = vadd.s32 14, %v3877_v1  ;;  %v1158_v57 = vadd.s32 3266489909, %v1126_v21 }
 0x18e   : > { %vm1995_vm14 = vcmp.gt.u32.totalorder %v1931_v29, 429496729  ;;  %v1370_v37 = vmul.u32 2221713035, %v1338_v30  ;;  %v757_v40 = vmul.u32 2146121005, %v693_v34 }
 0x18f   : > { %v2315_v17 = vsel %vm1995_vm14, %v2251_v18, 0.0  ;;  %v886_v26 = vxor.u32 %v822_v50, %v758_v52  ;;  %v526_v43 = vadd.s32 2246822507, %v462_v31  ;;  %v396_v60 = vmul.u32 2654435769, %v332_v8 }
 0x190   : > { %2419 = vadd.xlane.f32.xlu0 %v2315_v17  ;;  %v1402_v41 = vshrl.u32 %v1370_v37, 16  ;;  %v821_v45 = vshrl.u32 %v757_v40, 15  ;;  %v300_v47 = vmul.u32 16, %v4313_v36  ;;  %v1190_v32 = vshrl.u32 %v1158_v57, 16 }
 0x191   : > { %v950_v49 = vmul.u32 2221713035, %v886_v26  ;;  %v590_v39 = vshrl.u32 %v526_v43, 16  ;;  %v1101_v61 = vmul.u32 2654435769, %v4313_v36  ;;  %v461_v58 = vadd.s32 %v3910_v20, %v396_v60 }
 0x192   : > { %v1434_v51 = vxor.u32 %v1402_v41, %v1370_v37  ;;  %v885_v53 = vxor.u32 %v821_v45, %v757_v40  ;;  %v347_v33 = vadd.s32 %v300_v47, %v3897_v13  ;;  %v1222_v19 = vxor.u32 %v1190_v32, %v1158_v57  ;;  %v2073_v57 = vld [vmem:[%s3868_s30 + $0x1b0] sm:$0xff] }
 0x193   : > { %v1014_v54 = vshrl.u32 %v950_v49, 16  ;;  %v654_v35 = vxor.u32 %v590_v39, %v526_v43  ;;  %v1133_v62 = vadd.s32 %v1101_v61, %v3910_v20  ;;  %v525_v7 = vadd.s32 2246822507, %v461_v58  ;;  %v2074_v43 = vld [vmem:[%s3868_s30 + $0x1b8] sm:$0xff] }
 0x194   : > { %v1466_v0 = vadd.s32 %v1434_v51, %v3930_v46  ;;  %v949_v56 = vmul.u32 2221713035, %v885_v53  ;;  %v411_v2 = vmul.u32 2654435769, %v347_v33  ;;  %v1630_v14 = vrot.slane %v4326_v28, 3 }
 0x195   : > { %v1078_v4 = vxor.u32 %v1014_v54, %v950_v49  ;;  %v718_v6 = vmul.u32 2146121005, %v654_v35  ;;  %v1254_v48 = vmul.u32 2146121005, %v1222_v19  ;;  %v1165_v44 = vadd.s32 3266489909, %v1133_v62 }
 0x196   : > { %v1498_v9 = vmul.u32 2654435769, %v1466_v0  ;;  %v1013_v59 = vshrl.u32 %v949_v56, 16  ;;  %v589_v10 = vshrl.u32 %v525_v7, 16  ;;  %v476_v16 = vadd.s32 %v3910_v20, %v411_v2 }
 0x197   : > { %v1754_v22 = vadd.s32 %v1078_v4, %v3930_v46  ;;  %v782_v38 = vshrl.u32 %v718_v6, 15  ;;  %v1286_v55 = vshrl.u32 %v1254_v48, 15  ;;  %v1197_v24 = vshrl.u32 %v1165_v44, 16 }
 0x198   : > { %v1530_v23 = vshrl.u32 %v1498_v9, 16  ;;  %v1077_v11 = vxor.u32 %v1013_v59, %v949_v56  ;;  %v653_v63 = vxor.u32 %v589_v10, %v525_v7  ;;  %v540_v25 = vadd.s32 2246822507, %v476_v16 }
 0x199   : > { %v1818_v27 = vmul.u32 2654435769, %v1754_v22  ;;  %v846_v42 = vxor.u32 %v782_v38, %v718_v6  ;;  %v1318_v18 = vxor.u32 %v1286_v55, %v1254_v48  ;;  %v1229_v31 = vxor.u32 %v1197_v24, %v1165_v44  ;;  %v3603_v55 = vld [vmem:[%s3862_s6] sm:$0xff] }
 0x19a   : > { %v1562_v52 = vxor.u32 %v1530_v23, %v1498_v9  ;;  %v1753_v15 = vadd.s32 %v1077_v11, %v3930_v46  ;;  %v717_v29 = vmul.u32 2146121005, %v653_v63  ;;  %v604_v30 = vshrl.u32 %v540_v25, 16 }
 0x19b   : > { %v1882_v34 = vshrl.u32 %v1818_v27, 16  ;;  %v910_v21 = vmul.u32 2221713035, %v846_v42  ;;  %v1350_v50 = vmul.u32 2221713035, %v1318_v18  ;;  %v346_v4 = vadd.s32 %v300_v47, %v3880_v3 }
 0x19c   : > { %vm1594_vm15 = vcmp.gt.u32.totalorder %v1562_v52, 429496729  ;;  %v1817_v8 = vmul.u32 2654435769, %v1753_v15  ;;  %v781_v37 = vshrl.u32 %v717_v29, 15  ;;  %v668_v40 = vxor.u32 %v604_v30, %v540_v25 }
 0x19d   : > { %v1694_v17 = vsel %vm1594_vm15, %v1630_v14, 0.0  ;;  %v1946_v26 = vxor.u32 %v1882_v34, %v1818_v27  ;;  %v974_v41 = vshrl.u32 %v910_v21, 16  ;;  %v1382_v45 = vshrl.u32 %v1350_v50, 16 }
 0x19e   : > { %v2194_v60 = vrot.slane %v1694_v17, %v3894_v12  ;;  %v1881_v49 = vshrl.u32 %v1817_v8, 16  ;;  %v845_v39 = vxor.u32 %v781_v37, %v717_v29  ;;  %v732_v32 = vmul.u32 2146121005, %v668_v40  ;;  %v2033_v37 = vld [vmem:[%s3868_s30 + $0x70] sm:$0xff] }
 0x19f   : > { %vm2010_vm0 = vcmp.gt.u32.totalorder %v1946_v26, 429496729  ;;  %v1038_v61 = vxor.u32 %v974_v41, %v910_v21  ;;  %v1414_v51 = vxor.u32 %v1382_v45, %v1350_v50  ;;  %v1261_v53 = vmul.u32 2146121005, %v1229_v31  ;;  %v2034_v31 = vld [vmem:[%s3868_s30 + $0x78] sm:$0xff] }
 0x1a0   : > { %v2266_v58 = vmul.f32 %v2194_v60, %v2074_v43  ;;  %v1945_v33 = vxor.u32 %v1881_v49, %v1817_v8  ;;  %v2265_v54 = vmul.f32 %v2194_v60, %v2073_v57  ;;  %v909_v35 = vmul.u32 2221713035, %v845_v39 }
 0x1a1   : > { %v1446_v19 = vadd.s32 %v1414_v51, %v3930_v46  ;;  %v1714_v62 = vadd.s32 %v1038_v61, %v3930_v46  ;;  %v796_v0 = vshrl.u32 %v732_v32, 15  ;;  %v1293_v56 = vshrl.u32 %v1261_v53, 15 }
 0x1a2   : > { %v2330_v7 = vsel %vm2010_vm0, %v2266_v58, 0.0  ;;  %vm2009_vm1 = vcmp.gt.u32.totalorder %v1945_v33, 429496729  ;;  %v973_v2 = vshrl.u32 %v909_v35, 16  ;;  %v410_v16 = vmul.u32 2654435769, %v346_v4 }
 0x1a3   : > { %2449 = vadd.xlane.f32.xlu1 %v2330_v7  ;;  %v2329_v6 = vsel %vm2009_vm1, %v2265_v54, 0.0  ;;  %v1478_v48 = vmul.u32 2654435769, %v1446_v19  ;;  %v1778_v44 = vmul.u32 2654435769, %v1714_v62  ;;  %v860_v9 = vxor.u32 %v796_v0, %v732_v32  ;;  %v4353_v4 = vld [vmem:[%s3862_s6 + $0x8] sm:$0xff] }
 0x1a4   : > { %2447 = vadd.xlane.f32.xlu0 %v2329_v6  ;;  %v1037_v59 = vxor.u32 %v973_v2, %v909_v35  ;;  %v1325_v10 = vxor.u32 %v1293_v56, %v1261_v53  ;;  %v259_v22 = vadd.s32 21, %v3877_v1  ;;  %v1613_v24 = vrot.slane %v3603_v55, 7 }
 0x1a5   : > { %v1510_v38 = vshrl.u32 %v1478_v48, 16  ;;  %v1842_v23 = vshrl.u32 %v1778_v44, 16  ;;  %v924_v11 = vmul.u32 2221713035, %v860_v9  ;;  %v475_v47 = vadd.s32 %v3910_v20, %v410_v16 }
 0x1a6   : > { %v1713_v63 = vadd.s32 %v1037_v59, %v3930_v46  ;;  %v1357_v36 = vmul.u32 2221713035, %v1325_v10  ;;  %v307_v25 = vmul.u32 16, %v259_v22  ;;  %v1619_v6 = vrot.slane %v4353_v4, 6 }
 0x1a7   : > { %v1542_v14 = vxor.u32 %v1510_v38, %v1478_v48  ;;  %v1906_v27 = vxor.u32 %v1842_v23, %v1778_v44  ;;  %v988_v42 = vshrl.u32 %v924_v11, 16  ;;  %v1108_v18 = vmul.u32 2654435769, %v259_v22 }
 0x1a8   : > { %v1777_v52 = vmul.u32 2654435769, %v1713_v63  ;;  %v1389_v15 = vshrl.u32 %v1357_v36, 16  ;;  %v539_v29 = vadd.s32 2246822507, %v475_v47  ;;  %v361_v30 = vadd.s32 %v307_v25, %v3897_v13 }
 0x1a9   : > { %vm1574_vm2 = vcmp.gt.u32.totalorder %v1542_v14, 429496729  ;;  %vm1970_vm3 = vcmp.gt.u32.totalorder %v1906_v27, 429496729  ;;  %v1052_v34 = vxor.u32 %v988_v42, %v924_v11  ;;  %v1140_v21 = vadd.s32 %v1108_v18, %v3910_v20 }
 0x1aa   : > { %v1674_v50 = vsel %vm1574_vm2, %v1613_v24, 0.0  ;;  %v1841_v8 = vshrl.u32 %v1777_v52, 16  ;;  %v1421_v40 = vxor.u32 %v1389_v15, %v1357_v36  ;;  %v603_v17 = vshrl.u32 %v539_v29, 16  ;;  %v2048_v36 = vld [vmem:[%s3868_s30 + $0xe8] sm:$0xff] }
 0x1ab   : > { %v2114_v26 = vrot.slane %v1674_v50, %v3894_v12  ;;  %v1728_v43 = vadd.s32 %v1052_v34, %v3930_v46  ;;  %v425_v57 = vmul.u32 2654435769, %v361_v30  ;;  %v1172_v41 = vadd.s32 3266489909, %v1140_v21 }
 0x1ac   : > { %v1905_v45 = vxor.u32 %v1841_v8, %v1777_v52  ;;  %v1453_v60 = vadd.s32 %v1421_v40, %v3930_v46  ;;  %v667_v49 = vxor.u32 %v603_v17, %v539_v29  ;;  %v360_v39 = vadd.s32 %v307_v25, %v3880_v3 }
 0x1ad   : > { %v2226_v32 = vmul.f32 %v2114_v26, %v2034_v31  ;;  %v2225_v61 = vmul.f32 %v2114_v26, %v2033_v37  ;;  %v1792_v51 = vmul.u32 2654435769, %v1728_v43  ;;  %v490_v53 = vadd.s32 %v3910_v20, %v425_v57  ;;  %v2047_v31 = vld [vmem:[%s3868_s30 + $0xe0] sm:$0xff]  ;;  %v4365_v37 = vld [vmem:[%s3862_s6 + $0x10] sm:$0xff] }
 0x1ae   : > { %vm1969_vm4 = vcmp.gt.u32.totalorder %v1905_v45, 429496729  ;;  %v1485_v58 = vmul.u32 2654435769, %v1453_v60  ;;  %v731_v33 = vmul.u32 2146121005, %v667_v49 }
 0x1af   : > { %v2290_v54 = vsel %vm1970_vm3, %v2226_v32, 0.0  ;;  %v2289_v35 = vsel %vm1969_vm4, %v2225_v61, 0.0  ;;  %v1856_v19 = vshrl.u32 %v1792_v51, 16  ;;  %v554_v62 = vadd.s32 2246822507, %v490_v53 }
 0x1b0   : > { %2369 = vadd.xlane.f32.xlu1 %v2290_v54  ;;  %2367 = vadd.xlane.f32.xlu0 %v2289_v35  ;;  %v1517_v0 = vshrl.u32 %v1485_v58, 16  ;;  %v795_v56 = vshrl.u32 %v731_v33, 15  ;;  %v1204_v7 = vshrl.u32 %v1172_v41, 16  ;;  %v424_v2 = vmul.u32 2654435769, %v360_v39 }
 0x1b1   : > { %v1920_v48 = vxor.u32 %v1856_v19, %v1792_v51  ;;  %v618_v44 = vshrl.u32 %v554_v62, 16  ;;  %v266_v9 = vadd.s32 28, %v3877_v1  ;;  %v1625_v40 = vrot.slane %v4365_v37, 5 }
 0x1b2   : > { %v1549_v59 = vxor.u32 %v1517_v0, %v1485_v58  ;;  %v859_v10 = vxor.u32 %v795_v56, %v731_v33  ;;  %v1236_v16 = vxor.u32 %v1204_v7, %v1172_v41  ;;  %v489_v22 = vadd.s32 %v3910_v20, %v424_v2 }
 0x1b3   : > { %vm1984_vm5 = vcmp.gt.u32.totalorder %v1920_v48, 429496729  ;;  %v682_v38 = vxor.u32 %v618_v44, %v554_v62  ;;  %v314_v55 = vmul.u32 16, %v266_v9  ;;  %v1115_v24 = vmul.u32 2654435769, %v266_v9 }
 0x1b4   : > { %vm1581_vm6 = vcmp.gt.u32.totalorder %v1549_v59, 429496729  ;;  %v923_v23 = vmul.u32 2221713035, %v859_v10  ;;  %v1268_v11 = vmul.u32 2146121005, %v1236_v16 }
 0x1b5   : > { %v1681_v63 = vsel %vm1581_vm6, %v1619_v6, 0.0  ;;  %v746_v47 = vmul.u32 2146121005, %v682_v38  ;;  %v553_v25 = vadd.s32 2246822507, %v489_v22  ;;  %v375_v14 = vadd.s32 %v314_v55, %v3897_v13 }
 0x1b6   : > { %v2142_v27 = vrot.slane %v1681_v63, %v3894_v12  ;;  %v987_v42 = vshrl.u32 %v923_v23, 16  ;;  %v1300_v18 = vshrl.u32 %v1268_v11, 15  ;;  %v1147_v52 = vadd.s32 %v1115_v24, %v3910_v20 }
 0x1b7   : > { %v810_v15 = vshrl.u32 %v746_v47, 15  ;;  %v617_v29 = vshrl.u32 %v553_v25, 16  ;;  %v439_v30 = vmul.u32 2654435769, %v375_v14  ;;  %v374_v34 = vadd.s32 %v314_v55, %v3880_v3 }
 0x1b8   : > { %v2240_v21 = vmul.f32 %v2142_v27, %v2048_v36  ;;  %v1051_v50 = vxor.u32 %v987_v42, %v923_v23  ;;  %v1332_v8 = vxor.u32 %v1300_v18, %v1268_v11  ;;  %v1179_v57 = vadd.s32 3266489909, %v1147_v52 }
 0x1b9   : > { %v874_v17 = vxor.u32 %v810_v15, %v746_v47  ;;  %v681_v26 = vxor.u32 %v617_v29, %v553_v25  ;;  %v504_v43 = vadd.s32 %v3910_v20, %v439_v30  ;;  %v438_v49 = vmul.u32 2654435769, %v374_v34 }
 0x1ba   : > { %v2304_v41 = vsel %vm1984_vm5, %v2240_v21, 0.0  ;;  %v1727_v45 = vadd.s32 %v1051_v50, %v3930_v46  ;;  %v1364_v60 = vmul.u32 2221713035, %v1332_v8  ;;  %v2239_v39 = vmul.f32 %v2142_v27, %v2047_v31 }
 0x1bb   : > { %2397 = vadd.xlane.f32.xlu1 %v2304_v41  ;;  %v938_v32 = vmul.u32 2221713035, %v874_v17  ;;  %v745_v61 = vmul.u32 2146121005, %v681_v26  ;;  %v568_v51 = vadd.s32 2246822507, %v504_v43  ;;  %v503_v54 = vadd.s32 %v3910_v20, %v438_v49 }
 0x1bc   : > { %v1791_v53 = vmul.u32 2654435769, %v1727_v45  ;;  %v1396_v58 = vshrl.u32 %v1364_v60, 16  ;;  %v1211_v33 = vshrl.u32 %v1179_v57, 16  ;;  %v4373_v0 = vadd.s32 15, %v3877_v1 }
 0x1bd   : > { %v1002_v35 = vshrl.u32 %v938_v32, 16  ;;  %v809_v19 = vshrl.u32 %v745_v61, 15  ;;  %v632_v62 = vshrl.u32 %v568_v51, 16  ;;  %v567_v6 = vadd.s32 2246822507, %v503_v54 }
 0x1be   : > { %v1855_v56 = vshrl.u32 %v1791_v53, 16  ;;  %v1428_v7 = vxor.u32 %v1396_v58, %v1364_v60  ;;  %v1243_v2 = vxor.u32 %v1211_v33, %v1179_v57  ;;  %v301_v59 = vmul.u32 16, %v4373_v0  ;;  %v2062_v60 = vld [vmem:[%s3868_s30 + $0x158] sm:$0xff] }
 0x1bf   : > { %v1066_v48 = vxor.u32 %v1002_v35, %v938_v32  ;;  %v873_v44 = vxor.u32 %v809_v19, %v745_v61  ;;  %v696_v9 = vxor.u32 %v632_v62, %v568_v51  ;;  %v631_v38 = vshrl.u32 %v567_v6, 16 }
 0x1c0   : > { %v1919_v10 = vxor.u32 %v1855_v56, %v1791_v53  ;;  %v1460_v16 = vadd.s32 %v1428_v7, %v3930_v46  ;;  %v1275_v22 = vmul.u32 2146121005, %v1243_v2  ;;  %v349_v11 = vadd.s32 %v301_v59, %v3897_v13  ;;  %v2061_v53 = vld [vmem:[%s3868_s30 + $0x150] sm:$0xff] }
 0x1c1   : > { %v1742_v55 = vadd.s32 %v1066_v48, %v3930_v46  ;;  %v937_v24 = vmul.u32 2221713035, %v873_v44  ;;  %v760_v23 = vmul.u32 2146121005, %v696_v9  ;;  %v695_v47 = vxor.u32 %v631_v38, %v567_v6 }
 0x1c2   : > { %vm1983_vm7 = vcmp.gt.u32.totalorder %v1919_v10, 429496729  ;;  %v1492_v63 = vmul.u32 2654435769, %v1460_v16  ;;  %v1307_v36 = vshrl.u32 %v1275_v22, 15  ;;  %v1631_v33 = vrot.slane %v4326_v28, 4 }
 0x1c3   : > { %v2303_v25 = vsel %vm1983_vm7, %v2239_v39, 0.0  ;;  %v1806_v14 = vmul.u32 2654435769, %v1742_v55  ;;  %v1001_v27 = vshrl.u32 %v937_v24, 16  ;;  %v824_v42 = vshrl.u32 %v760_v23, 15 }
 0x1c4   : > { %2395 = vadd.xlane.f32.xlu0 %v2303_v25  ;;  %v1524_v18 = vshrl.u32 %v1492_v63, 16  ;;  %v1339_v52 = vxor.u32 %v1307_v36, %v1275_v22  ;;  %v759_v15 = vmul.u32 2146121005, %v695_v47  ;;  %v413_v29 = vmul.u32 2654435769, %v349_v11 }
 0x1c5   : > { %v1870_v30 = vshrl.u32 %v1806_v14, 16  ;;  %v1065_v34 = vxor.u32 %v1001_v27, %v937_v24  ;;  %v888_v21 = vxor.u32 %v824_v42, %v760_v23  ;;  %v1102_v50 = vmul.u32 2654435769, %v4373_v0 }
 0x1c6   : > { %v1556_v31 = vxor.u32 %v1524_v18, %v1492_v63  ;;  %v1371_v8 = vmul.u32 2221713035, %v1339_v52  ;;  %v823_v17 = vshrl.u32 %v759_v15, 15  ;;  %v478_v26 = vadd.s32 %v3910_v20, %v413_v29 }
 0x1c7   : > { %v1934_v43 = vxor.u32 %v1870_v30, %v1806_v14  ;;  %v1741_v57 = vadd.s32 %v1065_v34, %v3930_v46  ;;  %v952_v41 = vmul.u32 2221713035, %v888_v21  ;;  %v1134_v45 = vadd.s32 %v1102_v50, %v3910_v20  ;;  %v2076_v21 = vld [vmem:[%s3868_s30 + $0x1c8] sm:$0xff] }
 0x1c8   : > { %vm1588_vm8 = vcmp.gt.u32.totalorder %v1556_v31, 429496729  ;;  %v1403_v49 = vshrl.u32 %v1371_v8, 16  ;;  %v887_v39 = vxor.u32 %v823_v17, %v759_v15  ;;  %v542_v32 = vadd.s32 2246822507, %v478_v26 }
 0x1c9   : > { %v1688_v61 = vsel %vm1588_vm8, %v1625_v40, 0.0  ;;  %v1805_v51 = vmul.u32 2654435769, %v1741_v57  ;;  %v1016_v58 = vshrl.u32 %v952_v41, 16  ;;  %vm1998_vm9 = vcmp.gt.u32.totalorder %v1934_v43, 429496729 }
 0x1ca   : > { %v2170_v54 = vrot.slane %v1688_v61, %v3894_v12  ;;  %v1435_v35 = vxor.u32 %v1403_v49, %v1371_v8  ;;  %v951_v19 = vmul.u32 2221713035, %v887_v39  ;;  %v606_v62 = vshrl.u32 %v542_v32, 16 }
 0x1cb   : > { %v1869_v56 = vshrl.u32 %v1805_v51, 16  ;;  %v1080_v7 = vxor.u32 %v1016_v58, %v952_v41  ;;  %v1166_v2 = vadd.s32 3266489909, %v1134_v45  ;;  %v348_v23 = vadd.s32 %v301_v59, %v3880_v3  ;;  %v2075_v41 = vld [vmem:[%s3868_s30 + $0x1c0] sm:$0xff] }
 0x1cc   : > { %v2254_v6 = vmul.f32 %v2170_v54, %v2062_v60  ;;  %v2253_v48 = vmul.f32 %v2170_v54, %v2061_v53  ;;  %v1467_v44 = vadd.s32 %v1435_v35, %v3930_v46  ;;  %v1015_v9 = vshrl.u32 %v951_v19, 16 }
 0x1cd   : > { %v1933_v40 = vxor.u32 %v1869_v56, %v1805_v51  ;;  %v1756_v10 = vadd.s32 %v1080_v7, %v3930_v46  ;;  %v670_v16 = vxor.u32 %v606_v62, %v542_v32  ;;  %v1198_v22 = vshrl.u32 %v1166_v2, 16 }
 0x1ce   : > { %v2318_v38 = vsel %vm1998_vm9, %v2254_v6, 0.0  ;;  %v1499_v55 = vmul.u32 2654435769, %v1467_v44  ;;  %v1079_v24 = vxor.u32 %v1015_v9, %v951_v19  ;;  %v412_v27 = vmul.u32 2654435769, %v348_v23 }
 0x1cf   : > { %2425 = vadd.xlane.f32.xlu1 %v2318_v38  ;;  %vm1997_vm10 = vcmp.gt.u32.totalorder %v1933_v40, 429496729  ;;  %v1820_v11 = vmul.u32 2654435769, %v1756_v10  ;;  %v734_v63 = vmul.u32 2146121005, %v670_v16  ;;  %v1230_v36 = vxor.u32 %v1198_v22, %v1166_v2 }
 0x1d0   : > { %v2317_v47 = vsel %vm1997_vm10, %v2253_v48, 0.0  ;;  %v1531_v25 = vshrl.u32 %v1499_v55, 16  ;;  %v1755_v14 = vadd.s32 %v1079_v24, %v3930_v46  ;;  %v260_v15 = vadd.s32 22, %v3877_v1 }
 0x1d1   : > { %2423 = vadd.xlane.f32.xlu0 %v2317_v47  ;;  %v1884_v42 = vshrl.u32 %v1820_v11, 16  ;;  %v798_v18 = vshrl.u32 %v734_v63, 15  ;;  %v1262_v52 = vmul.u32 2146121005, %v1230_v36  ;;  %v1620_v29 = vrot.slane %v4353_v4, 7 }
 0x1d2   : > { %v1563_v0 = vxor.u32 %v1531_v25, %v1499_v55  ;;  %v1819_v59 = vmul.u32 2654435769, %v1755_v14  ;;  %v477_v30 = vadd.s32 %v3910_v20, %v412_v27  ;;  %v308_v8 = vmul.u32 16, %v260_v15 }
 0x1d3   : > { %v1948_v34 = vxor.u32 %v1884_v42, %v1820_v11  ;;  %v862_v50 = vxor.u32 %v798_v18, %v734_v63  ;;  %v1294_v31 = vshrl.u32 %v1262_v52, 15  ;;  %v4402_v43 = vadd.s32 29, %v3877_v1 }
 0x1d4   : > { %vm1595_vm11 = vcmp.gt.u32.totalorder %v1563_v0, 429496729  ;;  %v1883_v17 = vshrl.u32 %v1819_v59, 16  ;;  %v541_v26 = vadd.s32 2246822507, %v477_v30  ;;  %v363_v61 = vadd.s32 %v308_v8, %v3897_v13 }
 0x1d5   : > { %v1695_v57 = vsel %vm1595_vm11, %v1631_v33, 0.0  ;;  %vm2012_vm12 = vcmp.gt.u32.totalorder %v1948_v34, 429496729  ;;  %v926_v45 = vmul.u32 2221713035, %v862_v50  ;;  %v1326_v60 = vxor.u32 %v1294_v31, %v1262_v52 }
 0x1d6   : > { %v2198_v49 = vrot.slane %v1695_v57, %v3894_v12  ;;  %v1947_v39 = vxor.u32 %v1883_v17, %v1819_v59  ;;  %v605_v32 = vshrl.u32 %v541_v26, 16  ;;  %v1109_v58 = vmul.u32 2654435769, %v260_v15 }
 0x1d7   : > { %v990_v51 = vshrl.u32 %v926_v45, 16  ;;  %v1358_v53 = vmul.u32 2221713035, %v1326_v60  ;;  %v362_v54 = vadd.s32 %v308_v8, %v3880_v3  ;;  %v427_v7 = vmul.u32 2654435769, %v363_v61 }
 0x1d8   : > { %v2268_v35 = vmul.f32 %v2198_v49, %v2076_v21  ;;  %vm2011_vm13 = vcmp.gt.u32.totalorder %v1947_v39, 429496729  ;;  %v2267_v19 = vmul.f32 %v2198_v49, %v2075_v41  ;;  %v669_v62 = vxor.u32 %v605_v32, %v541_v26 }
 0x1d9   : > { %v1054_v33 = vxor.u32 %v990_v51, %v926_v45  ;;  %v1390_v56 = vshrl.u32 %v1358_v53, 16  ;;  %v1141_v2 = vadd.s32 %v1109_v58, %v3910_v20  ;;  %v426_v9 = vmul.u32 2654435769, %v362_v54 }
 0x1da   : > { %v2332_v6 = vsel %vm2012_vm12, %v2268_v35, 0.0  ;;  %v2331_v48 = vsel %vm2011_vm13, %v2267_v19, 0.0  ;;  %v733_v44 = vmul.u32 2146121005, %v669_v62  ;;  %v492_v16 = vadd.s32 %v3910_v20, %v427_v7  ;;  %v4421_v35 = vpop.xlane.xlu1 %2343  ;;  %v2050_v62 = vld [vmem:[%s3868_s30 + $0xf8] sm:$0xff] }
 0x1db   : > { %2453 = vadd.xlane.f32.xlu1 %v2332_v6  ;;  %2451 = vadd.xlane.f32.xlu0 %v2331_v48  ;;  %v1422_v40 = vxor.u32 %v1390_v56, %v1358_v53  ;;  %v1730_v10 = vadd.s32 %v1054_v33, %v3930_v46  ;;  %v1173_v22 = vadd.s32 3266489909, %v1141_v2  ;;  %v491_v55 = vadd.s32 %v3910_v20, %v426_v9  ;;  %v2049_v56 = vld [vmem:[%s3868_s30 + $0xf0] sm:$0xff] }
 0x1dc   : > { %v797_v38 = vshrl.u32 %v733_v44, 15  ;;  %v315_v24 = vmul.u32 16, %v4402_v43  ;;  %v1116_v23 = vmul.u32 2654435769, %v4402_v43  ;;  %v556_v36 = vadd.s32 2246822507, %v492_v16 }
 0x1dd   : > { %v1454_v11 = vadd.s32 %v1422_v40, %v3930_v46  ;;  %v1794_v63 = vmul.u32 2654435769, %v1730_v10  ;;  %v1205_v47 = vshrl.u32 %v1173_v22, 16  ;;  %v555_v14 = vadd.s32 2246822507, %v491_v55  ;;  %v4429_v40 = vpop.xlane.xlu0 %2339 }
 0x1de   : > { %v861_v25 = vxor.u32 %v797_v38, %v733_v44  ;;  %v377_v27 = vadd.s32 %v315_v24, %v3897_v13  ;;  %v1148_v42 = vadd.s32 %v1116_v23, %v3910_v20  ;;  %v620_v15 = vshrl.u32 %v556_v36, 16 }
 0x1df   : > { %v1486_v18 = vmul.u32 2654435769, %v1454_v11  ;;  %v1858_v52 = vshrl.u32 %v1794_v63, 16  ;;  %v1237_v0 = vxor.u32 %v1205_v47, %v1173_v22  ;;  %v1626_v30 = vrot.slane %v4365_v37, 6 }
 0x1e0   : > { %v925_v59 = vmul.u32 2221713035, %v861_v25  ;;  %v619_v34 = vshrl.u32 %v555_v14, 16  ;;  %v441_v21 = vmul.u32 2654435769, %v377_v27  ;;  %v684_v8 = vxor.u32 %v620_v15, %v556_v36 }
 0x1e1   : > { %v1518_v50 = vshrl.u32 %v1486_v18, 16  ;;  %v1922_v31 = vxor.u32 %v1858_v52, %v1794_v63  ;;  %v1269_v17 = vmul.u32 2146121005, %v1237_v0  ;;  %v1180_v41 = vadd.s32 3266489909, %v1148_v42  ;;  %v4433_v42 = vpop.xlane.xlu1 %2345 }
 0x1e2   : > { %v989_v26 = vshrl.u32 %v925_v59, 16  ;;  %v683_v43 = vxor.u32 %v619_v34, %v555_v14  ;;  %v506_v57 = vadd.s32 %v3910_v20, %v441_v21  ;;  %v748_v60 = vmul.u32 2146121005, %v684_v8  ;;  %v4437_v8 = vpop.xlane.xlu0 %2341 }
 0x1e3   : > { %v1550_v45 = vxor.u32 %v1518_v50, %v1486_v18  ;;  %vm1986_vm14 = vcmp.gt.u32.totalorder %v1922_v31, 429496729  ;;  %v1301_v49 = vshrl.u32 %v1269_v17, 15  ;;  %v1212_v51 = vshrl.u32 %v1180_v41, 16 }
 0x1e4   : > { %v1053_v39 = vxor.u32 %v989_v26, %v925_v59  ;;  %v747_v32 = vmul.u32 2146121005, %v683_v43  ;;  %v570_v61 = vadd.s32 2246822507, %v506_v57  ;;  %v812_v53 = vshrl.u32 %v748_v60, 15 }
 0x1e5   : > { %vm1582_vm15 = vcmp.gt.u32.totalorder %v1550_v45, 429496729  ;;  %v1333_v58 = vxor.u32 %v1301_v49, %v1269_v17  ;;  %v376_v54 = vadd.s32 %v315_v24, %v3880_v3  ;;  %v1244_v9 = vxor.u32 %v1212_v51, %v1180_v41 }
 0x1e6   : > { %v1682_v19 = vsel %vm1582_vm15, %v1620_v29, 0.0  ;;  %v1729_v33 = vadd.s32 %v1053_v39, %v3930_v46  ;;  %v811_v7 = vshrl.u32 %v747_v32, 15  ;;  %v634_v2 = vshrl.u32 %v570_v61, 16 }
 0x1e7   : > { %v2146_v6 = vrot.slane %v1682_v19, %v3894_v12  ;;  %v876_v48 = vxor.u32 %v812_v53, %v748_v60  ;;  %v1365_v44 = vmul.u32 2221713035, %v1333_v58  ;;  %v440_v38 = vmul.u32 2654435769, %v376_v54  ;;  %v4442_v54 = vpop.xlane.xlu1 %2349 }
 0x1e8   : > { %v1793_v10 = vmul.u32 2654435769, %v1729_v33  ;;  %v875_v16 = vxor.u32 %v811_v7, %v747_v32  ;;  %v698_v22 = vxor.u32 %v634_v2, %v570_v61  ;;  %v1276_v27 = vmul.u32 2146121005, %v1244_v9 }
 0x1e9   : > { %v2242_v55 = vmul.f32 %v2146_v6, %v2050_v62  ;;  %v2241_v4 = vmul.f32 %v2146_v6, %v2049_v56  ;;  %v940_v29 = vmul.u32 2221713035, %v876_v48  ;;  %v1397_v24 = vshrl.u32 %v1365_v44, 16 }
 0x1ea   : > { %v1857_v23 = vshrl.u32 %v1793_v10, 16  ;;  %v939_v11 = vmul.u32 2221713035, %v875_v16  ;;  %v762_v63 = vmul.u32 2146121005, %v698_v22  ;;  %v505_v36 = vadd.s32 %v3910_v20, %v440_v38 }
 0x1eb   : > { %v2306_v47 = vsel %vm1986_vm14, %v2242_v55, 0.0  ;;  %v1004_v25 = vshrl.u32 %v940_v29, 16  ;;  %v1429_v14 = vxor.u32 %v1397_v24, %v1365_v44  ;;  %v1308_v21 = vshrl.u32 %v1276_v27, 15  ;;  %v4445_v44 = vpop.xlane.xlu0 %2347  ;;  %v2064_v24 = vld [vmem:[%s3868_s30 + $0x168] sm:$0xff] }
 0x1ec   : > { %2401 = vadd.xlane.f32.xlu1 %v2306_v47  ;;  %v1921_v18 = vxor.u32 %v1857_v23, %v1793_v10  ;;  %v1003_v52 = vshrl.u32 %v939_v11, 16  ;;  %v826_v15 = vshrl.u32 %v762_v63, 15  ;;  %v569_v0 = vadd.s32 2246822507, %v505_v36 }
 0x1ed   : > { %v1068_v59 = vxor.u32 %v1004_v25, %v940_v29  ;;  %v1461_v34 = vadd.s32 %v1429_v14, %v3930_v46  ;;  %v261_v50 = vadd.s32 23, %v3877_v1  ;;  %v1340_v45 = vxor.u32 %v1308_v21, %v1276_v27  ;;  %v4456_v27 = vpop.xlane.xlu1 %2373 }
 0x1ee   : > { %vm1985_vm0 = vcmp.gt.u32.totalorder %v1921_v18, 429496729  ;;  %v1067_v31 = vxor.u32 %v1003_v52, %v939_v11  ;;  %v890_v17 = vxor.u32 %v826_v15, %v762_v63  ;;  %v633_v26 = vshrl.u32 %v569_v0, 16  ;;  %v2063_v11 = vld [vmem:[%s3868_s30 + $0x160] sm:$0xff] }
 0x1ef   : > { %v2305_v43 = vsel %vm1985_vm0, %v2241_v4, 0.0  ;;  %v1493_v57 = vmul.u32 2654435769, %v1461_v34  ;;  %v1744_v41 = vadd.s32 %v1068_v59, %v3930_v46  ;;  %v309_v32 = vmul.u32 16, %v261_v50  ;;  %v4459_v21 = vpop.xlane.xlu0 %2371 }
 0x1f0   : > { %2399 = vadd.xlane.f32.xlu0 %v2305_v43  ;;  %v1743_v60 = vadd.s32 %v1067_v31, %v3930_v46  ;;  %v954_v49 = vmul.u32 2221713035, %v890_v17  ;;  %v697_v39 = vxor.u32 %v633_v26, %v569_v0  ;;  %v1372_v53 = vmul.u32 2221713035, %v1340_v45 }
 0x1f1   : > { %v1525_v61 = vshrl.u32 %v1493_v57, 16  ;;  %v1808_v51 = vmul.u32 2654435769, %v1744_v41  ;;  %v1632_v58 = vrot.slane %v4326_v28, 5  ;;  %v365_v56 = vadd.s32 %v309_v32, %v3897_v13 }
 0x1f2   : > { %v1807_v19 = vmul.u32 2654435769, %v1743_v60  ;;  %v1018_v62 = vshrl.u32 %v954_v49, 16  ;;  %v761_v33 = vmul.u32 2146121005, %v697_v39  ;;  %v1404_v6 = vshrl.u32 %v1372_v53, 16 }
 0x1f3   : > { %v1557_v7 = vxor.u32 %v1525_v61, %v1493_v57  ;;  %v1872_v2 = vshrl.u32 %v1808_v51, 16  ;;  %v1110_v48 = vmul.u32 2654435769, %v261_v50  ;;  %v429_v22 = vmul.u32 2654435769, %v365_v56 }
 0x1f4   : > { %v1871_v9 = vshrl.u32 %v1807_v19, 16  ;;  %v1082_v10 = vxor.u32 %v1018_v62, %v954_v49  ;;  %v825_v16 = vshrl.u32 %v761_v33, 15  ;;  %v1436_v55 = vxor.u32 %v1404_v6, %v1372_v53  ;;  %v4465_v62 = vpop.xlane.xlu1 %2377 }
 0x1f5   : > { %vm1589_vm1 = vcmp.gt.u32.totalorder %v1557_v7, 429496729  ;;  %v1936_v38 = vxor.u32 %v1872_v2, %v1808_v51  ;;  %v1142_v4 = vadd.s32 %v1110_v48, %v3910_v20  ;;  %v494_v14 = vadd.s32 %v3910_v20, %v429_v22  ;;  %v2077_v7 = vld [vmem:[%s3868_s30 + $0x1d0] sm:$0xff] }
 0x1f6   : > { %v1689_v29 = vsel %vm1589_vm1, %v1626_v30, 0.0  ;;  %v1935_v23 = vxor.u32 %v1871_v9, %v1807_v19  ;;  %v1758_v63 = vadd.s32 %v1082_v10, %v3930_v46  ;;  %v889_v36 = vxor.u32 %v825_v16, %v761_v33  ;;  %v2078_v33 = vld [vmem:[%s3868_s30 + $0x1d8] sm:$0xff]  ;;  %v4473_v16 = vpop.xlane.xlu0 %2375 }
 0x1f7   : > { %vm2000_vm2 = vcmp.gt.u32.totalorder %v1936_v38, 429496729  ;;  %v2174_v47 = vrot.slane %v1689_v29, %v3894_v12  ;;  %v1468_v25 = vadd.s32 %v1436_v55, %v3930_v46  ;;  %v364_v30 = vadd.s32 %v309_v32, %v3880_v3 }
 0x1f8   : > { %vm1999_vm3 = vcmp.gt.u32.totalorder %v1935_v23, 429496729  ;;  %v1822_v18 = vmul.u32 2654435769, %v1758_v63  ;;  %v953_v52 = vmul.u32 2221713035, %v889_v36  ;;  %v4480_v28 = vpop.xlane.xlu1 %2353 }
 0x1f9   : > { %v2256_v15 = vmul.f32 %v2174_v47, %v2064_v24  ;;  %v2255_v0 = vmul.f32 %v2174_v47, %v2063_v11  ;;  %v1500_v59 = vmul.u32 2654435769, %v1468_v25  ;;  %v558_v34 = vadd.s32 2246822507, %v494_v14 }
 0x1fa   : > { %v1886_v50 = vshrl.u32 %v1822_v18, 16  ;;  %v1017_v31 = vshrl.u32 %v953_v52, 16  ;;  %v1174_v17 = vadd.s32 3266489909, %v1142_v4  ;;  %v428_v26 = vmul.u32 2654435769, %v364_v30 }
 0x1fb   : > { %v2320_v43 = vsel %vm2000_vm2, %v2256_v15, 0.0  ;;  %v2319_v57 = vsel %vm1999_vm3, %v2255_v0, 0.0  ;;  %v1532_v41 = vshrl.u32 %v1500_v59, 16  ;;  %v622_v45 = vshrl.u32 %v558_v34, 16 }
 0x1fc   : > { %2429 = vadd.xlane.f32.xlu1 %v2320_v43  ;;  %2427 = vadd.xlane.f32.xlu0 %v2319_v57  ;;  %v1950_v60 = vxor.u32 %v1886_v50, %v1822_v18  ;;  %v1081_v49 = vxor.u32 %v1017_v31, %v953_v52  ;;  %v1206_v39 = vshrl.u32 %v1174_v17, 16  ;;  %v493_v32 = vadd.s32 %v3910_v20, %v428_v26 }
 0x1fd   : > { %v1564_v61 = vxor.u32 %v1532_v41, %v1500_v59  ;;  %v686_v51 = vxor.u32 %v622_v45, %v558_v34  ;;  %v1627_v53 = vrot.slane %v4365_v37, 7  ;;  %v268_v19 = vadd.s32 30, %v3877_v1 }
 0x1fe   : > { %vm2014_vm4 = vcmp.gt.u32.totalorder %v1950_v60, 429496729  ;;  %v1757_v56 = vadd.s32 %v1081_v49, %v3930_v46  ;;  %v1238_v2 = vxor.u32 %v1206_v39, %v1174_v17  ;;  %v557_v6 = vadd.s32 2246822507, %v493_v32  ;;  %v4485_v17 = vpop.xlane.xlu0 %2351 }
 0x1ff   : > { %vm1596_vm5 = vcmp.gt.u32.totalorder %v1564_v61, 429496729  ;;  %v750_v48 = vmul.u32 2146121005, %v686_v51  ;;  %v316_v9 = vmul.u32 16, %v268_v19  ;;  %v4471_v10 = vadd.s32 31, %v3877_v1 }
 0x200   : > { %v1696_v22 = vsel %vm1596_vm5, %v1632_v58, 0.0  ;;  %v1821_v38 = vmul.u32 2654435769, %v1757_v56  ;;  %v1270_v55 = vmul.u32 2146121005, %v1238_v2  ;;  %v621_v4 = vshrl.u32 %v557_v6, 16  ;;  %v4491_v2 = vpop.xlane.xlu1 %2381 }
 0x201   : > { %v2202_v29 = vrot.slane %v1696_v22, %v3894_v12  ;;  %v814_v24 = vshrl.u32 %v750_v48, 15  ;;  %v379_v23 = vadd.s32 %v316_v9, %v3897_v13  ;;  %v1117_v11 = vmul.u32 2654435769, %v268_v19 }
 0x202   : > { %v1885_v63 = vshrl.u32 %v1821_v38, 16  ;;  %v1302_v36 = vshrl.u32 %v1270_v55, 15  ;;  %v685_v47 = vxor.u32 %v621_v4, %v557_v6  ;;  %v378_v1 = vadd.s32 %v316_v9, %v3880_v3 }
 0x203   : > { %v2270_v25 = vmul.f32 %v2202_v29, %v2078_v33  ;;  %v2269_v14 = vmul.f32 %v2202_v29, %v2077_v7  ;;  %v878_v18 = vxor.u32 %v814_v24, %v750_v48  ;;  %v443_v52 = vmul.u32 2654435769, %v379_v23  ;;  %v4495_v24 = vpop.xlane.xlu0 %2379 }
 0x204   : > { %v1949_v58 = vxor.u32 %v1885_v63, %v1821_v38  ;;  %v1334_v30 = vxor.u32 %v1302_v36, %v1270_v55  ;;  %v749_v15 = vmul.u32 2146121005, %v685_v47  ;;  %v1149_v0 = vadd.s32 %v1117_v11, %v3910_v20 }
 0x205   : > { %v2334_v59 = vsel %vm2014_vm4, %v2270_v25, 0.0  ;;  %v942_v34 = vmul.u32 2221713035, %v878_v18  ;;  %v508_v50 = vadd.s32 %v3910_v20, %v443_v52  ;;  %v442_v31 = vmul.u32 2654435769, %v378_v1 }
 0x206   : > { %2457 = vadd.xlane.f32.xlu1 %v2334_v59  ;;  %vm2013_vm6 = vcmp.gt.u32.totalorder %v1949_v58, 429496729  ;;  %v1366_v26 = vmul.u32 2221713035, %v1334_v30  ;;  %v813_v43 = vshrl.u32 %v749_v15, 15  ;;  %v317_v57 = vmul.u32 16, %v4471_v10 }
 0x207   : > { %v2333_v41 = vsel %vm2013_vm6, %v2269_v14, 0.0  ;;  %v1006_v45 = vshrl.u32 %v942_v34, 16  ;;  %v572_v49 = vadd.s32 2246822507, %v508_v50  ;;  %v1181_v39 = vadd.s32 3266489909, %v1149_v0  ;;  %v4499_v0 = vpop.xlane.xlu1 %2405 }
 0x208   : > { %2455 = vadd.xlane.f32.xlu0 %v2333_v41  ;;  %v1398_v32 = vshrl.u32 %v1366_v26, 16  ;;  %v877_v60 = vxor.u32 %v813_v43, %v749_v15  ;;  %v507_v61 = vadd.s32 %v3910_v20, %v442_v31  ;;  %v381_v51 = vadd.s32 %v317_v57, %v3897_v13 }
 0x209   : > { %v1070_v19 = vxor.u32 %v1006_v45, %v942_v34  ;;  %v636_v33 = vshrl.u32 %v572_v49, 16  ;;  %v1213_v56 = vshrl.u32 %v1181_v39, 16  ;;  %v1118_v7 = vmul.u32 2654435769, %v4471_v10 }
 0x20a   : > { %v1430_v6 = vxor.u32 %v1398_v32, %v1366_v26  ;;  %v941_v48 = vmul.u32 2221713035, %v877_v60  ;;  %v571_v9 = vadd.s32 2246822507, %v507_v61  ;;  %v445_v22 = vmul.u32 2654435769, %v381_v51 }
 0x20b   : > { %v1746_v38 = vadd.s32 %v1070_v19, %v3930_v46  ;;  %v700_v55 = vxor.u32 %v636_v33, %v572_v49  ;;  %v1245_v4 = vxor.u32 %v1213_v56, %v1181_v39  ;;  %v1150_v29 = vadd.s32 %v1118_v7, %v3910_v20  ;;  %v4503_v49 = vpop.xlane.xlu0 %2403  ;;  %v2066_v7 = vld [vmem:[%s3868_s30 + $0x178] sm:$0xff] }
 0x20c   : > { %v1462_v13 = vadd.s32 %v1430_v6, %v3930_v46  ;;  %v1005_v23 = vshrl.u32 %v941_v48, 16  ;;  %v635_v11 = vshrl.u32 %v571_v9, 16  ;;  %v510_v10 = vadd.s32 %v3910_v20, %v445_v22 }
 0x20d   : > { %v1810_v63 = vmul.u32 2654435769, %v1746_v38  ;;  %v764_v36 = vmul.u32 2146121005, %v700_v55  ;;  %v1182_v47 = vadd.s32 3266489909, %v1150_v29  ;;  %v380_v45 = vadd.s32 %v317_v57, %v3880_v3  ;;  %v4509_v29 = vpop.xlane.xlu1 %2409 }
 0x20e   : > { %v1494_v1 = vmul.u32 2654435769, %v1462_v13  ;;  %v1069_v25 = vxor.u32 %v1005_v23, %v941_v48  ;;  %v1277_v14 = vmul.u32 2146121005, %v1245_v4  ;;  %v699_v18 = vxor.u32 %v635_v11, %v571_v9  ;;  %v2065_v57 = vld [vmem:[%s3868_s30 + $0x170] sm:$0xff] }
 0x20f   : > { %v1874_v52 = vshrl.u32 %v1810_v63, 16  ;;  %v828_v58 = vshrl.u32 %v764_v36, 15  ;;  %v574_v30 = vadd.s32 2246822507, %v510_v10  ;;  %v1214_v15 = vshrl.u32 %v1182_v47, 16 }
 0x210   : > { %v1526_v59 = vshrl.u32 %v1494_v1, 16  ;;  %v1745_v34 = vadd.s32 %v1069_v25, %v3930_v46  ;;  %v1309_v50 = vshrl.u32 %v1277_v14, 15  ;;  %v763_v31 = vmul.u32 2146121005, %v699_v18 }
 0x211   : > { %v892_v26 = vxor.u32 %v828_v58, %v764_v36  ;;  %v638_v43 = vshrl.u32 %v574_v30, 16  ;;  %v1246_v41 = vxor.u32 %v1214_v15, %v1182_v47  ;;  %v1938_v51 = vxor.u32 %v1874_v52, %v1810_v63 }
 0x212   : > { %v1558_v39 = vxor.u32 %v1526_v59, %v1494_v1  ;;  %v1809_v32 = vmul.u32 2654435769, %v1745_v34  ;;  %v1341_v60 = vxor.u32 %v1309_v50, %v1277_v14  ;;  %v827_v61 = vshrl.u32 %v763_v31, 15  ;;  %v4512_v1 = vpop.xlane.xlu0 %2407 }
 0x213   : > { %v956_v19 = vmul.u32 2221713035, %v892_v26  ;;  %v702_v33 = vxor.u32 %v638_v43, %v574_v30  ;;  %v1278_v56 = vmul.u32 2146121005, %v1246_v41  ;;  %vm2002_vm8 = vcmp.gt.u32.totalorder %v1938_v51, 429496729  ;;  %v4516_v41 = vpop.xlane.xlu1 %2357 }
 0x214   : > { %vm1590_vm7 = vcmp.gt.u32.totalorder %v1558_v39, 429496729  ;;  %v1873_v6 = vshrl.u32 %v1809_v32, 16  ;;  %v1373_v48 = vmul.u32 2221713035, %v1341_v60  ;;  %v891_v9 = vxor.u32 %v827_v61, %v763_v31 }
 0x215   : > { %v1690_v22 = vsel %vm1590_vm7, %v1627_v53, 0.0  ;;  %v1020_v38 = vshrl.u32 %v956_v19, 16  ;;  %v766_v55 = vmul.u32 2146121005, %v702_v33  ;;  %v1310_v4 = vshrl.u32 %v1278_v56, 15 }
 0x216   : > { %v2178_v13 = vrot.slane %v1690_v22, %v3894_v12  ;;  %v1937_v23 = vxor.u32 %v1873_v6, %v1809_v32  ;;  %v1405_v11 = vshrl.u32 %v1373_v48, 16  ;;  %v955_v10 = vmul.u32 2221713035, %v891_v9  ;;  %v4520_v33 = vpop.xlane.xlu0 %2355 }
 0x217   : > { %v1084_v63 = vxor.u32 %v1020_v38, %v956_v19  ;;  %v830_v36 = vshrl.u32 %v766_v55, 15  ;;  %v1342_v47 = vxor.u32 %v1310_v4, %v1278_v56  ;;  %v444_v34 = vmul.u32 2654435769, %v380_v45 }
 0x218   : > { %v2258_v25 = vmul.f32 %v2178_v13, %v2066_v7  ;;  %vm2001_vm9 = vcmp.gt.u32.totalorder %v1937_v23, 429496729  ;;  %v2257_v37 = vmul.f32 %v2178_v13, %v2065_v57  ;;  %v1437_v53 = vxor.u32 %v1405_v11, %v1373_v48  ;;  %v3606_v7 = vld [vmem:[%s3862_s6 + $0x18] sm:$0xff]  ;;  %v4525_v23 = vpop.xlane.xlu1 %2385 }
 0x219   : > { %v1760_v14 = vadd.s32 %v1084_v63, %v3930_v46  ;;  %v1019_v18 = vshrl.u32 %v955_v10, 16  ;;  %v894_v52 = vxor.u32 %v830_v36, %v766_v55  ;;  %v1374_v58 = vmul.u32 2221713035, %v1342_v47  ;;  %v2080_v63 = vld [vmem:[%s3868_s30 + $0x1e8] sm:$0xff]  ;;  %v2079_v47 = vld [vmem:[%s3868_s30 + $0x1e0] sm:$0xff] }
 0x21a   : > { %v2322_v30 = vsel %vm2002_vm8, %v2258_v25, 0.0  ;;  %v2321_v15 = vsel %vm2001_vm9, %v2257_v37, 0.0  ;;  %v1469_v59 = vadd.s32 %v1437_v53, %v3930_v46  ;;  %v509_v32 = vadd.s32 %v3910_v20, %v444_v34  ;;  %v4529_v53 = vpop.xlane.xlu0 %2383 }
 0x21b   : > { %2433 = vadd.xlane.f32.xlu1 %v2322_v30  ;;  %2431 = vadd.xlane.f32.xlu0 %v2321_v15  ;;  %v1824_v50 = vmul.u32 2654435769, %v1760_v14  ;;  %v1083_v31 = vxor.u32 %v1019_v18, %v955_v10  ;;  %v958_v26 = vmul.u32 2221713035, %v894_v52  ;;  %v1406_v43 = vshrl.u32 %v1374_v58, 16 }
 0x21c   : > { %v1501_v39 = vmul.u32 2654435769, %v1469_v59  ;;  %v573_v56 = vadd.s32 2246822507, %v509_v32  ;;  %v1633_v6 = vrot.slane %v3606_v7, 6  ;;  %v1634_v18 = vrot.slane %v3606_v7, 7 }
 0x21d   : > { %v1888_v60 = vshrl.u32 %v1824_v50, 16  ;;  %v1759_v61 = vadd.s32 %v1083_v31, %v3930_v46  ;;  %v1022_v51 = vshrl.u32 %v958_v26, 16  ;;  %v1438_v19 = vxor.u32 %v1406_v43, %v1374_v58 }
 0x21e   : > { %v1533_v45 = vshrl.u32 %v1501_v39, 16  ;;  %v637_v38 = vshrl.u32 %v573_v56, 16  ;;  %vm2860_vm0 = vcmask 130112   ;;  %vm3141_vm1 = vcmask 1041409  }
 0x21f   : > { %v1823_v48 = vmul.u32 2654435769, %v1759_v61  ;;  %v1086_v9 = vxor.u32 %v1022_v51, %v958_v26  ;;  %v1470_v22 = vadd.s32 %v1438_v19, %v3930_v46  ;;  %v1952_v20 = vxor.u32 %v1888_v60, %v1824_v50  ;;  %v4533_v26 = vpop.xlane.xlu1 %2413  ;;  %v2082_v60 = vld [vmem:[%s3868_s30 + $0x1f8] sm:$0xff]  ;;  %v4537_v19 = vpop.xlane.xlu0 %2411 }
 0x220   : > { %v1565_v57 = vxor.u32 %v1533_v45, %v1501_v39  ;;  %v701_v11 = vxor.u32 %v637_v38, %v573_v56  ;;  %v2469_v50 = vsub.f32 0.0, %v4421_v35  ;;  %v2467_v35 = vsub.f32 0.0, %v4429_v40 }
 0x221   : > { %v1887_v55 = vshrl.u32 %v1823_v48, 16  ;;  %v1502_v4 = vmul.u32 2654435769, %v1470_v22  ;;  %v1762_v13 = vadd.s32 %v1086_v9, %v3930_v46  ;;  %vm2016_vm11 = vcmp.gt.u32.totalorder %v1952_v20, 429496729 }
 0x222   : > { %vm1597_vm10 = vcmp.gt.u32.totalorder %v1565_v57, 429496729  ;;  %v765_v52 = vmul.u32 2146121005, %v701_v11  ;;  %v2535_v56 = vmul.f32 1.442695, %v2469_v50 }
 0x223   : > { %v1697_v10 = vsel %vm1597_vm10, %v1633_v6, 0.0  ;;  %v1951_v36 = vxor.u32 %v1887_v55, %v1823_v48  ;;  %v1534_v25 = vshrl.u32 %v1502_v4, 16  ;;  %v1826_v37 = vmul.u32 2654435769, %v1762_v13  ;;  %v4541_v22 = vpop.xlane.xlu1 %2437  ;;  %v4544_v20 = vpop.xlane.xlu0 %2435 }
 0x224   : > { %v2206_v14 = vrot.slane %v1697_v10, %v3894_v12  ;;  %v829_v34 = vshrl.u32 %v765_v52, 15  ;;  %v2470_v48 = vsub.f32 0.0, %v4433_v42  ;;  %3343 = vpow2.f32 %v2535_v56  ;;  %v2081_v10 = vld [vmem:[%s3868_s30 + $0x1f0] sm:$0xff] }
 0x225   : > { %vm2015_vm12 = vcmp.gt.u32.totalorder %v1951_v36, 429496729  ;;  %v1566_v58 = vxor.u32 %v1534_v25, %v1502_v4  ;;  %v1890_v30 = vshrl.u32 %v1826_v37, 16  ;;  %v2531_v38 = vmul.f32 1.442695, %v2467_v35 }
 0x226   : > { %v2272_v15 = vmul.f32 %v2206_v14, %v2080_v63  ;;  %v2271_v59 = vmul.f32 %v2206_v14, %v2079_v47  ;;  %v893_v61 = vxor.u32 %v829_v34, %v765_v52  ;;  %v2537_v4 = vmul.f32 1.442695, %v2470_v48 }
 0x227   : > { %vm1598_vm13 = vcmp.gt.u32.totalorder %v1566_v58, 429496729  ;;  %v1954_v31 = vxor.u32 %v1890_v30, %v1826_v37  ;;  %v2468_v40 = vsub.f32 0.0, %v4437_v8  ;;  %v2473_v11 = vsub.f32 0.0, %v4485_v17  ;;  %v4551_v47 = vpop.xlane.xlu1 %2441  ;;  %v4554_v14 = vpop.xlane.xlu0 %2439 }
 0x228   : > { %v2336_v43 = vsel %vm2016_vm11, %v2272_v15, 0.0  ;;  %v2335_v39 = vsel %vm2015_vm12, %v2271_v59, 0.0  ;;  %v1698_v32 = vsel %vm1598_vm13, %v1634_v18, 0.0  ;;  %v957_v45 = vmul.u32 2221713035, %v893_v61 }
 0x229   : > { %2461 = vadd.xlane.f32.xlu1 %v2336_v43  ;;  %2459 = vadd.xlane.f32.xlu0 %v2335_v39  ;;  %v2210_v51 = vrot.slane %v1698_v32, %v3894_v12  ;;  %vm2018_vm14 = vcmp.gt.u32.totalorder %v1954_v31, 429496729  ;;  %v2474_v12 = vsub.f32 0.0, %v4480_v28  ;;  %3345 = vpow2.f32 %v2531_v38 }
 0x22a   : > { %v1021_v6 = vshrl.u32 %v957_v45, 16  ;;  %v2472_v63 = vsub.f32 0.0, %v4442_v54  ;;  %v2543_v36 = vmul.f32 1.442695, %v2473_v11  ;;  %3347 = vpow2.f32 %v2537_v4 }
 0x22b   : > { %v2274_v7 = vmul.f32 %v2210_v51, %v2082_v60  ;;  %v2545_v13 = vmul.f32 1.442695, %v2474_v12  ;;  %v2273_v28 = vmul.f32 %v2210_v51, %v2081_v10  ;;  %v2533_v37 = vmul.f32 1.442695, %v2468_v40  ;;  %v4558_v30 = vpop.xlane.xlu1 %2361  ;;  %v4561_v34 = vpop.xlane.xlu0 %2359 }
 0x22c   : > { %v1085_v57 = vxor.u32 %v1021_v6, %v957_v45  ;;  %v2484_v17 = vsub.f32 0.0, %v4456_v27  ;;  %v2541_v18 = vmul.f32 1.442695, %v2472_v63  ;;  %v2483_v58 = vsub.f32 0.0, %v4459_v21 }
 0x22d   : > { %v2338_v9 = vsel %vm2018_vm14, %v2274_v7, 0.0  ;;  %3349 = vpow2.f32 %v2545_v13  ;;  %v2485_v27 = vsub.f32 0.0, %v4473_v16  ;;  %v2488_v60 = vsub.f32 0.0, %v4491_v2 }
 0x22e   : > { %2465 = vadd.xlane.f32.xlu1 %v2338_v9  ;;  %v1761_v55 = vadd.s32 %v1085_v57, %v3930_v46  ;;  %v2471_v46 = vsub.f32 0.0, %v4445_v44  ;;  %3351 = vpow2.f32 %v2543_v36  ;;  %v2565_v15 = vmul.f32 1.442695, %v2484_v17 }
 0x22f   : > { %3353 = vpow2.f32 %v2533_v37  ;;  %v2486_v44 = vsub.f32 0.0, %v4465_v62  ;;  %v2563_v50 = vmul.f32 1.442695, %v2483_v58  ;;  %v4564_v39 = vpop.xlane.xlu1 %2389  ;;  %v2567_v32 = vmul.f32 1.442695, %v2485_v27  ;;  %v4568_v62 = vpop.xlane.xlu0 %2387 }
 0x230   : > { %v1825_v42 = vmul.u32 2654435769, %v1761_v55  ;;  %v2539_v54 = vmul.f32 1.442695, %v2471_v46  ;;  %3355 = vpow2.f32 %v2541_v18  ;;  %v2487_v51 = vsub.f32 0.0, %v4495_v24 }
 0x231   : > { %v3344_v59 = vpop.eup %3343  ;;  %v2569_v43 = vmul.f32 1.442695, %v2486_v44  ;;  %v2500_v35 = vsub.f32 0.0, %v4499_v0  ;;  %v2573_v48 = vmul.f32 1.442695, %v2488_v60  ;;  %v2490_v9 = vsub.f32 0.0, %v4525_v23 }
 0x232   : > { %v1889_v25 = vshrl.u32 %v1825_v42, 16  ;;  %3357 = vpow2.f32 %v2539_v54  ;;  %v2661_v31 = vadd.f32 1.0, %v3344_v59  ;;  %v2571_v2 = vmul.f32 1.442695, %v2487_v51 }
 0x233   : > { %3359 = vpow2.f32 %v2565_v15  ;;  %v4572_v57 = vpop.xlane.xlu1 %2417  ;;  %v2489_v12 = vsub.f32 0.0, %v4529_v53  ;;  %v2597_v55 = vmul.f32 1.442695, %v2500_v35  ;;  %v4575_v4 = vpop.xlane.xlu0 %2415  ;;  %v2499_v0 = vsub.f32 0.0, %v4503_v49 }
 0x234   : > { %v1953_v8 = vxor.u32 %v1889_v25, %v1825_v42  ;;  %3361 = vpow2.f32 %v2563_v50  ;;  %v2577_v13 = vmul.f32 1.442695, %v2490_v9  ;;  %v2476_v36 = vsub.f32 0.0, %v4516_v41 }
 0x235   : > { %3363 = vrcp.f32 %v2661_v31  ;;  %v2575_v42 = vmul.f32 1.442695, %v2489_v12  ;;  %v2595_v25 = vmul.f32 1.442695, %v2499_v0  ;;  %v2855_v37 = vadd.s32 4294967288, %v3883_v5 }
 0x236   : > { %vm2017_vm15 = vcmp.gt.u32.totalorder %v1953_v8, 429496729  ;;  %v3346_v21 = vpop.eup %3345  ;;  %3365 = vpow2.f32 %v2569_v43  ;;  %v2475_v18 = vsub.f32 0.0, %v4520_v33  ;;  %v2501_v41 = vsub.f32 0.0, %v4512_v1 }
 0x237   : > { %v2337_v52 = vsel %vm2017_vm15, %v2273_v28, 0.0  ;;  %v3348_v61 = vpop.eup %3347  ;;  %v2659_v56 = vadd.f32 1.0, %v3346_v21  ;;  %3367 = vpow2.f32 %v2567_v32  ;;  %v4579_v53 = vpop.xlane.xlu1 %2445  ;;  %v2502_v28 = vsub.f32 0.0, %v4509_v29 }
 0x238   : > { %2463 = vadd.xlane.f32.xlu0 %v2337_v52  ;;  %v2662_v38 = vadd.f32 1.0, %v3348_v61  ;;  %v4583_v46 = vpop.xlane.xlu0 %2443  ;;  %v2549_v54 = vmul.f32 1.442695, %v2476_v36  ;;  %v4590_v59 = vsub.s32 %v2855_v37, %v3880_v3  ;;  %v4596_v33 = vsub.s32 %v3883_v5, %v3880_v3 }
 0x239   : > { %v2601_v29 = vmul.f32 1.442695, %v2502_v28  ;;  %v2547_v31 = vmul.f32 1.442695, %v2475_v18  ;;  %v2516_v1 = vsub.f32 0.0, %v4541_v22  ;;  %v2515_v60 = vsub.f32 0.0, %v4544_v20 }
 0x23a   : > { %v3350_v45 = vpop.eup %3349  ;;  %v2599_v32 = vmul.f32 1.442695, %v2501_v41  ;;  %v2518_v22 = vsub.f32 0.0, %v4551_v47  ;;  %v2505_v0 = vsub.f32 0.0, %v4575_v4  ;;  %v2478_v36 = vsub.f32 0.0, %v4558_v30 }
 0x23b   : > { %v3352_v16 = vpop.eup %3351  ;;  %v2666_v7 = vadd.f32 1.0, %v3350_v45  ;;  %v4592_v27 = vpop.xlane.xlu1 %2365  ;;  %v2629_v20 = vmul.f32 1.442695, %v2516_v1  ;;  %v2477_v4 = vsub.f32 0.0, %v4561_v34  ;;  %v2492_v41 = vsub.f32 0.0, %v4564_v39 }
 0x23c   : > { %v2665_v6 = vadd.f32 1.0, %v3352_v16  ;;  %v3354_v24 = vpop.eup %3353  ;;  %v4601_v61 = vpop.xlane.xlu0 %2363  ;;  %v2607_v37 = vmul.f32 1.442695, %v2505_v0  ;;  %vm3143_vm2 = vcmask 1042434   ;;  %vm3145_vm3 = vcmask 1043459  }
 0x23d   : > { %3369 = vrcp.f32 %v2666_v7  ;;  %v3356_v40 = vpop.eup %3355  ;;  %v2660_v11 = vadd.f32 1.0, %v3354_v24  ;;  %v2506_v24 = vsub.f32 0.0, %v4572_v57  ;;  %v2504_v57 = vsub.f32 0.0, %v4533_v26 }
 0x23e   : > { %3371 = vrcp.f32 %v2665_v6  ;;  %v2664_v63 = vadd.f32 1.0, %v3356_v40  ;;  %v2627_v6 = vmul.f32 1.442695, %v2515_v60  ;;  %v2551_v34 = vmul.f32 1.442695, %v2477_v4 }
 0x23f   : > { %3373 = vrcp.f32 %v2659_v56  ;;  %v3358_v23 = vpop.eup %3357  ;;  %v4613_v9 = vpop.xlane.xlu1 %2393  ;;  %v2605_v18 = vmul.f32 1.442695, %v2504_v57  ;;  %v2581_v39 = vmul.f32 1.442695, %v2492_v41  ;;  %vm3147_vm4 = vcmask 1044484  }
 0x240   : > { %3375 = vpow2.f32 %v2573_v48  ;;  %v3360_v10 = vpop.eup %3359  ;;  %v2663_v49 = vadd.f32 1.0, %v3358_v23  ;;  %v2517_v48 = vsub.f32 0.0, %v4554_v14  ;;  %v4618_v12 = vpop.xlane.xlu0 %2391  ;;  %vm3149_vm5 = vcmask 1045509  }
 0x241   : > { %3377 = vpow2.f32 %v2571_v2  ;;  %v3362_v8 = vpop.eup %3361  ;;  %v2676_v17 = vadd.f32 1.0, %v3360_v10  ;;  %vm3151_vm6 = vcmask 1046534   ;;  %vm3153_vm7 = vcmask 1047559  }
 0x242   : > { %3379 = vrcp.f32 %v2662_v38  ;;  %v4586_v52 = vpop.eup %3363  ;;  %v2675_v44 = vadd.f32 1.0, %v3362_v8  ;;  %v2633_v38 = vmul.f32 1.442695, %v2518_v22  ;;  %v2631_v14 = vmul.f32 1.442695, %v2517_v48 }
 0x243   : > { %3381 = vpow2.f32 %v2597_v55  ;;  %v3366_v58 = vpop.eup %3365  ;;  %vm3180_vm8 = vcmask 130048  }
 0x244   : > { %3383 = vpow2.f32 %v2577_v13  ;;  %v3368_v15 = vpop.eup %3367  ;;  %v2678_v45 = vadd.f32 1.0, %v3366_v58  ;;  %v4636_v26 = vpop.xlane.xlu0 %2419  ;;  %v2520_v58 = vsub.f32 0.0, %v4579_v53  ;;  %v2491_v53 = vsub.f32 0.0, %v4568_v62 }
 0x245   : > { %3385 = vrcp.f32 %v2660_v11  ;;  %v2677_v5 = vadd.f32 1.0, %v3368_v15 }
 0x246   : > { %3387 = vpow2.f32 %v2575_v42  ;;  %v2609_v42 = vmul.f32 1.442695, %v2506_v24 }
 0x247   : > { %3389 = vrcp.f32 %v2664_v63 }
 0x248   : > { %3391 = vpow2.f32 %v2595_v25  ;;  %v4629_v25 = vpop.xlane.xlu1 %2421  ;;  %v2448_v60 = vpop.xlane.xlu0 %2447 }
 0x249   : > { %3393 = vrcp.f32 %v2663_v49 }
 0x24a   : > { %v3370_v50 = vpop.eup %3369  ;;  %3395 = vrcp.f32 %v2676_v17 }
 0x24b   : > { %v3372_v43 = vpop.eup %3371  ;;  %v2887_v21 = vrot.slane %v3370_v50, %v4590_v59  ;;  %3397 = vpow2.f32 %v2549_v54  ;;  %v2553_v54 = vmul.f32 1.442695, %v2478_v36  ;;  %v2519_v50 = vsub.f32 0.0, %v4583_v46 }
 0x24c   : > { %v4603_v51 = vpop.eup %3373  ;;  %v2883_v16 = vrot.slane %v3372_v43, %v4596_v33  ;;  %3399 = vpow2.f32 %v2601_v29  ;;  %v2480_v43 = vsub.f32 0.0, %v4592_v27  ;;  %v2479_v46 = vsub.f32 0.0, %v4601_v61 }
 0x24d   : > { %v3376_v3 = vpop.eup %3375  ;;  %3401 = vrcp.f32 %v2675_v44  ;;  %v2521_v36 = vsub.f32 0.0, %v2448_v60 }
 0x24e   : > { %v3378_v56 = vpop.eup %3377  ;;  %v4608_v7 = vsel %vm2860_vm0, %v2887_v21, %v2883_v16  ;;  %3403 = vpow2.f32 %v2547_v31  ;;  %v2680_v63 = vadd.f32 1.0, %v3376_v3  ;;  %v2450_v31 = vpop.xlane.xlu1 %2449  ;;  %v2555_v24 = vmul.f32 1.442695, %v2479_v46 }
 0x24f   : > { %v4610_v35 = vpop.eup %3379  ;;  %3405 = vpow2.f32 %v2599_v32  ;;  %v2679_v8 = vadd.f32 1.0, %v3378_v56  ;;  %v2637_v32 = vmul.f32 1.442695, %v2520_v58  ;;  %v2557_v56 = vmul.f32 1.442695, %v2480_v43 }
 0x250   : > { %v4615_v2 = vpop.eup %3381  ;;  %3407 = vrcp.f32 %v2678_v45 }
 0x251   : > { %v3384_v47 = vpop.eup %3383  ;;  %3409 = vrcp.f32 %v2677_v5  ;;  %v2635_v5 = vmul.f32 1.442695, %v2519_v50 }
 0x252   : > { %v4620_v55 = vpop.eup %3385  ;;  %v2682_v40 = vadd.f32 1.0, %v3384_v47  ;;  %3411 = vpow2.f32 %v2629_v20  ;;  %v2579_v20 = vmul.f32 1.442695, %v2491_v53 }
 0x253   : > { %v3388_v13 = vpop.eup %3387  ;;  %3413 = vpow2.f32 %v2627_v6  ;;  %v2370_v6 = vpop.xlane.xlu1 %2369 }
 0x254   : > { %v4623_v11 = vpop.eup %3389  ;;  %3415 = vrcp.f32 %v2682_v40  ;;  %v2681_v23 = vadd.f32 1.0, %v3388_v13  ;;  %v2368_v40 = vpop.xlane.xlu0 %2367 }
 0x255   : > { %v4626_v10 = vpop.eup %3391  ;;  %3417 = vpow2.f32 %v2633_v38  ;;  %v2481_v58 = vsub.f32 0.0, %v2368_v40 }
 0x256   : > { %v4631_v28 = vpop.eup %3393  ;;  %3419 = vrcp.f32 %v2681_v23  ;;  %v2522_v23 = vsub.f32 0.0, %v2450_v31  ;;  %v2639_v31 = vmul.f32 1.442695, %v2521_v36 }
 0x257   : > { %v4634_v49 = vpop.eup %3395  ;;  %3421 = vpow2.f32 %v2631_v14 }
 0x258   : > { %v3398_v17 = vpop.eup %3397  ;;  %3423 = vpow2.f32 %v2609_v42 }
 0x259   : > { %v4639_v30 = vpop.eup %3399  ;;  %3425 = vrcp.f32 %v2680_v63  ;;  %v2668_v44 = vadd.f32 1.0, %v3398_v17  ;;  %v2398_v17 = vpop.xlane.xlu1 %2397 }
 0x25a   : > { %v4642_v29 = vpop.eup %3401  ;;  %3427 = vpow2.f32 %v2607_v37 }
 0x25b   : > { %v3404_v15 = vpop.eup %3403  ;;  %3429 = vrcp.f32 %v2679_v8  ;;  %v2482_v8 = vsub.f32 0.0, %v2370_v6 }
 0x25c   : > { %v4645_v1 = vpop.eup %3405  ;;  %3431 = vpow2.f32 %v2605_v18  ;;  %v2667_v16 = vadd.f32 1.0, %v3404_v15  ;;  %v2641_v15 = vmul.f32 1.442695, %v2522_v23 }
 0x25d   : > { %v4648_v21 = vpop.eup %3407  ;;  %3433 = vpow2.f32 %v2553_v54  ;;  %v2561_v43 = vmul.f32 1.442695, %v2482_v8  ;;  %v4670_v46 = vpop.xlane.xlu1 %2425  ;;  %v2878_v8 = vrot.slane %v4623_v11, %v4590_v59  ;;  %v2854_v11 = vrot.slane %v4603_v51, %v4596_v33 }
 0x25e   : > { %v4651_v45 = vpop.eup %3409  ;;  %3435 = vpow2.f32 %v2551_v34 }
 0x25f   : > { %v3412_v3 = vpop.eup %3411  ;;  %3437 = vrcp.f32 %v2668_v44  ;;  %v2396_v44 = vpop.xlane.xlu0 %2395 }
 0x260   : > { %v3414_v22 = vpop.eup %3413  ;;  %3439 = vpow2.f32 %v2581_v39  ;;  %v2708_v38 = vadd.f32 1.0, %v3412_v3 }
 0x261   : > { %v3416_v27 = vpop.eup %3415  ;;  %3441 = vpow2.f32 %v2637_v32  ;;  %v2707_v14 = vadd.f32 1.0, %v3414_v22  ;;  %v2559_v32 = vmul.f32 1.442695, %v2481_v58  ;;  %v2493_v22 = vsub.f32 0.0, %v4618_v12 }
 0x262   : > { %v3418_v48 = vpop.eup %3417  ;;  %3443 = vrcp.f32 %v2667_v16  ;;  %v2959_v62 = vrot.slane %v3416_v27, %v4590_v59  ;;  %v2494_v16 = vsub.f32 0.0, %v4613_v9  ;;  %v2495_v12 = vsub.f32 0.0, %v2396_v44 }
 0x263   : > { %v3420_v47 = vpop.eup %3419  ;;  %3445 = vpow2.f32 %v2635_v5  ;;  %v2710_v37 = vadd.f32 1.0, %v3418_v48  ;;  %v4675_v6 = vpop.xlane.xlu0 %2423  ;;  %v2583_v40 = vmul.f32 1.442695, %v2493_v22  ;;  %v2865_v44 = vrot.slane %v4586_v52, %v4596_v33 }
 0x264   : > { %v3422_v61 = vpop.eup %3421  ;;  %v2955_v0 = vrot.slane %v3420_v47, %v4596_v33  ;;  %3447 = vpow2.f32 %v2557_v56  ;;  %v2585_v47 = vmul.f32 1.442695, %v2494_v16  ;;  %v2508_v22 = vsub.f32 0.0, %v4629_v25 }
 0x265   : > { %v3424_v13 = vpop.eup %3423  ;;  %3449 = vpow2.f32 %v2579_v20  ;;  %v2709_v41 = vadd.f32 1.0, %v3422_v61  ;;  %v2496_v20 = vsub.f32 0.0, %v2398_v17 }
 0x266   : > { %v4656_v57 = vpop.eup %3425  ;;  %v4659_v42 = vsel %vm2860_vm0, %v2959_v62, %v2955_v0  ;;  %v2698_v63 = vadd.f32 1.0, %v3424_v13  ;;  %3451 = vpow2.f32 %v2555_v24  ;;  %v2503_v0 = vsub.f32 0.0, %v4537_v19 }
 0x267   : > { %v3428_v4 = vpop.eup %3427  ;;  %3453 = vrcp.f32 %v2708_v38  ;;  %v2589_v13 = vmul.f32 1.442695, %v2496_v20  ;;  %v2452_v19 = vpop.xlane.xlu0 %2451 }
 0x268   : > { %v4661_v18 = vpop.eup %3429  ;;  %3455 = vrcp.f32 %v2698_v63  ;;  %v2697_v54 = vadd.f32 1.0, %v3428_v4  ;;  %v2869_v63 = vrot.slane %v4610_v35, %v4590_v59  ;;  %v2587_v35 = vmul.f32 1.442695, %v2495_v12 }
 0x269   : > { %v4663_v34 = vpop.eup %3431  ;;  %3457 = vrcp.f32 %v2707_v14  ;;  %v2454_v14 = vpop.xlane.xlu1 %2453  ;;  %v2523_v20 = vsub.f32 0.0, %v2452_v19 }
 0x26a   : > { %v3434_v50 = vpop.eup %3433  ;;  %3459 = vrcp.f32 %v2697_v54  ;;  %v2874_v54 = vrot.slane %v4631_v28, %v4596_v33  ;;  %v2870_v28 = vsel %vm2860_vm0, %v2869_v63, %v2865_v44  ;;  %v2507_v44 = vsub.f32 0.0, %v4636_v26 }
 0x26b   : > { %v3436_v39 = vpop.eup %3435  ;;  %3461 = vrcp.f32 %v2710_v37  ;;  %v2670_v5 = vadd.f32 1.0, %v3434_v50  ;;  %v2859_v37 = vrot.slane %v4620_v55, %v4590_v59  ;;  %v2603_v55 = vmul.f32 1.442695, %v2503_v0 }
 0x26c   : > { %v4665_v53 = vpop.eup %3437  ;;  %3463 = vrcp.f32 %v2709_v41  ;;  %v2669_v62 = vadd.f32 1.0, %v3436_v39 }
 0x26d   : > { %v4667_v60 = vpop.eup %3439  ;;  %3465 = vpow2.f32 %v2641_v15  ;;  %v2861_v52 = vsel %vm2860_vm0, %v2859_v37, %v2854_v11 }
 0x26e   : > { %v3442_v3 = vpop.eup %3441  ;;  %3467 = vpow2.f32 %v2639_v31  ;;  %v3142_v37 = vsel %vm3141_vm1, %v2870_v28, %v2861_v52 }
 0x26f   : > { %v4673_v56 = vpop.eup %3443  ;;  %v2712_v27 = vadd.f32 1.0, %v3442_v3  ;;  %3469 = vpow2.f32 %v2561_v43  ;;  %v2524_v43 = vsub.f32 0.0, %v2454_v14  ;;  %v2879_v3 = vsel %vm2860_vm0, %v2878_v8, %v2874_v54 }
 0x270   : > { %v3446_v48 = vpop.eup %3445  ;;  %3471 = vpow2.f32 %v2559_v32  ;;  %v3144_v19 = vsel %vm3143_vm2, %v2879_v3, %v3142_v37  ;;  %v2896_v3 = vrot.slane %v4665_v53, %v4590_v59 }
 0x271   : > { %v3448_v24 = vpop.eup %3447  ;;  %3473 = vrcp.f32 %v2712_v27  ;;  %v2711_v9 = vadd.f32 1.0, %v3446_v48 }
 0x272   : > { %v4677_v38 = vpop.eup %3449  ;;  %3475 = vrcp.f32 %v2670_v5  ;;  %v2672_v36 = vadd.f32 1.0, %v3448_v24 }
 0x273   : > { %v3452_v61 = vpop.eup %3451  ;;  %3477 = vrcp.f32 %v2711_v9 }
 0x274   : > { %v4680_v23 = vpop.eup %3453  ;;  %3479 = vrcp.f32 %v2669_v62  ;;  %v2671_v17 = vadd.f32 1.0, %v3452_v61 }
 0x275   : > { %v3456_v4 = vpop.eup %3455  ;;  %3481 = vpow2.f32 %v2585_v47  ;;  %v2402_v32 = vpop.xlane.xlu1 %2401  ;;  %v3076_v61 = vrot.slane %v4680_v23, %v4590_v59 }
 0x276   : > { %v4688_v41 = vpop.eup %3457  ;;  %v3031_v58 = vrot.slane %v3456_v4, %v4590_v59  ;;  %3483 = vpow2.f32 %v2583_v40  ;;  %v2498_v40 = vsub.f32 0.0, %v2402_v32 }
 0x277   : > { %v3460_v15 = vpop.eup %3459  ;;  %3485 = vpow2.f32 %v2589_v13  ;;  %v2645_v13 = vmul.f32 1.442695, %v2524_v43  ;;  %v3072_v25 = vrot.slane %v4688_v41, %v4596_v33 }
 0x278   : > { %v3462_v50 = vpop.eup %3461  ;;  %v3027_v31 = vrot.slane %v3460_v15, %v4596_v33  ;;  %3487 = vrcp.f32 %v2672_v36 }
 0x279   : > { %v3464_v39 = vpop.eup %3463  ;;  %3489 = vrcp.f32 %v2671_v17  ;;  %v2400_v48 = vpop.xlane.xlu0 %2399  ;;  %v3085_v24 = vrot.slane %v3462_v50, %v4590_v59  ;;  %v2643_v17 = vmul.f32 1.442695, %v2523_v20  ;;  %v3077_v11 = vsel %vm2860_vm0, %v3076_v61, %v3072_v25 }
 0x27a   : > { %v3466_v16 = vpop.eup %3465  ;;  %v4702_v5 = vsel %vm2860_vm0, %v3031_v58, %v3027_v31  ;;  %3491 = vpow2.f32 %v2587_v35  ;;  %v3081_v9 = vrot.slane %v3464_v39, %v4596_v33  ;;  %v2497_v36 = vsub.f32 0.0, %v2400_v48 }
 0x27b   : > { %v3468_v51 = vpop.eup %3467  ;;  %3493 = vpow2.f32 %v2603_v55  ;;  %v2714_v27 = vadd.f32 1.0, %v3466_v16  ;;  %v2593_v58 = vmul.f32 1.442695, %v2498_v40  ;;  %v2684_v35 = vadd.f32 1.0, %v4667_v60 }
 0x27c   : > { %v3470_v62 = vpop.eup %3469  ;;  %v2713_v47 = vadd.f32 1.0, %v3468_v51  ;;  %v3086_v54 = vsel %vm2860_vm0, %v3085_v24, %v3081_v9  ;;  %v2613_v31 = vmul.f32 1.442695, %v2508_v22  ;;  %v2510_v39 = vsub.f32 0.0, %v4670_v46 }
 0x27d   : > { %v3472_v12 = vpop.eup %3471  ;;  %3495 = vrcp.f32 %v2714_v27  ;;  %v2674_v0 = vadd.f32 1.0, %v3470_v62  ;;  %v2591_v28 = vmul.f32 1.442695, %v2497_v36  ;;  %v3169_v32 = vsel %vm3141_vm1, %v3086_v54, %v3077_v11 }
 0x27e   : > { %v3474_v14 = vpop.eup %3473  ;;  %3497 = vrcp.f32 %v2713_v47  ;;  %v2673_v63 = vadd.f32 1.0, %v3472_v12  ;;  %v2683_v60 = vadd.f32 1.0, %v4677_v38  ;;  %v2892_v51 = vrot.slane %v4673_v56, %v4596_v33 }
 0x27f   : > { %v4711_v4 = vpop.eup %3475  ;;  %v3094_v8 = vrot.slane %v3474_v14, %v4590_v59  ;;  %3499 = vrcp.f32 %v2674_v0  ;;  %v3146_v22 = vsel %vm3145_vm3, %v4608_v7, %v3144_v19  ;;  %v2611_v27 = vmul.f32 1.442695, %v2507_v44 }
 0x280   : > { %v3478_v23 = vpop.eup %3477  ;;  %3501 = vrcp.f32 %v2673_v63  ;;  %v2509_v56 = vsub.f32 0.0, %v4675_v6  ;;  %v2905_v62 = vrot.slane %v4711_v4, %v4590_v59  ;;  %v2897_v40 = vsel %vm2860_vm0, %v2896_v3, %v2892_v51 }
 0x281   : > { %v3480_v41 = vpop.eup %3479  ;;  %v3090_v15 = vrot.slane %v3478_v23, %v4596_v33  ;;  %3503 = vpow2.f32 %v2645_v13  ;;  %v2617_v6 = vmul.f32 1.442695, %v2510_v39  ;;  %v3148_v54 = vsel %vm3147_vm4, %v2897_v40, %v3146_v22 }
 0x282   : > { %v3482_v50 = vpop.eup %3481  ;;  %3505 = vpow2.f32 %v2643_v17  ;;  %v2901_v24 = vrot.slane %v3480_v41, %v4596_v33  ;;  %v2615_v36 = vmul.f32 1.442695, %v2509_v56 }
 0x283   : > { %v3484_v43 = vpop.eup %3483  ;;  %v3095_v26 = vsel %vm2860_vm0, %v3094_v8, %v3090_v15  ;;  %3507 = vpow2.f32 %v2593_v58  ;;  %v2686_v20 = vadd.f32 1.0, %v3482_v50 }
 0x284   : > { %v3486_v52 = vpop.eup %3485  ;;  %v3170_v46 = vsel %vm3143_vm2, %v3095_v26, %v3169_v32  ;;  %3509 = vrcp.f32 %v2684_v35  ;;  %v2685_v9 = vadd.f32 1.0, %v3484_v43  ;;  %v2906_v8 = vsel %vm2860_vm0, %v2905_v62, %v2901_v24 }
 0x285   : > { %v4721_v55 = vpop.xlane.xlu1 %2429  ;;  %v4728_v16 = vpop.xlane.xlu0 %2427  ;;  %3511 = vpow2.f32 %v2591_v28  ;;  %v2688_v13 = vadd.f32 1.0, %v3486_v52  ;;  %v2937_v62 = vrot.slane %v4651_v45, %v4596_v33 }
 0x286   : > { %v3488_v38 = vpop.eup %3487  ;;  %3513 = vrcp.f32 %v2683_v60  ;;  %v2512_v41 = vsub.f32 0.0, %v4721_v55  ;;  %v2511_v32 = vsub.f32 0.0, %v4728_v16 }
 0x287   : > { %v3490_v53 = vpop.eup %3489  ;;  %3515 = vpow2.f32 %v2613_v31  ;;  %v2914_v61 = vrot.slane %v3488_v38, %v4590_v59  ;;  %v3150_v31 = vsel %vm3149_vm5, %v2906_v8, %v3148_v54 }
 0x288   : > { %v3492_v48 = vpop.eup %3491  ;;  %v2910_v0 = vrot.slane %v3490_v53, %v4596_v33  ;;  %3517 = vpow2.f32 %v2611_v27  ;;  %v2621_v38 = vmul.f32 1.442695, %v2512_v41  ;;  %v2692_v53 = vadd.f32 1.0, %v4615_v2 }
 0x289   : > { %v4747_v47 = vpop.eup %3493  ;;  %3519 = vrcp.f32 %v2686_v20  ;;  %v2687_v63 = vadd.f32 1.0, %v3492_v48  ;;  %v2619_v20 = vmul.f32 1.442695, %v2511_v32  ;;  %v2941_v48 = vrot.slane %v4648_v21, %v4590_v59 }
 0x28a   : > { %v3496_v25 = vpop.eup %3495  ;;  %3521 = vrcp.f32 %v2685_v9  ;;  %v2915_v15 = vsel %vm2860_vm0, %v2914_v61, %v2910_v0  ;;  %v2928_v2 = vrot.slane %v4642_v29, %v4596_v33  ;;  %v2693_v61 = vadd.f32 1.0, %v4645_v1 }
 0x28b   : > { %v3498_v37 = vpop.eup %3497  ;;  %v3103_v17 = vrot.slane %v3496_v25, %v4590_v59  ;;  %v3152_v26 = vsel %vm3151_vm6, %v2915_v15, %v3150_v31  ;;  %v2942_v0 = vsel %vm2860_vm0, %v2941_v48, %v2937_v62  ;;  %v2695_v32 = vadd.f32 1.0, %v4747_v47 }
 0x28c   : > { %v3500_v19 = vpop.eup %3499  ;;  %v3099_v58 = vrot.slane %v3498_v37, %v4596_v33 }
 0x28d   : > { %v3502_v35 = vpop.eup %3501  ;;  %v2923_v44 = vrot.slane %v3500_v19, %v4590_v59 }
 0x28e   : > { %v3504_v11 = vpop.eup %3503  ;;  %v3104_v39 = vsel %vm2860_vm0, %v3103_v17, %v3099_v58  ;;  %v2919_v28 = vrot.slane %v3502_v35, %v4596_v33 }
 0x28f   : > { %v2458_v7 = vpop.xlane.xlu1 %2457  ;;  %v4770_v43 = vsel %vm3145_vm3, %v3104_v39, %v3170_v46  ;;  %v2716_v55 = vadd.f32 1.0, %v3504_v11  ;;  %v3506_v60 = vpop.eup %3505 }
 0x290   : > { %v2526_v12 = vsub.f32 0.0, %v2458_v7  ;;  %v2924_v52 = vsel %vm2860_vm0, %v2923_v44, %v2919_v28  ;;  %v3508_v3 = vpop.eup %3507  ;;  %v2715_v46 = vadd.f32 1.0, %v3506_v60  ;;  %v2691_v7 = vadd.f32 1.0, %v4626_v10 }
 0x291   : > { %v2456_v14 = vpop.xlane.xlu0 %2455  ;;  %v3154_v51 = vsel %vm3153_vm7, %v2924_v52, %v3152_v26  ;;  %v4781_v22 = vpop.eup %3509  ;;  %v2690_v27 = vadd.f32 1.0, %v3508_v3  ;;  %v2950_v10 = vrot.slane %v4656_v57, %v4590_v59  ;;  %v2696_v57 = vadd.f32 1.0, %v4663_v34 }
 0x292   : > { %v2649_v4 = vmul.f32 1.442695, %v2526_v12  ;;  %v2525_v23 = vsub.f32 0.0, %v2456_v14  ;;  %3181 = vst.msk [vmem:[%s4775_s17] sm:$0xff] %vm3180_vm8, %v3154_v51  ;;  %v3512_v16 = vpop.eup %3511  ;;  %v2694_v12 = vadd.f32 1.0, %v4639_v30 }
 0x293   : > { %v3514_v56 = vpop.eup %3513  ;;  %v2689_v24 = vadd.f32 1.0, %v3512_v16 }
 0x294   : > { %3523 = vpow2.f32 %v2649_v4  ;;  %v2647_v50 = vmul.f32 1.442695, %v2525_v23  ;;  %v3516_v9 = vpop.eup %3515  ;;  %v2964_v17 = vrot.slane %v3514_v56, %v4596_v33 }
 0x295   : > { %3525 = vrcp.f32 %v2688_v13  ;;  %v3518_v40 = vpop.eup %3517  ;;  %v2946_v13 = vrot.slane %v4661_v18, %v4596_v33  ;;  %v2968_v18 = vrot.slane %v4781_v22, %v4590_v59  ;;  %v2700_v51 = vadd.f32 1.0, %v3516_v9 }
 0x296   : > { %3527 = vrcp.f32 %v2687_v63  ;;  %v3520_v21 = vpop.eup %3519 }
 0x297   : > { %3529 = vpow2.f32 %v2647_v50  ;;  %v3522_v45 = vpop.eup %3521  ;;  %v2977_v41 = vrot.slane %v3520_v21, %v4590_v59  ;;  %v2969_v60 = vsel %vm2860_vm0, %v2968_v18, %v2964_v17 }
 0x298   : > { %3531 = vpow2.f32 %v2617_v6  ;;  %v2932_v6 = vrot.slane %v4634_v49, %v4590_v59  ;;  %v2973_v35 = vrot.slane %v3522_v45, %v4596_v33 }
 0x299   : > { %3533 = vrcp.f32 %v2716_v55 }
 0x29a   : > { %3535 = vpow2.f32 %v2615_v36  ;;  %v2933_v30 = vsel %vm2860_vm0, %v2932_v6, %v2928_v2  ;;  %v2951_v36 = vsel %vm2860_vm0, %v2950_v10, %v2946_v13  ;;  %v2978_v3 = vsel %vm2860_vm0, %v2977_v41, %v2973_v35 }
 0x29b   : > { %3537 = vrcp.f32 %v2715_v46  ;;  %v3155_v1 = vsel %vm3141_vm1, %v2942_v0, %v2933_v30 }
 0x29c   : > { %3539 = vrcp.f32 %v2690_v27  ;;  %v3156_v28 = vsel %vm3143_vm2, %v2951_v36, %v3155_v1  ;;  %v2699_v27 = vadd.f32 1.0, %v3518_v40 }
 0x29d   : > { %3541 = vpow2.f32 %v2621_v38  ;;  %v3157_v22 = vsel %vm3145_vm3, %v4659_v42, %v3156_v28 }
 0x29e   : > { %3543 = vrcp.f32 %v2689_v24 }
 0x29f   : > { %3545 = vpow2.f32 %v2619_v20  ;;  %v3158_v20 = vsel %vm3147_vm4, %v2969_v60, %v3157_v22 }
 0x2a0   : > { %3547 = vrcp.f32 %v2692_v53  ;;  %v3159_v42 = vsel %vm3149_vm5, %v2978_v3, %v3158_v20 }
 0x2a1   : > { %v3524_v49 = vpop.eup %3523  ;;  %3549 = vrcp.f32 %v2691_v7 }
 0x2a2   : > { %v3526_v29 = vpop.eup %3525  ;;  %3551 = vrcp.f32 %v2694_v12  ;;  %v2718_v14 = vadd.f32 1.0, %v3524_v49 }
 0x2a3   : > { %v3528_v25 = vpop.eup %3527  ;;  %3553 = vrcp.f32 %v2693_v61  ;;  %v2986_v15 = vrot.slane %v3526_v29, %v4590_v59 }
 0x2a4   : > { %v3530_v63 = vpop.eup %3529  ;;  %3555 = vrcp.f32 %v2718_v14  ;;  %v2434_v4 = vpop.xlane.xlu1 %2433  ;;  %v2982_v34 = vrot.slane %v3528_v25, %v4596_v33 }
 0x2a5   : > { %v2432_v37 = vpop.xlane.xlu0 %2431  ;;  %v3532_v8 = vpop.eup %3531  ;;  %v2717_v23 = vadd.f32 1.0, %v3530_v63  ;;  %v2514_v19 = vsub.f32 0.0, %v2434_v4 }
 0x2a6   : > { %v2513_v54 = vsub.f32 0.0, %v2432_v37  ;;  %v3534_v58 = vpop.eup %3533  ;;  %v2987_v16 = vsel %vm2860_vm0, %v2986_v15, %v2982_v34  ;;  %v2702_v56 = vadd.f32 1.0, %v3532_v8 }
 0x2a7   : > { %v3536_v44 = vpop.eup %3535  ;;  %v3112_v50 = vrot.slane %v3534_v58, %v4590_v59  ;;  %3557 = vrcp.f32 %v2717_v23  ;;  %v2625_v11 = vmul.f32 1.442695, %v2514_v19  ;;  %v3160_v40 = vsel %vm3151_vm6, %v2987_v16, %v3159_v42 }
 0x2a8   : > { %v2623_v31 = vmul.f32 1.442695, %v2513_v54  ;;  %v3538_v39 = vpop.eup %3537  ;;  %3559 = vrcp.f32 %v2696_v57  ;;  %v2701_v9 = vadd.f32 1.0, %v3536_v44 }
 0x2a9   : > { %v3540_v55 = vpop.eup %3539  ;;  %v3108_v26 = vrot.slane %v3538_v39, %v4596_v33  ;;  %3561 = vpow2.f32 %v2625_v11 }
 0x2aa   : > { %v3542_v52 = vpop.eup %3541  ;;  %v2995_v46 = vrot.slane %v3540_v55, %v4590_v59  ;;  %3563 = vpow2.f32 %v2623_v31 }
 0x2ab   : > { %v3544_v38 = vpop.eup %3543  ;;  %v3113_v47 = vsel %vm2860_vm0, %v3112_v50, %v3108_v26  ;;  %3565 = vrcp.f32 %v2695_v32  ;;  %v2704_v2 = vadd.f32 1.0, %v3542_v52 }
 0x2ac   : > { %v3546_v53 = vpop.eup %3545  ;;  %v3172_v48 = vsel %vm3147_vm4, %v3113_v47, %v4770_v43  ;;  %v2991_v62 = vrot.slane %v3544_v38, %v4596_v33  ;;  %3567 = vrcp.f32 %v2700_v51 }
 0x2ad   : > { %v4828_v24 = vpop.eup %3547  ;;  %3569 = vrcp.f32 %v2699_v27  ;;  %v2703_v21 = vadd.f32 1.0, %v3546_v53 }
 0x2ae   : > { %v4831_v7 = vpop.eup %3549  ;;  %v2996_v6 = vsel %vm2860_vm0, %v2995_v46, %v2991_v62  ;;  %3571 = vrcp.f32 %v2702_v56  ;;  %v3004_v28 = vrot.slane %v4828_v24, %v4590_v59 }
 0x2af   : > { %v3552_v12 = vpop.eup %3551  ;;  %v3161_v43 = vsel %vm3153_vm7, %v2996_v6, %v3160_v40  ;;  %3573 = vrcp.f32 %v2701_v9  ;;  %v3000_v55 = vrot.slane %v4831_v7, %v4596_v33 }
 0x2b0   : > { %v3554_v61 = vpop.eup %3553  ;;  %3182 = vst.msk [vmem:[%s4775_s17 + $0x8] sm:$0xff] %vm3180_vm8, %v3161_v43  ;;  %3575 = vrcp.f32 %v2704_v2  ;;  %v3013_v34 = vrot.slane %v3552_v12, %v4590_v59 }
 0x2b1   : > { %v3556_v45 = vpop.eup %3555  ;;  %3577 = vrcp.f32 %v2703_v21  ;;  %v3009_v44 = vrot.slane %v3554_v61, %v4596_v33  ;;  %v3005_v27 = vsel %vm2860_vm0, %v3004_v28, %v3000_v55 }
 0x2b2   : > { %v2462_v0 = vpop.xlane.xlu1 %2461  ;;  %v3121_v10 = vrot.slane %v3556_v45, %v4590_v59  ;;  %v2460_v13 = vpop.xlane.xlu0 %2459 }
 0x2b3   : > { %v2528_v14 = vsub.f32 0.0, %v2462_v0  ;;  %v2527_v1 = vsub.f32 0.0, %v2460_v13  ;;  %v3014_v26 = vsel %vm2860_vm0, %v3013_v34, %v3009_v44 }
 0x2b4   : > { %v3558_v49 = vpop.eup %3557  ;;  %v3162_v47 = vsel %vm3141_vm1, %v3014_v26, %v3005_v27 }
 0x2b5   : > { %v3560_v29 = vpop.eup %3559  ;;  %v3117_v30 = vrot.slane %v3558_v49, %v4596_v33  ;;  %v2653_v8 = vmul.f32 1.442695, %v2528_v14  ;;  %v2651_v19 = vmul.f32 1.442695, %v2527_v1 }
 0x2b6   : > { %v3562_v25 = vpop.eup %3561  ;;  %v3022_v11 = vrot.slane %v3560_v29, %v4590_v59 }
 0x2b7   : > { %v3564_v63 = vpop.eup %3563  ;;  %v3122_v36 = vsel %vm2860_vm0, %v3121_v10, %v3117_v30  ;;  %v2706_v57 = vadd.f32 1.0, %v3562_v25  ;;  %v2466_v18 = vpop.xlane.xlu1 %2465 }
 0x2b8   : > { %v4842_v4 = vsel %vm3149_vm5, %v3122_v36, %v3172_v48  ;;  %v2705_v37 = vadd.f32 1.0, %v3564_v63  ;;  %v2530_v17 = vsub.f32 0.0, %v2466_v18  ;;  %v3566_v23 = vpop.eup %3565 }
 0x2b9   : > { %3579 = vrcp.f32 %v2706_v57  ;;  %v3568_v54 = vpop.eup %3567  ;;  %v3018_v31 = vrot.slane %v3566_v23, %v4596_v33 }
 0x2ba   : > { %3581 = vrcp.f32 %v2705_v37  ;;  %v3570_v58 = vpop.eup %3569  ;;  %v2657_v35 = vmul.f32 1.442695, %v2530_v17  ;;  %v3040_v32 = vrot.slane %v3568_v54, %v4590_v59 }
 0x2bb   : > { %v3572_v41 = vpop.eup %3571  ;;  %3583 = vpow2.f32 %v2653_v8  ;;  %v3036_v60 = vrot.slane %v3570_v58, %v4596_v33  ;;  %v3023_v51 = vsel %vm2860_vm0, %v3022_v11, %v3018_v31 }
 0x2bc   : > { %v3574_v15 = vpop.eup %3573  ;;  %3585 = vpow2.f32 %v2651_v19  ;;  %v3049_v52 = vrot.slane %v3572_v41, %v4590_v59  ;;  %v3163_v56 = vsel %vm3143_vm2, %v3023_v51, %v3162_v47 }
 0x2bd   : > { %v3576_v50 = vpop.eup %3575  ;;  %3587 = vpow2.f32 %v2657_v35  ;;  %v3045_v3 = vrot.slane %v3574_v15, %v4596_v33  ;;  %v3041_v53 = vsel %vm2860_vm0, %v3040_v32, %v3036_v60  ;;  %v3164_v42 = vsel %vm3145_vm3, %v4702_v5, %v3163_v56 }
 0x2be   : > { %v3578_v39 = vpop.eup %3577  ;;  %v3058_v46 = vrot.slane %v3576_v50, %v4590_v59  ;;  %v3165_v40 = vsel %vm3147_vm4, %v3041_v53, %v3164_v42 }
 0x2bf   : > { %v3054_v38 = vrot.slane %v3578_v39, %v4596_v33  ;;  %v3050_v48 = vsel %vm2860_vm0, %v3049_v52, %v3045_v3 }
 0x2c0   : > { %v3166_v2 = vsel %vm3149_vm5, %v3050_v48, %v3165_v40 }
 0x2c1   : > { %v2464_v22 = vpop.xlane.xlu0 %2463  ;;  %v3059_v9 = vsel %vm2860_vm0, %v3058_v46, %v3054_v38 }
 0x2c2   : > { %v2529_v16 = vsub.f32 0.0, %v2464_v22  ;;  %v3167_v43 = vsel %vm3151_vm6, %v3059_v9, %v3166_v2 }
 0x2c4   : > { %v2655_v62 = vmul.f32 1.442695, %v2529_v16 }
 0x2c6   : > { %v3580_v20 = vpop.eup %3579  ;;  %3589 = vpow2.f32 %v2655_v62 }
 0x2c7   : > { %v3582_v24 = vpop.eup %3581  ;;  %v3067_v7 = vrot.slane %v3580_v20, %v4590_v59 }
 0x2c8   : > { %v3063_v6 = vrot.slane %v3582_v24, %v4596_v33  ;;  %v3584_v12 = vpop.eup %3583 }
 0x2c9   : > { %v3586_v61 = vpop.eup %3585  ;;  %v2720_v5 = vadd.f32 1.0, %v3584_v12 }
 0x2ca   : > { %v3068_v21 = vsel %vm2860_vm0, %v3067_v7, %v3063_v6  ;;  %v3588_v0 = vpop.eup %3587  ;;  %v2719_v10 = vadd.f32 1.0, %v3586_v61 }
 0x2cb   : > { %v3168_v45 = vsel %vm3153_vm7, %v3068_v21, %v3167_v43  ;;  %3591 = vrcp.f32 %v2720_v5  ;;  %v2722_v13 = vadd.f32 1.0, %v3588_v0 }
 0x2cc   : > { %3183 = vst.msk [vmem:[%s4775_s17 + $0x10] sm:$0xff] %vm3180_vm8, %v3168_v45  ;;  %3593 = vrcp.f32 %v2719_v10 }
 0x2cd   : > { %3595 = vrcp.f32 %v2722_v13 }
 0x2d3   : > { %v3590_v49 = vpop.eup %3589 }
 0x2d4   : > { %v2721_v29 = vadd.f32 1.0, %v3590_v49 }
 0x2d6   : > { %3597 = vrcp.f32 %v2721_v29 }
 0x2d8   : > { %v3592_v30 = vpop.eup %3591 }
 0x2d9   : > { %v3594_v14 = vpop.eup %3593  ;;  %v3130_v1 = vrot.slane %v3592_v30, %v4590_v59 }
 0x2da   : > { %v3596_v25 = vpop.eup %3595  ;;  %v3126_v63 = vrot.slane %v3594_v14, %v4596_v33 }
 0x2db   : > { %v3139_v36 = vrot.slane %v3596_v25, %v4590_v59 }
 0x2dc   : > { %v3131_v18 = vsel %vm2860_vm0, %v3130_v1, %v3126_v63 }
 0x2dd   : > { %v3174_v8 = vsel %vm3151_vm6, %v3131_v18, %v4842_v4 }
 0x2e3   : > { %v3598_v57 = vpop.eup %3597 }
 0x2e4   : > { %v3135_v37 = vrot.slane %v3598_v57, %v4596_v33 }
 0x2e6   : > { %v3140_v17 = vsel %vm2860_vm0, %v3139_v36, %v3135_v37 }
 0x2e7   : > { %v3175_v23 = vsel %vm3153_vm7, %v3140_v17, %v3174_v8 }
 0x2e8   : > { %3184 = vst.msk [vmem:[%s4775_s17 + $0x18] sm:$0xff] %vm3180_vm8, %v3175_v23 }
 0x2e9 PF: > { %p17_p11 = scmp.ge.s32.totalorder %s3752_s18, 4   ;;  %s4912_s14 = smov %s3693_s15 }
 0x2ea   : > { %s4913_s15 = smov %s3697_s16  ;;  %s4914_s16 = smov %s3762_s21 }
 0x2eb   : > { %s4915_s17 = smov %s3752_s18  ;;  %19 = sbr.rel (!%p17_p11) target bundleno = 7 (0x7), region = 85 }
 0x2f0   :  { %3207 = vsyncpa [#allocation4], 1 }
 0x2f1   :  { %3209 = vsyncpa [#allocation4 + $0x1], 1 }
 0x2f2   :  { %3210 = vsyncpa [#allocation6], 1 }
 0x2f3   :  { %3212 = vsyncpa [#allocation6 + $0x1], 1 }

</bundles_post_ra>
